<compile_context>
chip_gen: v7x
topology: tpu7x:2x2x1
jax: 0.10.0
libtpu: 0.0.40
codegen_flags: <defaults>
</compile_context>

<pallas_src>
import jax
import jax.numpy as jnp
from jax import lax
from jax.experimental import pallas as pl
from jax.experimental.pallas import tpu as pltpu

_INV_SQRT2 = 0.7071067811865476
_LN_EPS = 1e-6  # custom_build_norm_layer default eps


def _erf_poly(x):
    """Abramowitz & Stegun 7.1.26 erf approximation, |err| <= 1.5e-7 (f32)."""
    p = 0.3275911
    a1, a2, a3, a4, a5 = (0.254829592, -0.284496736, 1.421413741,
                          -1.453152027, 1.061405429)
    a = jnp.abs(x)
    t = 1.0 / (1.0 + p * a)
    poly = ((((a5 * t + a4) * t + a3) * t + a2) * t + a1) * t
    y = 1.0 - poly * jnp.exp(-a * a)          # exp goes to the (otherwise idle) EUP
    return jnp.where(x < 0.0, -y, y)


def _gelu_exact(x):
    # nn.GELU() default (approximate='none'): 0.5*x*(1+erf(x/sqrt(2)))
    return 0.5 * x * (1.0 + _erf_poly(x * _INV_SQRT2))


def voxel_bev_unet_kernel(x_ref, w1_ref, g1_ref, b1_ref, w2_ref, b2_ref,
                          wd_ref, g2_ref, b2d_ref, out_ref):
    CZ, T = x_ref.shape                 # T = HW tile width
    ZD = w1_ref.shape[0]                # Z * bev_dim
    D = wd_ref.shape[1]                 # bev_dim
    Z = ZD // D

    x_f32 = x_ref[...]                  # (CZ, T): residual AND encoder input (one DMA)
    x_bf16 = x_f32.astype(jnp.bfloat16)

    # ---- pillar encoder, first Linear: all Z slabs in one block-diagonal matmul ----
    h = jnp.dot(w1_ref[...], x_bf16, preferred_element_type=jnp.float32)    # (ZD, T)

    # LayerNorm(eps=1e-6) over the D features of each z slab.
    # Static slices are aligned to whole sublane tiles (D = 32), so they are free views.
    parts = []
    for z in range(Z):
        hz = h[z * D:(z + 1) * D, :]                                        # (D, T)
        mu = jnp.mean(hz, axis=0, keepdims=True)
        xc = hz - mu
        var = jnp.mean(xc * xc, axis=0, keepdims=True)
        parts.append(xc * lax.rsqrt(var + _LN_EPS))
    hn = jnp.concatenate(parts, axis=0)                                     # (ZD, T)
    hn = hn * g1_ref[...] + b1_ref[...]          # affine applied once (hoisted out of z loop)
    hg = _gelu_exact(hn)

    # Second Linear, block-diagonal over z (bias is z-independent -> added after max).
    h2 = jnp.dot(w2_ref[...], hg.astype(jnp.bfloat16),
                 preferred_element_type=jnp.float32)                        # (ZD, T)

    # ---- BEV feature: max over Z (elementwise VPU max of aligned slabs) ----
    bev = h2[0:D, :]
    for z in range(1, Z):
        bev = jnp.maximum(bev, h2[z * D:(z + 1) * D, :])
    bev = bev + b2_ref[...]                                                 # (D, T)

    # TODO(synk): the BEV UNet backbone (builder.build_backbone(bev_unet_backbone))
    # is built from an external config and its architecture is unknown here, so it
    # is treated as identity on the (D, HW) BEV feature.

    # ---- decoder: 1x1 conv (matmul, no bias) + LayerNorm over C*Z + residual ----
    dec = jnp.dot(wd_ref[...], bev.astype(jnp.bfloat16),
                  preferred_element_type=jnp.float32)                       # (CZ, T)
    mu2 = jnp.mean(dec, axis=0, keepdims=True)
    dc = dec - mu2
    var2 = jnp.mean(dc * dc, axis=0, keepdims=True)
    dec = dc * lax.rsqrt(var2 + _LN_EPS) * g2_ref[...] + b2d_ref[...]

    out_ref[...] = dec + x_f32           # lane-dense (CZ, T) store, residual reused


def _pick_block_hw(hw, batch, max_block=1024):
    """HW tile: multiple of 128 dividing HW, <= max_block (vreg/spill pressure),
    while keeping >= 2 parallel grid steps so both v7x TensorCores get work."""
    if hw % 128 != 0:
        return hw  # single full-width block (block == array dim is always legal)
    divisors = [d for d in range(128, min(hw, max_block) + 1, 128) if hw % d == 0]
    if not divisors:
        return hw
    block = max(divisors)
    while batch * (hw // block) < 2:
        smaller = [d for d in divisors if d < block]
        if not smaller:
            break
        block = max(smaller)
    return block


def voxel_bev_unet(x, params, block_hw=None, donate_residual=False):
    """x: (B, C, Z, H, W) float32. Returns (B, C, Z, H, W) float32."""
    B, C, Z, H, W = x.shape
    D = params["w1"].shape[1]
    CZ, ZD, HW = C * Z, Z * D, H * W
    if block_hw is None:
        block_hw = _pick_block_hw(HW, B)
    n_hw = HW // block_hw

    # Single free view of x: rows ordered (c major, z minor), lanes = H*W.
    xv = x.reshape(B, CZ, HW)

    # Fold the per-z pillar-encoder linears into block-diagonal weights (z-blocks).
    eye_z = jnp.eye(Z, dtype=jnp.float32)
    w1 = params["w1"]                                   # (C, D)
    w2 = params["w2"]                                   # (D, D)
    w1big = jnp.einsum("cd,zy->zdcy", w1, eye_z).reshape(ZD, CZ).astype(jnp.bfloat16)
    w2big = jnp.einsum("ed,zy->zdye", w2, eye_z).reshape(ZD, ZD).astype(jnp.bfloat16)
    wdt = params["wd"].T.astype(jnp.bfloat16)           # (CZ, D)
    g1 = jnp.tile(params["ln1_g"].reshape(1, D), (Z, 1)).reshape(ZD, 1)
    b1 = jnp.tile(params["ln1_b"].reshape(1, D), (Z, 1)).reshape(ZD, 1)
    b2 = params["b2"].reshape(D, 1)
    g2 = params["ln2_g"].reshape(CZ, 1)
    b2d = params["ln2_b"].reshape(CZ, 1)

    flops = 2 * B * HW * (ZD * CZ + ZD * ZD + CZ * D)
    transcendentals = B * HW * ZD                                     # one exp per GELU elem
    bytes_accessed = 2 * B * CZ * HW * 4 + 2 * (ZD * CZ + ZD * ZD + CZ * D)

    out_cz = pl.pallas_call(
        voxel_bev_unet_kernel,
        out_shape=jax.ShapeDtypeStruct((B, CZ, HW), jnp.float32),
        grid_spec=pltpu.PrefetchScalarGridSpec(
            num_scalar_prefetch=0,
            grid=(B, n_hw),
            in_specs=[
                pl.BlockSpec((None, CZ, block_hw), lambda b, j: (b, 0, j)),
                pl.BlockSpec((ZD, CZ), lambda b, j: (0, 0)),
                pl.BlockSpec((ZD, 1), lambda b, j: (0, 0)),
                pl.BlockSpec((ZD, 1), lambda b, j: (0, 0)),
                pl.BlockSpec((ZD, ZD), lambda b, j: (0, 0)),
                pl.BlockSpec((D, 1), lambda b, j: (0, 0)),
                pl.BlockSpec((CZ, D), lambda b, j: (0, 0)),
                pl.BlockSpec((CZ, 1), lambda b, j: (0, 0)),
                pl.BlockSpec((CZ, 1), lambda b, j: (0, 0)),
            ],
            out_specs=pl.BlockSpec((None, CZ, block_hw), lambda b, j: (b, 0, j)),
        ),
        compiler_params=pltpu.CompilerParams(
            dimension_semantics=("parallel", "parallel"),
            vmem_limit_bytes=32 * 1024 * 1024),
        cost_estimate=pl.CostEstimate(flops=flops,
                                      transcendentals=transcendentals,
                                      bytes_accessed=bytes_accessed),
        # Only beneficial if the caller donates x; off by default.
        input_output_aliases={0: 0} if donate_residual else {},
    )(xv, w1big, g1, b1, w2big, b2, wdt, g2, b2d)

    # (B, C*Z, H*W) -> (B, C, Z, H, W): pure reshape, no transpose.
    return out_cz.reshape(B, C, Z, H, W)


# ----------------------------- reference & test -----------------------------

def _layernorm_last(x, gamma, beta, eps=_LN_EPS):
    mu = jnp.mean(x, axis=-1, keepdims=True)
    xc = x - mu
    var = jnp.mean(xc * xc, axis=-1, keepdims=True)
    return xc * lax.rsqrt(var + eps) * gamma + beta


def reference(x, p):
    """Pure-JAX reference mirroring the PyTorch forward (UNet = identity).

    Matmul operands are cast to bf16 with f32 accumulation, exactly like the
    kernel, so the self-test isolates kernel machinery from precision choices.
    """
    B, C, Z, H, W = x.shape
    bf = jnp.bfloat16
    v = jnp.transpose(x, (0, 2, 3, 4, 1))                         # (B,Z,H,W,C)
    h = jnp.dot(v.astype(bf), p["w1"].astype(bf), preferred_element_type=jnp.float32)
    h = _layernorm_last(h, p["ln1_g"][0], p["ln1_b"][0])
    h = 0.5 * h * (1.0 + lax.erf(h * _INV_SQRT2))                 # exact GELU
    h = jnp.dot(h.astype(bf), p["w2"].astype(bf), preferred_element_type=jnp.float32)
    h = h + p["b2"][0]
    bev = jnp.max(h, axis=1)                                      # (B,H,W,D)
    dec = jnp.dot(bev.astype(bf), p["wd"].astype(bf), preferred_element_type=jnp.float32)
    dec = _layernorm_last(dec, p["ln2_g"][0], p["ln2_b"][0])
    out = jnp.transpose(dec.reshape(B, H, W, C, Z), (0, 3, 4, 1, 2))
    return out + x


def make_params(key, in_dim, height_grid_num, bev_dim):
    CZ = in_dim * height_grid_num
    ks = jax.random.split(key, 8)
    return {
        # pillar_encoder
        "w1": jax.random.normal(ks[0], (in_dim, bev_dim), jnp.float32) * 0.2,
        "ln1_g": 1.0 + 0.1 * jax.random.normal(ks[1], (1, bev_dim), jnp.float32),
        "ln1_b": 0.1 * jax.random.normal(ks[2], (1, bev_dim), jnp.float32),
        "w2": jax.random.normal(ks[3], (bev_dim, bev_dim), jnp.float32) * 0.2,
        "b2": 0.1 * jax.random.normal(ks[4], (1, bev_dim), jnp.float32),
        # decoder (1x1 conv weight stored as (D, C*Z))
        "wd": jax.random.normal(ks[5], (bev_dim, CZ), jnp.float32) * 0.2,
        "ln2_g": 1.0 + 0.1 * jax.random.normal(ks[6], (1, CZ), jnp.float32),
        "ln2_b": 0.1 * jax.random.normal(ks[7], (1, CZ), jnp.float32),
    }


if __name__ == "__main__":
    key = jax.random.PRNGKey(0)
    B, C, Z, H, W = 2, 4, 4, 16, 16       # in_dim=4, height_grid_num=4
    bev_dim = 32                          # bev_unet_backbone['in_channels']

    kx, kp = jax.random.split(key)
    x = jax.random.normal(kx, (B, C, Z, H, W), jnp.float32)
    params = make_params(kp, C, Z, bev_dim)

    out = jax.jit(voxel_bev_unet)(x, params)
    out = jax.block_until_ready(out)

    ref = reference(x, params)
    assert out.shape == (B, C, Z, H, W)
    err = float(jnp.max(jnp.abs(out - ref)))
    assert err < 5e-3, f"mismatch vs reference: max|diff|={err}"

    print("KERNEL_OK")
</pallas_src>

<mosaic_0001>
module attributes {stable_mosaic.version = 11 : i64} {
  func.func @voxel_bev_unet_kernel(%arg0: i32, %arg1: i32, %arg2: memref<1x16x256xf32, #tpu.memory_space<vmem>>, %arg3: memref<128x16xbf16, #tpu.memory_space<vmem>>, %arg4: memref<128x1xf32, #tpu.memory_space<vmem>>, %arg5: memref<128x1xf32, #tpu.memory_space<vmem>>, %arg6: memref<128x128xbf16, #tpu.memory_space<vmem>>, %arg7: memref<32x1xf32, #tpu.memory_space<vmem>>, %arg8: memref<16x32xbf16, #tpu.memory_space<vmem>>, %arg9: memref<16x1xf32, #tpu.memory_space<vmem>>, %arg10: memref<16x1xf32, #tpu.memory_space<vmem>>, %arg11: memref<1x16x256xf32, #tpu.memory_space<vmem>>) attributes {dimension_semantics = [#tpu.dimension_semantics<parallel>, #tpu.dimension_semantics<parallel>], iteration_bounds = array<i64: 2, 1>, scalar_prefetch = 0 : i64, scratch_operands = 0 : i64, tpu.core_type = #tpu.core_type<tc>, window_params = [{transform_indices = @transform_0, window_bounds = array<i64: 1, 16, 256>}, {pipeline_mode = #tpu.pipeline_mode<synchronous>, transform_indices = @transform_1, window_bounds = array<i64: 128, 16>}, {pipeline_mode = #tpu.pipeline_mode<synchronous>, transform_indices = @transform_2, window_bounds = array<i64: 128, 1>}, {pipeline_mode = #tpu.pipeline_mode<synchronous>, transform_indices = @transform_3, window_bounds = array<i64: 128, 1>}, {pipeline_mode = #tpu.pipeline_mode<synchronous>, transform_indices = @transform_4, window_bounds = array<i64: 128, 128>}, {pipeline_mode = #tpu.pipeline_mode<synchronous>, transform_indices = @transform_5, window_bounds = array<i64: 32, 1>}, {pipeline_mode = #tpu.pipeline_mode<synchronous>, transform_indices = @transform_6, window_bounds = array<i64: 16, 32>}, {pipeline_mode = #tpu.pipeline_mode<synchronous>, transform_indices = @transform_7, window_bounds = array<i64: 16, 1>}, {pipeline_mode = #tpu.pipeline_mode<synchronous>, transform_indices = @transform_8, window_bounds = array<i64: 16, 1>}, {transform_indices = @transform_9, window_bounds = array<i64: 1, 16, 256>}]} {
    %c0 = arith.constant 0 : index
    %c0_0 = arith.constant 0 : index
    %c0_1 = arith.constant 0 : index
    %0 = vector.load %arg2[%c0, %c0_0, %c0_1] : memref<1x16x256xf32, #tpu.memory_space<vmem>>, vector<1x16x256xf32>
    %1 = vector.shape_cast %0 : vector<1x16x256xf32> to vector<16x256xf32>
    %2 = arith.truncf %1 : vector<16x256xf32> to vector<16x256xbf16>
    %c0_2 = arith.constant 0 : index
    %c0_3 = arith.constant 0 : index
    %3 = vector.load %arg3[%c0_2, %c0_3] : memref<128x16xbf16, #tpu.memory_space<vmem>>, vector<128x16xbf16>
    %cst = arith.constant dense<0.000000e+00> : vector<128x256xf32>
    %4 = tpu.matmul %3, %2, %cst {dimension_numbers = #tpu.dot_dimension_numbers<[1], [0], [0], [1], [0, 0, 1, 1], [], []>} : vector<128x16xbf16>, vector<16x256xbf16>, vector<128x256xf32> -> vector<128x256xf32>
    %5 = vector.extract_strided_slice %4 {offsets = [0, 0], sizes = [32, 256], strides = [1, 1]} : vector<128x256xf32> to vector<32x256xf32>
    %cst_4 = arith.constant dense<0.000000e+00> : vector<256xf32>
    %6 = vector.multi_reduction <add>, %5, %cst_4 [0] : vector<32x256xf32> to vector<256xf32>
    %7 = vector.shape_cast %6 : vector<256xf32> to vector<1x256xf32>
    %cst_5 = arith.constant 3.200000e+01 : f32
    %8 = vector.broadcast %cst_5 : f32 to vector<1x256xf32>
    %9 = arith.divf %7, %8 : vector<1x256xf32>
    %10 = vector.broadcast %9 : vector<1x256xf32> to vector<32x256xf32>
    %11 = arith.subf %5, %10 : vector<32x256xf32>
    %12 = arith.mulf %11, %11 : vector<32x256xf32>
    %cst_6 = arith.constant dense<0.000000e+00> : vector<256xf32>
    %13 = vector.multi_reduction <add>, %12, %cst_6 [0] : vector<32x256xf32> to vector<256xf32>
    %14 = vector.shape_cast %13 : vector<256xf32> to vector<1x256xf32>
    %cst_7 = arith.constant 3.200000e+01 : f32
    %15 = vector.broadcast %cst_7 : f32 to vector<1x256xf32>
    %16 = arith.divf %14, %15 : vector<1x256xf32>
    %cst_8 = arith.constant 9.99999997E-7 : f32
    %17 = vector.broadcast %cst_8 : f32 to vector<1x256xf32>
    %18 = arith.addf %16, %17 : vector<1x256xf32>
    %19 = math.rsqrt %18 : vector<1x256xf32>
    %20 = vector.broadcast %19 : vector<1x256xf32> to vector<32x256xf32>
    %21 = arith.mulf %11, %20 : vector<32x256xf32>
    %22 = vector.extract_strided_slice %4 {offsets = [32, 0], sizes = [32, 256], strides = [1, 1]} : vector<128x256xf32> to vector<32x256xf32>
    %cst_9 = arith.constant dense<0.000000e+00> : vector<256xf32>
    %23 = vector.multi_reduction <add>, %22, %cst_9 [0] : vector<32x256xf32> to vector<256xf32>
    %24 = vector.shape_cast %23 : vector<256xf32> to vector<1x256xf32>
    %cst_10 = arith.constant 3.200000e+01 : f32
    %25 = vector.broadcast %cst_10 : f32 to vector<1x256xf32>
    %26 = arith.divf %24, %25 : vector<1x256xf32>
    %27 = vector.broadcast %26 : vector<1x256xf32> to vector<32x256xf32>
    %28 = arith.subf %22, %27 : vector<32x256xf32>
    %29 = arith.mulf %28, %28 : vector<32x256xf32>
    %cst_11 = arith.constant dense<0.000000e+00> : vector<256xf32>
    %30 = vector.multi_reduction <add>, %29, %cst_11 [0] : vector<32x256xf32> to vector<256xf32>
    %31 = vector.shape_cast %30 : vector<256xf32> to vector<1x256xf32>
    %cst_12 = arith.constant 3.200000e+01 : f32
    %32 = vector.broadcast %cst_12 : f32 to vector<1x256xf32>
    %33 = arith.divf %31, %32 : vector<1x256xf32>
    %cst_13 = arith.constant 9.99999997E-7 : f32
    %34 = vector.broadcast %cst_13 : f32 to vector<1x256xf32>
    %35 = arith.addf %33, %34 : vector<1x256xf32>
    %36 = math.rsqrt %35 : vector<1x256xf32>
    %37 = vector.broadcast %36 : vector<1x256xf32> to vector<32x256xf32>
    %38 = arith.mulf %28, %37 : vector<32x256xf32>
    %39 = vector.extract_strided_slice %4 {offsets = [64, 0], sizes = [32, 256], strides = [1, 1]} : vector<128x256xf32> to vector<32x256xf32>
    %cst_14 = arith.constant dense<0.000000e+00> : vector<256xf32>
    %40 = vector.multi_reduction <add>, %39, %cst_14 [0] : vector<32x256xf32> to vector<256xf32>
    %41 = vector.shape_cast %40 : vector<256xf32> to vector<1x256xf32>
    %cst_15 = arith.constant 3.200000e+01 : f32
    %42 = vector.broadcast %cst_15 : f32 to vector<1x256xf32>
    %43 = arith.divf %41, %42 : vector<1x256xf32>
    %44 = vector.broadcast %43 : vector<1x256xf32> to vector<32x256xf32>
    %45 = arith.subf %39, %44 : vector<32x256xf32>
    %46 = arith.mulf %45, %45 : vector<32x256xf32>
    %cst_16 = arith.constant dense<0.000000e+00> : vector<256xf32>
    %47 = vector.multi_reduction <add>, %46, %cst_16 [0] : vector<32x256xf32> to vector<256xf32>
    %48 = vector.shape_cast %47 : vector<256xf32> to vector<1x256xf32>
    %cst_17 = arith.constant 3.200000e+01 : f32
    %49 = vector.broadcast %cst_17 : f32 to vector<1x256xf32>
    %50 = arith.divf %48, %49 : vector<1x256xf32>
    %cst_18 = arith.constant 9.99999997E-7 : f32
    %51 = vector.broadcast %cst_18 : f32 to vector<1x256xf32>
    %52 = arith.addf %50, %51 : vector<1x256xf32>
    %53 = math.rsqrt %52 : vector<1x256xf32>
    %54 = vector.broadcast %53 : vector<1x256xf32> to vector<32x256xf32>
    %55 = arith.mulf %45, %54 : vector<32x256xf32>
    %56 = vector.extract_strided_slice %4 {offsets = [96, 0], sizes = [32, 256], strides = [1, 1]} : vector<128x256xf32> to vector<32x256xf32>
    %cst_19 = arith.constant dense<0.000000e+00> : vector<256xf32>
    %57 = vector.multi_reduction <add>, %56, %cst_19 [0] : vector<32x256xf32> to vector<256xf32>
    %58 = vector.shape_cast %57 : vector<256xf32> to vector<1x256xf32>
    %cst_20 = arith.constant 3.200000e+01 : f32
    %59 = vector.broadcast %cst_20 : f32 to vector<1x256xf32>
    %60 = arith.divf %58, %59 : vector<1x256xf32>
    %61 = vector.broadcast %60 : vector<1x256xf32> to vector<32x256xf32>
    %62 = arith.subf %56, %61 : vector<32x256xf32>
    %63 = arith.mulf %62, %62 : vector<32x256xf32>
    %cst_21 = arith.constant dense<0.000000e+00> : vector<256xf32>
    %64 = vector.multi_reduction <add>, %63, %cst_21 [0] : vector<32x256xf32> to vector<256xf32>
    %65 = vector.shape_cast %64 : vector<256xf32> to vector<1x256xf32>
    %cst_22 = arith.constant 3.200000e+01 : f32
    %66 = vector.broadcast %cst_22 : f32 to vector<1x256xf32>
    %67 = arith.divf %65, %66 : vector<1x256xf32>
    %cst_23 = arith.constant 9.99999997E-7 : f32
    %68 = vector.broadcast %cst_23 : f32 to vector<1x256xf32>
    %69 = arith.addf %67, %68 : vector<1x256xf32>
    %70 = math.rsqrt %69 : vector<1x256xf32>
    %71 = vector.broadcast %70 : vector<1x256xf32> to vector<32x256xf32>
    %72 = arith.mulf %62, %71 : vector<32x256xf32>
    %73 = tpu.concatenate %21, %38, %55, %72 in 0 : vector<32x256xf32>, vector<32x256xf32>, vector<32x256xf32>, vector<32x256xf32> -> vector<128x256xf32>
    %c0_24 = arith.constant 0 : index
    %c0_25 = arith.constant 0 : index
    %74 = vector.load %arg4[%c0_24, %c0_25] : memref<128x1xf32, #tpu.memory_space<vmem>>, vector<128x1xf32>
    %75 = vector.broadcast %74 : vector<128x1xf32> to vector<128x256xf32>
    %76 = arith.mulf %73, %75 : vector<128x256xf32>
    %c0_26 = arith.constant 0 : index
    %c0_27 = arith.constant 0 : index
    %77 = vector.load %arg5[%c0_26, %c0_27] : memref<128x1xf32, #tpu.memory_space<vmem>>, vector<128x1xf32>
    %78 = vector.broadcast %77 : vector<128x1xf32> to vector<128x256xf32>
    %79 = arith.addf %76, %78 : vector<128x256xf32>
    %cst_28 = arith.constant 5.000000e-01 : f32
    %80 = vector.broadcast %cst_28 : f32 to vector<128x256xf32>
    %81 = arith.mulf %80, %79 : vector<128x256xf32>
    %cst_29 = arith.constant 0.707106769 : f32
    %82 = vector.broadcast %cst_29 : f32 to vector<128x256xf32>
    %83 = arith.mulf %79, %82 : vector<128x256xf32>
    %84 = math.absf %83 : vector<128x256xf32>
    %cst_30 = arith.constant 0.327591091 : f32
    %85 = vector.broadcast %cst_30 : f32 to vector<128x256xf32>
    %86 = arith.mulf %85, %84 : vector<128x256xf32>
    %cst_31 = arith.constant 1.000000e+00 : f32
    %87 = vector.broadcast %cst_31 : f32 to vector<128x256xf32>
    %88 = arith.addf %87, %86 : vector<128x256xf32>
    %cst_32 = arith.constant 1.000000e+00 : f32
    %89 = vector.broadcast %cst_32 : f32 to vector<128x256xf32>
    %90 = arith.divf %89, %88 : vector<128x256xf32>
    %cst_33 = arith.constant 1.06140542 : f32
    %91 = vector.broadcast %cst_33 : f32 to vector<128x256xf32>
    %92 = arith.mulf %91, %90 : vector<128x256xf32>
    %cst_34 = arith.constant -1.45315206 : f32
    %93 = vector.broadcast %cst_34 : f32 to vector<128x256xf32>
    %94 = arith.addf %92, %93 : vector<128x256xf32>
    %95 = arith.mulf %94, %90 : vector<128x256xf32>
    %cst_35 = arith.constant 1.42141378 : f32
    %96 = vector.broadcast %cst_35 : f32 to vector<128x256xf32>
    %97 = arith.addf %95, %96 : vector<128x256xf32>
    %98 = arith.mulf %97, %90 : vector<128x256xf32>
    %cst_36 = arith.constant -0.284496725 : f32
    %99 = vector.broadcast %cst_36 : f32 to vector<128x256xf32>
    %100 = arith.addf %98, %99 : vector<128x256xf32>
    %101 = arith.mulf %100, %90 : vector<128x256xf32>
    %cst_37 = arith.constant 0.254829586 : f32
    %102 = vector.broadcast %cst_37 : f32 to vector<128x256xf32>
    %103 = arith.addf %101, %102 : vector<128x256xf32>
    %104 = arith.mulf %103, %90 : vector<128x256xf32>
    %cst_38 = arith.constant 0.000000e+00 : f32
    %105 = vector.broadcast %cst_38 : f32 to vector<128x256xf32>
    %106 = arith.subf %105, %84 : vector<128x256xf32>
    %107 = arith.mulf %106, %84 : vector<128x256xf32>
    %108 = math.exp %107 : vector<128x256xf32>
    %109 = arith.mulf %104, %108 : vector<128x256xf32>
    %cst_39 = arith.constant 1.000000e+00 : f32
    %110 = vector.broadcast %cst_39 : f32 to vector<128x256xf32>
    %111 = arith.subf %110, %109 : vector<128x256xf32>
    %cst_40 = arith.constant 0.000000e+00 : f32
    %112 = vector.broadcast %cst_40 : f32 to vector<128x256xf32>
    %113 = arith.cmpf olt, %83, %112 : vector<128x256xf32>
    %cst_41 = arith.constant 0.000000e+00 : f32
    %114 = vector.broadcast %cst_41 : f32 to vector<128x256xf32>
    %115 = arith.subf %114, %111 : vector<128x256xf32>
    %116 = arith.select %113, %115, %111 : vector<128x256xi1>, vector<128x256xf32>
    %cst_42 = arith.constant 1.000000e+00 : f32
    %117 = vector.broadcast %cst_42 : f32 to vector<128x256xf32>
    %118 = arith.addf %117, %116 : vector<128x256xf32>
    %119 = arith.mulf %81, %118 : vector<128x256xf32>
    %c0_43 = arith.constant 0 : index
    %c0_44 = arith.constant 0 : index
    %120 = vector.load %arg6[%c0_43, %c0_44] : memref<128x128xbf16, #tpu.memory_space<vmem>>, vector<128x128xbf16>
    %121 = arith.truncf %119 : vector<128x256xf32> to vector<128x256xbf16>
    %cst_45 = arith.constant dense<0.000000e+00> : vector<128x256xf32>
    %122 = tpu.matmul %120, %121, %cst_45 {dimension_numbers = #tpu.dot_dimension_numbers<[1], [0], [0], [1], [0, 0, 1, 1], [], []>} : vector<128x128xbf16>, vector<128x256xbf16>, vector<128x256xf32> -> vector<128x256xf32>
    %123 = vector.extract_strided_slice %122 {offsets = [0, 0], sizes = [32, 256], strides = [1, 1]} : vector<128x256xf32> to vector<32x256xf32>
    %124 = vector.extract_strided_slice %122 {offsets = [32, 0], sizes = [32, 256], strides = [1, 1]} : vector<128x256xf32> to vector<32x256xf32>
    %125 = arith.maximumf %123, %124 : vector<32x256xf32>
    %126 = vector.extract_strided_slice %122 {offsets = [64, 0], sizes = [32, 256], strides = [1, 1]} : vector<128x256xf32> to vector<32x256xf32>
    %127 = arith.maximumf %125, %126 : vector<32x256xf32>
    %128 = vector.extract_strided_slice %122 {offsets = [96, 0], sizes = [32, 256], strides = [1, 1]} : vector<128x256xf32> to vector<32x256xf32>
    %129 = arith.maximumf %127, %128 : vector<32x256xf32>
    %c0_46 = arith.constant 0 : index
    %c0_47 = arith.constant 0 : index
    %130 = vector.load %arg7[%c0_46, %c0_47] : memref<32x1xf32, #tpu.memory_space<vmem>>, vector<32x1xf32>
    %131 = vector.broadcast %130 : vector<32x1xf32> to vector<32x256xf32>
    %132 = arith.addf %129, %131 : vector<32x256xf32>
    %c0_48 = arith.constant 0 : index
    %c0_49 = arith.constant 0 : index
    %133 = vector.load %arg8[%c0_48, %c0_49] : memref<16x32xbf16, #tpu.memory_space<vmem>>, vector<16x32xbf16>
    %134 = arith.truncf %132 : vector<32x256xf32> to vector<32x256xbf16>
    %cst_50 = arith.constant dense<0.000000e+00> : vector<16x256xf32>
    %135 = tpu.matmul %133, %134, %cst_50 {dimension_numbers = #tpu.dot_dimension_numbers<[1], [0], [0], [1], [0, 0, 1, 1], [], []>} : vector<16x32xbf16>, vector<32x256xbf16>, vector<16x256xf32> -> vector<16x256xf32>
    %cst_51 = arith.constant dense<0.000000e+00> : vector<256xf32>
    %136 = vector.multi_reduction <add>, %135, %cst_51 [0] : vector<16x256xf32> to vector<256xf32>
    %137 = vector.shape_cast %136 : vector<256xf32> to vector<1x256xf32>
    %cst_52 = arith.constant 1.600000e+01 : f32
    %138 = vector.broadcast %cst_52 : f32 to vector<1x256xf32>
    %139 = arith.divf %137, %138 : vector<1x256xf32>
    %140 = vector.broadcast %139 : vector<1x256xf32> to vector<16x256xf32>
    %141 = arith.subf %135, %140 : vector<16x256xf32>
    %142 = arith.mulf %141, %141 : vector<16x256xf32>
    %cst_53 = arith.constant dense<0.000000e+00> : vector<256xf32>
    %143 = vector.multi_reduction <add>, %142, %cst_53 [0] : vector<16x256xf32> to vector<256xf32>
    %144 = vector.shape_cast %143 : vector<256xf32> to vector<1x256xf32>
    %cst_54 = arith.constant 1.600000e+01 : f32
    %145 = vector.broadcast %cst_54 : f32 to vector<1x256xf32>
    %146 = arith.divf %144, %145 : vector<1x256xf32>
    %cst_55 = arith.constant 9.99999997E-7 : f32
    %147 = vector.broadcast %cst_55 : f32 to vector<1x256xf32>
    %148 = arith.addf %146, %147 : vector<1x256xf32>
    %149 = math.rsqrt %148 : vector<1x256xf32>
    %150 = vector.broadcast %149 : vector<1x256xf32> to vector<16x256xf32>
    %151 = arith.mulf %141, %150 : vector<16x256xf32>
    %c0_56 = arith.constant 0 : index
    %c0_57 = arith.constant 0 : index
    %152 = vector.load %arg9[%c0_56, %c0_57] : memref<16x1xf32, #tpu.memory_space<vmem>>, vector<16x1xf32>
    %153 = vector.broadcast %152 : vector<16x1xf32> to vector<16x256xf32>
    %154 = arith.mulf %151, %153 : vector<16x256xf32>
    %c0_58 = arith.constant 0 : index
    %c0_59 = arith.constant 0 : index
    %155 = vector.load %arg10[%c0_58, %c0_59] : memref<16x1xf32, #tpu.memory_space<vmem>>, vector<16x1xf32>
    %156 = vector.broadcast %155 : vector<16x1xf32> to vector<16x256xf32>
    %157 = arith.addf %154, %156 : vector<16x256xf32>
    %158 = arith.addf %157, %1 : vector<16x256xf32>
    %c0_60 = arith.constant 0 : index
    %c0_61 = arith.constant 0 : index
    %c0_62 = arith.constant 0 : index
    %159 = vector.load %arg11[%c0_60, %c0_61, %c0_62] : memref<1x16x256xf32, #tpu.memory_space<vmem>>, vector<1x16x256xf32>
    %160 = vector.shape_cast %159 : vector<1x16x256xf32> to vector<16x256xf32>
    %161 = vector.shape_cast %158 : vector<16x256xf32> to vector<1x16x256xf32>
    tpu.vector_store %arg11[%c0_60, %c0_61, %c0_62], %161 {strides = array<i32>} : memref<1x16x256xf32, #tpu.memory_space<vmem>>, vector<1x16x256xf32>,
    return
  }
  func.func @transform_0(%arg0: i32, %arg1: i32) -> (i32, i32, i32) {
    %c0_i32 = arith.constant 0 : i32
    %c0_i32_0 = arith.constant 0 : i32
    return %arg0, %c0_i32, %arg1 : i32, i32, i32
  }
  func.func @transform_1(%arg0: i32, %arg1: i32) -> (i32, i32) {
    %c0_i32 = arith.constant 0 : i32
    %c0_i32_0 = arith.constant 0 : i32
    %c0_i32_1 = arith.constant 0 : i32
    return %c0_i32, %c0_i32_0 : i32, i32
  }
  func.func @transform_2(%arg0: i32, %arg1: i32) -> (i32, i32) {
    %c0_i32 = arith.constant 0 : i32
    %c0_i32_0 = arith.constant 0 : i32
    %c0_i32_1 = arith.constant 0 : i32
    return %c0_i32, %c0_i32_0 : i32, i32
  }
  func.func @transform_3(%arg0: i32, %arg1: i32) -> (i32, i32) {
    %c0_i32 = arith.constant 0 : i32
    %c0_i32_0 = arith.constant 0 : i32
    %c0_i32_1 = arith.constant 0 : i32
    return %c0_i32, %c0_i32_0 : i32, i32
  }
  func.func @transform_4(%arg0: i32, %arg1: i32) -> (i32, i32) {
    %c0_i32 = arith.constant 0 : i32
    %c0_i32_0 = arith.constant 0 : i32
    %c0_i32_1 = arith.constant 0 : i32
    return %c0_i32, %c0_i32_0 : i32, i32
  }
  func.func @transform_5(%arg0: i32, %arg1: i32) -> (i32, i32) {
    %c0_i32 = arith.constant 0 : i32
    %c0_i32_0 = arith.constant 0 : i32
    %c0_i32_1 = arith.constant 0 : i32
    return %c0_i32, %c0_i32_0 : i32, i32
  }
  func.func @transform_6(%arg0: i32, %arg1: i32) -> (i32, i32) {
    %c0_i32 = arith.constant 0 : i32
    %c0_i32_0 = arith.constant 0 : i32
    %c0_i32_1 = arith.constant 0 : i32
    return %c0_i32, %c0_i32_0 : i32, i32
  }
  func.func @transform_7(%arg0: i32, %arg1: i32) -> (i32, i32) {
    %c0_i32 = arith.constant 0 : i32
    %c0_i32_0 = arith.constant 0 : i32
    %c0_i32_1 = arith.constant 0 : i32
    return %c0_i32, %c0_i32_0 : i32, i32
  }
  func.func @transform_8(%arg0: i32, %arg1: i32) -> (i32, i32) {
    %c0_i32 = arith.constant 0 : i32
    %c0_i32_0 = arith.constant 0 : i32
    %c0_i32_1 = arith.constant 0 : i32
    return %c0_i32, %c0_i32_0 : i32, i32
  }
  func.func @transform_9(%arg0: i32, %arg1: i32) -> (i32, i32, i32) {
    %c0_i32 = arith.constant 0 : i32
    %c0_i32_0 = arith.constant 0 : i32
    return %arg0, %c0_i32, %arg1 : i32, i32, i32
  }
}

</mosaic_0001>

<bundles_post_ra>
// kernel: tile.13
= control target key start
LH: loop header
LB: loop body
LE: loop exit
PB: predicated region body
PF: predicated region fallthrough
CT: control target
= control target key end

     0   :  { %s22_s0 = inlined_call_operand.vmem [shape: f32[32], index: 0, kind: input, shape index: {}]   ;;  %s23_s1 = inlined_call_operand.vmem [shape: f32[4,1,1,32], index: 1, kind: output, shape index: {}]  }
   0x1   :  { %v4_v0 = vld [vmem:[%s22_s0] ss:$0 sm:$0xff] }
   0x2   :  { %5 = vst [vmem:[%s23_s1] sm:$0xf] %v4_v0 }

// kernel: tile.0
= control target key start
LH: loop header
LB: loop body
LE: loop exit
PB: predicated region body
PF: predicated region fallthrough
CT: control target
= control target key end

     0   :  { %s546_s8 = smov 125   ;;  %s547_s9 = smov 126   ;;  %vm7_vm0 = vcmask 7168   ;;  %s1101_s0 = inlined_call_operand.vmem [shape: f32[4,1,1,32], index: 0, kind: input, shape index: {}]   ;;  %s1102_s1 = inlined_call_operand.vmem [shape: f32[128,1], index: 1, kind: output, shape index: {}]  }
   0x1   :  { %v4_v0 = vld [vmem:[%s1101_s0] sm:$0xf]  ;;  %s545_s0 = smov 127   ;;  %s548_s10 = smov 124  }
   0x2   :  { %5 = vst [vmem:[#allocation0] sm:$0xf] %v4_v0  ;;  %s549_s11 = smov 123   ;;  %s550_s12 = smov 122  }
   0x3   :  { %s551_s13 = smov 121   ;;  %s552_s14 = smov 120  }
   0x4   :  { %s553_s15 = smov 119   ;;  %s554_s16 = smov 118  }
   0x5   :  { %s555_s17 = smov 117   ;;  %s556_s18 = smov 116  }
   0x6   :  { %s557_s19 = smov 115   ;;  %s558_s20 = smov 114  }
   0x7   :  { %s559_s21 = smov 113   ;;  %s560_s22 = smov 112  }
   0x8   :  { %s561_s23 = smov 111   ;;  %s562_s24 = smov 110  }
   0x9   :  { %v15_v1 = vld [vmem:[#allocation0] sm:$0xf]   ;;  %s563_s25 = smov 109   ;;  %s564_s26 = smov 108  }
   0xa   :  { %v39_v2 = vld [vmem:[#allocation0] sm:$0xf]   ;;  %16 = vrot.lane.b32.xlu0 %v15_v1, %s545_s0  ;;  %s565_s27 = smov 107   ;;  %s566_s28 = smov 106  }
   0xb   :  { %40 = vrot.lane.b32.xlu1 %v39_v2, %s546_s8  ;;  %v27_v3 = vld [vmem:[#allocation0] sm:$0xf]   ;;  %s567_s29 = smov 105   ;;  %s568_s30 = smov 104  }
   0xc   :  { %v51_v4 = vld [vmem:[#allocation0] sm:$0xf]  }
   0xd   :  { %v63_v5 = vld [vmem:[#allocation0] sm:$0xf]  }
   0xe   :  { %28 = vrot.lane.b32.xlu0 %v27_v3, %s547_s9  ;;  %v75_v6 = vld [vmem:[#allocation0] sm:$0xf]   ;;  %s569_s9 = smov 103  }
   0xf   :  { %52 = vrot.lane.b32.xlu1 %v51_v4, %s548_s10  ;;  %v87_v7 = vld [vmem:[#allocation0] sm:$0xf]   ;;  %s570_s10 = smov 102  }
  0x10   :  { %v99_v8 = vld [vmem:[#allocation0] sm:$0xf]  }
  0x11   :  { %v111_v9 = vld [vmem:[#allocation0] sm:$0xf]  }
  0x12   :  { %64 = vrot.lane.b32.xlu0 %v63_v5, %s549_s11  ;;  %v123_v10 = vld [vmem:[#allocation0] sm:$0xf]   ;;  %s571_s11 = smov 101  }
  0x13   :  { %76 = vrot.lane.b32.xlu1 %v75_v6, %s550_s12  ;;  %v135_v11 = vld [vmem:[#allocation0] sm:$0xf]   ;;  %s572_s12 = smov 100  }
  0x14   :  { %v147_v12 = vld [vmem:[#allocation0] sm:$0xf]  }
  0x15   :  { %v159_v13 = vld [vmem:[#allocation0] sm:$0xf]  }
  0x16   :  { %88 = vrot.lane.b32.xlu0 %v87_v7, %s551_s13  ;;  %v171_v14 = vld [vmem:[#allocation0] sm:$0xf]   ;;  %s573_s13 = smov 99  }
  0x17   :  { %100 = vrot.lane.b32.xlu1 %v99_v8, %s552_s14  ;;  %v183_v15 = vld [vmem:[#allocation0] sm:$0xf]   ;;  %s574_s14 = smov 98  }
  0x18   :  { %v195_v16 = vld [vmem:[#allocation0] sm:$0xf]  }
  0x19   :  { %v207_v17 = vld [vmem:[#allocation0] sm:$0xf]  }
  0x1a   :  { %112 = vrot.lane.b32.xlu0 %v111_v9, %s553_s15  ;;  %v219_v18 = vld [vmem:[#allocation0] sm:$0xf]   ;;  %s575_s15 = smov 97  }
  0x1b   :  { %124 = vrot.lane.b32.xlu1 %v123_v10, %s554_s16  ;;  %v231_v19 = vld [vmem:[#allocation0] sm:$0xf]  }
  0x1c   :  { %v243_v20 = vld [vmem:[#allocation0] sm:$0xf]  }
  0x1d   :  { %v255_v21 = vld [vmem:[#allocation0] sm:$0xf]  }
  0x1e   :  { %136 = vrot.lane.b32.xlu0 %v135_v11, %s555_s17  ;;  %v267_v22 = vld [vmem:[#allocation0] sm:$0xf]  }
  0x1f   :  { %148 = vrot.lane.b32.xlu1 %v147_v12, %s556_s18  ;;  %v279_v23 = vld [vmem:[#allocation0] sm:$0xf]  }
  0x20   :  { %v291_v24 = vld [vmem:[#allocation0] sm:$0xf]  }
  0x21   :  { %v303_v25 = vld [vmem:[#allocation0] sm:$0xf]  }
  0x22   :  { %160 = vrot.lane.b32.xlu0 %v159_v13, %s557_s19  ;;  %v315_v26 = vld [vmem:[#allocation0] sm:$0xf]  }
  0x23   :  { %172 = vrot.lane.b32.xlu1 %v171_v14, %s558_s20  ;;  %v6_v27 = vld [vmem:[#allocation0] sm:$0xf]  }
  0x24   :  { %8 = vst.msk [vmem:[%s1102_s1] sm:$0x1] %vm7_vm0, %v6_v27   ;;  %387 = vst.msk [vmem:[%s1102_s1 + $0x1f] sm:$0x2] %vm7_vm0, %v6_v27   ;;  %v327_v28 = vld [vmem:[#allocation0] sm:$0xf]  }
  0x25   :  { %388 = vst.msk [vmem:[%s1102_s1 + $0x3e] sm:$0x4] %vm7_vm0, %v6_v27   ;;  %389 = vst.msk [vmem:[%s1102_s1 + $0x5d] sm:$0x8] %vm7_vm0, %v6_v27   ;;  %v339_v29 = vld [vmem:[#allocation0] sm:$0xf]  }
  0x26   :  { %184 = vrot.lane.b32.xlu0 %v183_v15, %s559_s21  ;;  %v351_v30 = vld [vmem:[#allocation0] sm:$0xf]  }
  0x27   :  { %196 = vrot.lane.b32.xlu1 %v195_v16, %s560_s22  ;;  %v363_v31 = vld [vmem:[#allocation0] sm:$0xf]  }
  0x28   :  { %v375_v32 = vld [vmem:[#allocation0] sm:$0xf]  }
  0x2a   :  { %208 = vrot.lane.b32.xlu0 %v207_v17, %s561_s23 }
  0x2b   :  { %220 = vrot.lane.b32.xlu1 %v219_v18, %s562_s24 }
  0x2e   :  { %232 = vrot.lane.b32.xlu0 %v231_v19, %s563_s25 }
  0x2f   :  { %244 = vrot.lane.b32.xlu1 %v243_v20, %s564_s26 }
  0x32   :  { %256 = vrot.lane.b32.xlu0 %v255_v21, %s565_s27 }
  0x33   :  { %268 = vrot.lane.b32.xlu1 %v267_v22, %s566_s28 }
  0x36   :  { %280 = vrot.lane.b32.xlu0 %v279_v23, %s567_s29 }
  0x37   :  { %292 = vrot.lane.b32.xlu1 %v291_v24, %s568_s30 }
  0x3a   :  { %304 = vrot.lane.b32.xlu0 %v303_v25, %s569_s9 }
  0x3b   :  { %316 = vrot.lane.b32.xlu1 %v315_v26, %s570_s10 }
  0x3e   :  { %328 = vrot.lane.b32.xlu0 %v327_v28, %s571_s11 }
  0x3f   :  { %340 = vrot.lane.b32.xlu1 %v339_v29, %s572_s12 }
  0x42   :  { %352 = vrot.lane.b32.xlu0 %v351_v30, %s573_s13 }
  0x43   :  { %364 = vrot.lane.b32.xlu1 %v363_v31, %s574_s14 }
  0x46   :  { %376 = vrot.lane.b32.xlu0 %v375_v32, %s575_s15 }
  0x7c   :  { %v17_v33 = vpop.permute.xlu0 %16  }
  0x7d   :  { %v41_v34 = vpop.permute.xlu1 %40   ;;  %390 = vst.msk [vmem:[%s1102_s1 + $0x1] sm:$0x1] %vm7_vm0, %v17_v33   ;;  %391 = vst.msk [vmem:[%s1102_s1 + $0x20] sm:$0x2] %vm7_vm0, %v17_v33  }
  0x7e   :  { %392 = vst.msk [vmem:[%s1102_s1 + $0x3f] sm:$0x4] %vm7_vm0, %v17_v33   ;;  %393 = vst.msk [vmem:[%s1102_s1 + $0x5e] sm:$0x8] %vm7_vm0, %v17_v33  }
  0x7f   :  { %398 = vst.msk [vmem:[%s1102_s1 + $0x3] sm:$0x1] %vm7_vm0, %v41_v34   ;;  %399 = vst.msk [vmem:[%s1102_s1 + $0x22] sm:$0x2] %vm7_vm0, %v41_v34  }
  0x80   :  { %400 = vst.msk [vmem:[%s1102_s1 + $0x41] sm:$0x4] %vm7_vm0, %v41_v34   ;;  %401 = vst.msk [vmem:[%s1102_s1 + $0x60] sm:$0x8] %vm7_vm0, %v41_v34   ;;  %v29_v35 = vpop.permute.xlu0 %28  }
  0x81   :  { %v53_v36 = vpop.permute.xlu1 %52   ;;  %394 = vst.msk [vmem:[%s1102_s1 + $0x2] sm:$0x1] %vm7_vm0, %v29_v35   ;;  %395 = vst.msk [vmem:[%s1102_s1 + $0x21] sm:$0x2] %vm7_vm0, %v29_v35  }
  0x82   :  { %396 = vst.msk [vmem:[%s1102_s1 + $0x40] sm:$0x4] %vm7_vm0, %v29_v35   ;;  %397 = vst.msk [vmem:[%s1102_s1 + $0x5f] sm:$0x8] %vm7_vm0, %v29_v35  }
  0x83   :  { %402 = vst.msk [vmem:[%s1102_s1 + $0x4] sm:$0x1] %vm7_vm0, %v53_v36   ;;  %403 = vst.msk [vmem:[%s1102_s1 + $0x23] sm:$0x2] %vm7_vm0, %v53_v36  }
  0x84   :  { %404 = vst.msk [vmem:[%s1102_s1 + $0x42] sm:$0x4] %vm7_vm0, %v53_v36   ;;  %405 = vst.msk [vmem:[%s1102_s1 + $0x61] sm:$0x8] %vm7_vm0, %v53_v36   ;;  %v65_v37 = vpop.permute.xlu0 %64  }
  0x85   :  { %v77_v38 = vpop.permute.xlu1 %76   ;;  %406 = vst.msk [vmem:[%s1102_s1 + $0x5] sm:$0x1] %vm7_vm0, %v65_v37   ;;  %407 = vst.msk [vmem:[%s1102_s1 + $0x24] sm:$0x2] %vm7_vm0, %v65_v37  }
  0x86   :  { %408 = vst.msk [vmem:[%s1102_s1 + $0x43] sm:$0x4] %vm7_vm0, %v65_v37   ;;  %409 = vst.msk [vmem:[%s1102_s1 + $0x62] sm:$0x8] %vm7_vm0, %v65_v37  }
  0x87   :  { %410 = vst.msk [vmem:[%s1102_s1 + $0x6] sm:$0x1] %vm7_vm0, %v77_v38   ;;  %411 = vst.msk [vmem:[%s1102_s1 + $0x25] sm:$0x2] %vm7_vm0, %v77_v38  }
  0x88   :  { %412 = vst.msk [vmem:[%s1102_s1 + $0x44] sm:$0x4] %vm7_vm0, %v77_v38   ;;  %413 = vst.msk [vmem:[%s1102_s1 + $0x63] sm:$0x8] %vm7_vm0, %v77_v38   ;;  %v89_v39 = vpop.permute.xlu0 %88  }
  0x89   :  { %v101_v40 = vpop.permute.xlu1 %100   ;;  %414 = vst.msk [vmem:[%s1102_s1 + $0x7] sm:$0x1] %vm7_vm0, %v89_v39   ;;  %415 = vst.msk [vmem:[%s1102_s1 + $0x26] sm:$0x2] %vm7_vm0, %v89_v39  }
  0x8a   :  { %416 = vst.msk [vmem:[%s1102_s1 + $0x45] sm:$0x4] %vm7_vm0, %v89_v39   ;;  %417 = vst.msk [vmem:[%s1102_s1 + $0x64] sm:$0x8] %vm7_vm0, %v89_v39  }
  0x8b   :  { %418 = vst.msk [vmem:[%s1102_s1 + $0x8] sm:$0x1] %vm7_vm0, %v101_v40   ;;  %419 = vst.msk [vmem:[%s1102_s1 + $0x27] sm:$0x2] %vm7_vm0, %v101_v40  }
  0x8c   :  { %420 = vst.msk [vmem:[%s1102_s1 + $0x46] sm:$0x4] %vm7_vm0, %v101_v40   ;;  %421 = vst.msk [vmem:[%s1102_s1 + $0x65] sm:$0x8] %vm7_vm0, %v101_v40   ;;  %v113_v41 = vpop.permute.xlu0 %112  }
  0x8d   :  { %v125_v42 = vpop.permute.xlu1 %124   ;;  %422 = vst.msk [vmem:[%s1102_s1 + $0x9] sm:$0x1] %vm7_vm0, %v113_v41   ;;  %423 = vst.msk [vmem:[%s1102_s1 + $0x28] sm:$0x2] %vm7_vm0, %v113_v41  }
  0x8e   :  { %424 = vst.msk [vmem:[%s1102_s1 + $0x47] sm:$0x4] %vm7_vm0, %v113_v41   ;;  %425 = vst.msk [vmem:[%s1102_s1 + $0x66] sm:$0x8] %vm7_vm0, %v113_v41  }
  0x8f   :  { %426 = vst.msk [vmem:[%s1102_s1 + $0xa] sm:$0x1] %vm7_vm0, %v125_v42   ;;  %427 = vst.msk [vmem:[%s1102_s1 + $0x29] sm:$0x2] %vm7_vm0, %v125_v42  }
  0x90   :  { %428 = vst.msk [vmem:[%s1102_s1 + $0x48] sm:$0x4] %vm7_vm0, %v125_v42   ;;  %429 = vst.msk [vmem:[%s1102_s1 + $0x67] sm:$0x8] %vm7_vm0, %v125_v42   ;;  %v137_v43 = vpop.permute.xlu0 %136  }
  0x91   :  { %v149_v44 = vpop.permute.xlu1 %148   ;;  %430 = vst.msk [vmem:[%s1102_s1 + $0xb] sm:$0x1] %vm7_vm0, %v137_v43   ;;  %431 = vst.msk [vmem:[%s1102_s1 + $0x2a] sm:$0x2] %vm7_vm0, %v137_v43  }
  0x92   :  { %432 = vst.msk [vmem:[%s1102_s1 + $0x49] sm:$0x4] %vm7_vm0, %v137_v43   ;;  %433 = vst.msk [vmem:[%s1102_s1 + $0x68] sm:$0x8] %vm7_vm0, %v137_v43  }
  0x93   :  { %434 = vst.msk [vmem:[%s1102_s1 + $0xc] sm:$0x1] %vm7_vm0, %v149_v44   ;;  %435 = vst.msk [vmem:[%s1102_s1 + $0x2b] sm:$0x2] %vm7_vm0, %v149_v44  }
  0x94   :  { %436 = vst.msk [vmem:[%s1102_s1 + $0x4a] sm:$0x4] %vm7_vm0, %v149_v44   ;;  %437 = vst.msk [vmem:[%s1102_s1 + $0x69] sm:$0x8] %vm7_vm0, %v149_v44   ;;  %v161_v45 = vpop.permute.xlu0 %160  }
  0x95   :  { %v173_v46 = vpop.permute.xlu1 %172   ;;  %438 = vst.msk [vmem:[%s1102_s1 + $0xd] sm:$0x1] %vm7_vm0, %v161_v45   ;;  %439 = vst.msk [vmem:[%s1102_s1 + $0x2c] sm:$0x2] %vm7_vm0, %v161_v45  }
  0x96   :  { %440 = vst.msk [vmem:[%s1102_s1 + $0x4b] sm:$0x4] %vm7_vm0, %v161_v45   ;;  %441 = vst.msk [vmem:[%s1102_s1 + $0x6a] sm:$0x8] %vm7_vm0, %v161_v45  }
  0x97   :  { %442 = vst.msk [vmem:[%s1102_s1 + $0xe] sm:$0x1] %vm7_vm0, %v173_v46   ;;  %443 = vst.msk [vmem:[%s1102_s1 + $0x2d] sm:$0x2] %vm7_vm0, %v173_v46  }
  0x98   :  { %444 = vst.msk [vmem:[%s1102_s1 + $0x4c] sm:$0x4] %vm7_vm0, %v173_v46   ;;  %445 = vst.msk [vmem:[%s1102_s1 + $0x6b] sm:$0x8] %vm7_vm0, %v173_v46   ;;  %v185_v47 = vpop.permute.xlu0 %184  }
  0x99   :  { %v197_v48 = vpop.permute.xlu1 %196   ;;  %446 = vst.msk [vmem:[%s1102_s1 + $0xf] sm:$0x1] %vm7_vm0, %v185_v47   ;;  %447 = vst.msk [vmem:[%s1102_s1 + $0x2e] sm:$0x2] %vm7_vm0, %v185_v47  }
  0x9a   :  { %448 = vst.msk [vmem:[%s1102_s1 + $0x4d] sm:$0x4] %vm7_vm0, %v185_v47   ;;  %449 = vst.msk [vmem:[%s1102_s1 + $0x6c] sm:$0x8] %vm7_vm0, %v185_v47  }
  0x9b   :  { %450 = vst.msk [vmem:[%s1102_s1 + $0x10] sm:$0x1] %vm7_vm0, %v197_v48   ;;  %451 = vst.msk [vmem:[%s1102_s1 + $0x2f] sm:$0x2] %vm7_vm0, %v197_v48  }
  0x9c   :  { %452 = vst.msk [vmem:[%s1102_s1 + $0x4e] sm:$0x4] %vm7_vm0, %v197_v48   ;;  %453 = vst.msk [vmem:[%s1102_s1 + $0x6d] sm:$0x8] %vm7_vm0, %v197_v48   ;;  %v209_v49 = vpop.permute.xlu0 %208  }
  0x9d   :  { %v221_v50 = vpop.permute.xlu1 %220   ;;  %454 = vst.msk [vmem:[%s1102_s1 + $0x11] sm:$0x1] %vm7_vm0, %v209_v49   ;;  %455 = vst.msk [vmem:[%s1102_s1 + $0x30] sm:$0x2] %vm7_vm0, %v209_v49  }
  0x9e   :  { %456 = vst.msk [vmem:[%s1102_s1 + $0x4f] sm:$0x4] %vm7_vm0, %v209_v49   ;;  %457 = vst.msk [vmem:[%s1102_s1 + $0x6e] sm:$0x8] %vm7_vm0, %v209_v49  }
  0x9f   :  { %458 = vst.msk [vmem:[%s1102_s1 + $0x12] sm:$0x1] %vm7_vm0, %v221_v50   ;;  %459 = vst.msk [vmem:[%s1102_s1 + $0x31] sm:$0x2] %vm7_vm0, %v221_v50  }
  0xa0   :  { %460 = vst.msk [vmem:[%s1102_s1 + $0x50] sm:$0x4] %vm7_vm0, %v221_v50   ;;  %461 = vst.msk [vmem:[%s1102_s1 + $0x6f] sm:$0x8] %vm7_vm0, %v221_v50   ;;  %v233_v51 = vpop.permute.xlu0 %232  }
  0xa1   :  { %v245_v52 = vpop.permute.xlu1 %244   ;;  %462 = vst.msk [vmem:[%s1102_s1 + $0x13] sm:$0x1] %vm7_vm0, %v233_v51   ;;  %463 = vst.msk [vmem:[%s1102_s1 + $0x32] sm:$0x2] %vm7_vm0, %v233_v51  }
  0xa2   :  { %464 = vst.msk [vmem:[%s1102_s1 + $0x51] sm:$0x4] %vm7_vm0, %v233_v51   ;;  %465 = vst.msk [vmem:[%s1102_s1 + $0x70] sm:$0x8] %vm7_vm0, %v233_v51  }
  0xa3   :  { %466 = vst.msk [vmem:[%s1102_s1 + $0x14] sm:$0x1] %vm7_vm0, %v245_v52   ;;  %467 = vst.msk [vmem:[%s1102_s1 + $0x33] sm:$0x2] %vm7_vm0, %v245_v52  }
  0xa4   :  { %468 = vst.msk [vmem:[%s1102_s1 + $0x52] sm:$0x4] %vm7_vm0, %v245_v52   ;;  %469 = vst.msk [vmem:[%s1102_s1 + $0x71] sm:$0x8] %vm7_vm0, %v245_v52   ;;  %v257_v53 = vpop.permute.xlu0 %256  }
  0xa5   :  { %v269_v54 = vpop.permute.xlu1 %268   ;;  %470 = vst.msk [vmem:[%s1102_s1 + $0x15] sm:$0x1] %vm7_vm0, %v257_v53   ;;  %471 = vst.msk [vmem:[%s1102_s1 + $0x34] sm:$0x2] %vm7_vm0, %v257_v53  }
  0xa6   :  { %472 = vst.msk [vmem:[%s1102_s1 + $0x53] sm:$0x4] %vm7_vm0, %v257_v53   ;;  %473 = vst.msk [vmem:[%s1102_s1 + $0x72] sm:$0x8] %vm7_vm0, %v257_v53  }
  0xa7   :  { %474 = vst.msk [vmem:[%s1102_s1 + $0x16] sm:$0x1] %vm7_vm0, %v269_v54   ;;  %475 = vst.msk [vmem:[%s1102_s1 + $0x35] sm:$0x2] %vm7_vm0, %v269_v54  }
  0xa8   :  { %476 = vst.msk [vmem:[%s1102_s1 + $0x54] sm:$0x4] %vm7_vm0, %v269_v54   ;;  %477 = vst.msk [vmem:[%s1102_s1 + $0x73] sm:$0x8] %vm7_vm0, %v269_v54   ;;  %v281_v55 = vpop.permute.xlu0 %280  }
  0xa9   :  { %v293_v56 = vpop.permute.xlu1 %292   ;;  %478 = vst.msk [vmem:[%s1102_s1 + $0x17] sm:$0x1] %vm7_vm0, %v281_v55   ;;  %479 = vst.msk [vmem:[%s1102_s1 + $0x36] sm:$0x2] %vm7_vm0, %v281_v55  }
  0xaa   :  { %480 = vst.msk [vmem:[%s1102_s1 + $0x55] sm:$0x4] %vm7_vm0, %v281_v55   ;;  %481 = vst.msk [vmem:[%s1102_s1 + $0x74] sm:$0x8] %vm7_vm0, %v281_v55  }
  0xab   :  { %482 = vst.msk [vmem:[%s1102_s1 + $0x18] sm:$0x1] %vm7_vm0, %v293_v56   ;;  %483 = vst.msk [vmem:[%s1102_s1 + $0x37] sm:$0x2] %vm7_vm0, %v293_v56  }
  0xac   :  { %484 = vst.msk [vmem:[%s1102_s1 + $0x56] sm:$0x4] %vm7_vm0, %v293_v56   ;;  %485 = vst.msk [vmem:[%s1102_s1 + $0x75] sm:$0x8] %vm7_vm0, %v293_v56   ;;  %v305_v57 = vpop.permute.xlu0 %304  }
  0xad   :  { %v317_v58 = vpop.permute.xlu1 %316   ;;  %486 = vst.msk [vmem:[%s1102_s1 + $0x19] sm:$0x1] %vm7_vm0, %v305_v57   ;;  %487 = vst.msk [vmem:[%s1102_s1 + $0x38] sm:$0x2] %vm7_vm0, %v305_v57  }
  0xae   :  { %488 = vst.msk [vmem:[%s1102_s1 + $0x57] sm:$0x4] %vm7_vm0, %v305_v57   ;;  %489 = vst.msk [vmem:[%s1102_s1 + $0x76] sm:$0x8] %vm7_vm0, %v305_v57  }
  0xaf   :  { %490 = vst.msk [vmem:[%s1102_s1 + $0x1a] sm:$0x1] %vm7_vm0, %v317_v58   ;;  %491 = vst.msk [vmem:[%s1102_s1 + $0x39] sm:$0x2] %vm7_vm0, %v317_v58  }
  0xb0   :  { %492 = vst.msk [vmem:[%s1102_s1 + $0x58] sm:$0x4] %vm7_vm0, %v317_v58   ;;  %493 = vst.msk [vmem:[%s1102_s1 + $0x77] sm:$0x8] %vm7_vm0, %v317_v58   ;;  %v329_v59 = vpop.permute.xlu0 %328  }
  0xb1   :  { %v341_v60 = vpop.permute.xlu1 %340   ;;  %494 = vst.msk [vmem:[%s1102_s1 + $0x1b] sm:$0x1] %vm7_vm0, %v329_v59   ;;  %495 = vst.msk [vmem:[%s1102_s1 + $0x3a] sm:$0x2] %vm7_vm0, %v329_v59  }
  0xb2   :  { %496 = vst.msk [vmem:[%s1102_s1 + $0x59] sm:$0x4] %vm7_vm0, %v329_v59   ;;  %497 = vst.msk [vmem:[%s1102_s1 + $0x78] sm:$0x8] %vm7_vm0, %v329_v59  }
  0xb3   :  { %498 = vst.msk [vmem:[%s1102_s1 + $0x1c] sm:$0x1] %vm7_vm0, %v341_v60   ;;  %499 = vst.msk [vmem:[%s1102_s1 + $0x3b] sm:$0x2] %vm7_vm0, %v341_v60  }
  0xb4   :  { %500 = vst.msk [vmem:[%s1102_s1 + $0x5a] sm:$0x4] %vm7_vm0, %v341_v60   ;;  %501 = vst.msk [vmem:[%s1102_s1 + $0x79] sm:$0x8] %vm7_vm0, %v341_v60   ;;  %v353_v61 = vpop.permute.xlu0 %352  }
  0xb5   :  { %v365_v62 = vpop.permute.xlu1 %364   ;;  %502 = vst.msk [vmem:[%s1102_s1 + $0x1d] sm:$0x1] %vm7_vm0, %v353_v61   ;;  %503 = vst.msk [vmem:[%s1102_s1 + $0x3c] sm:$0x2] %vm7_vm0, %v353_v61  }
  0xb6   :  { %504 = vst.msk [vmem:[%s1102_s1 + $0x5b] sm:$0x4] %vm7_vm0, %v353_v61   ;;  %505 = vst.msk [vmem:[%s1102_s1 + $0x7a] sm:$0x8] %vm7_vm0, %v353_v61  }
  0xb7   :  { %506 = vst.msk [vmem:[%s1102_s1 + $0x1e] sm:$0x1] %vm7_vm0, %v365_v62   ;;  %507 = vst.msk [vmem:[%s1102_s1 + $0x3d] sm:$0x2] %vm7_vm0, %v365_v62  }
  0xb8   :  { %508 = vst.msk [vmem:[%s1102_s1 + $0x5c] sm:$0x4] %vm7_vm0, %v365_v62   ;;  %509 = vst.msk [vmem:[%s1102_s1 + $0x7b] sm:$0x8] %vm7_vm0, %v365_v62   ;;  %v377_v63 = vpop.permute.xlu0 %376  }
  0xb9   :  { %510 = vst.msk [vmem:[%s1102_s1 + $0x1f] sm:$0x1] %vm7_vm0, %v377_v63   ;;  %511 = vst.msk [vmem:[%s1102_s1 + $0x3e] sm:$0x2] %vm7_vm0, %v377_v63  }
  0xba   :  { %512 = vst.msk [vmem:[%s1102_s1 + $0x5d] sm:$0x4] %vm7_vm0, %v377_v63   ;;  %513 = vst.msk [vmem:[%s1102_s1 + $0x7c] sm:$0x8] %vm7_vm0, %v377_v63  }

// kernel: voxel_bev_unet.1
= control target key start
LH: loop header
LB: loop body
LE: loop exit
PB: predicated region body
PF: predicated region fallthrough
CT: control target
= control target key end

     0   :  { %s2775_s30 = smov 0   ;;  %s2777_s10 = smov 0   ;;  %s4109_s0 = inlined_call_operand.vmem [shape: f32[2,16,256], index: 0, kind: input, shape index: {}]   ;;  %s4110_s1 = inlined_call_operand.vmem [shape: bf16[128,16], index: 1, kind: input, shape index: {}]   ;;  %s4111_s2 = inlined_call_operand.vmem [shape: f32[128,1], index: 2, kind: input, shape index: {}]   ;;  %s4112_s3 = inlined_call_operand.vmem [shape: f32[128,1], index: 3, kind: input, shape index: {}]   ;;  %s4113_s4 = inlined_call_operand.vmem [shape: bf16[128,128], index: 4, kind: input, shape index: {}]   ;;  %s4114_s5 = inlined_call_operand.vmem [shape: f32[32,1], index: 5, kind: input, shape index: {}]   ;;  %s4115_s6 = inlined_call_operand.vmem [shape: bf16[16,32], index: 6, kind: input, shape index: {}]   ;;  %s4116_s7 = inlined_call_operand.vmem [shape: f32[16,1], index: 7, kind: input, shape index: {}]   ;;  %s4117_s8 = inlined_call_operand.vmem [shape: f32[16,1], index: 8, kind: input, shape index: {}]   ;;  %s4118_s9 = inlined_call_operand.vmem [shape: f32[2,16,256], index: 9, kind: output, shape index: {}]  }
   0x1   :  { %s2779_s11 = smov 0  }
   0x2 LB: > { %s31_s12 = sadd.s32 1, %s2718_s10  ;;  %p2453_p0 = scmp.ge.s32.totalorder %s2722_s11, 1  ;;  %s2722_s11 = sphi %s2779_s11, %s19_s11   ;;  %s2718_s10 = sphi %s2777_s10, %s4192_s10   ;;  %s2714_s30 = sphi %s2775_s30, %s4191_s30  }
   0x3   : > { %p33_p1 = scmp.ge.s32.totalorder %s31_s12, 2  ;;  %p308_p2 = scmp.lt.s32.totalorder %s2722_s11, 3 }
   0x5   : > { %s4194_s12 = smov (%p33_p1, %s31_s12), 0  ;;  %p309_p3 = pnand %p2453_p0, %p308_p2 }
   0x7   : > { %312 = sbr.rel (%p309_p3) target bundleno = 1131 (0x46b), region = 56 }
   0xe   : > { %p353_p4 = scmp.lt.s32.totalorder %s2714_s30, 1  ;;  %v4119_v0 = vmov 0   ;;  %v2531_v7 = vld [vmem:[%s4110_s1] sm:$0xff]   ;;  %vm435_vm0 = vcmask 130048   ;;  %v975_v10 = vld [vmem:[%s4112_s3 + $0x8] sm:$0xff]  ;;  %v849_v12 = vld [vmem:[%s4111_s2 + $0x18] sm:$0xff] }
   0xf   : > { %492 = vmatprep.mubr.bf16.mxu0 %v4119_v0  ;;  %2530 = vset.pattern.permute.xlu1 %v4119_v0  ;;  %v974_v8 = vld [vmem:[%s4112_s3] sm:$0xff]  ;;  %v847_v11 = vld [vmem:[%s4111_s2 + $0x8] sm:$0xff]  ;;  %v848_v13 = vld [vmem:[%s4111_s2 + $0x10] sm:$0xff] }
  0x10   : > { %s4196_s30 = smov (!%p353_p4, %s2714_s30), 1  ;;  %2529 = vset.pattern.permute.xlu0 %v4119_v0  ;;  %2088 = vmatprep.mubr.bf16.mxu1 %v4119_v0  ;;  %v846_v9 = vld [vmem:[%s4111_s2] sm:$0xff]  ;;  %v2532_v14 = vld [vmem:[%s4110_s1 + $0x8] sm:$0xff]   ;;  %v977_v15 = vld [vmem:[%s4112_s3 + $0x18] sm:$0xff] }
  0x11   : > { %s2486_s13 = sshll.u32 %s4196_s30, 5  ;;  %992 = vperm.xlu1 %2530, %v974_v8   ;;  %864 = vperm.xlu0 %2529, %v846_v9   ;;  %v976_v16 = vld [vmem:[%s4112_s3 + $0x10] sm:$0xff]  ;;  %v851_v17 = vld [vmem:[%s4111_s2 + $0x28] sm:$0xff]  ;;  %v850_v18 = vld [vmem:[%s4111_s2 + $0x20] sm:$0xff] }
  0x12   : > { %s2805_s16 = scalar_lea.vmem %s4109_s0, %s2486_s13  ;;  %v2533_v19 = vld [vmem:[%s4110_s1 + $0x10] sm:$0xff]   ;;  %v979_v20 = vld [vmem:[%s4112_s3 + $0x28] sm:$0xff]  ;;  %v978_v21 = vld [vmem:[%s4112_s3 + $0x20] sm:$0xff]  ;;  %s370_s28 = scalar_lea.vmem %s4118_s9, %s2486_s13 }
  0x13   : > { %v374_v1 = vld [vmem:[%s2805_s16 + $0x8] sm:$0xff]  ;;  %v376_v2 = vld [vmem:[%s2805_s16 + $0x18] sm:$0xff]  ;;  %v373_v3 = vld [vmem:[%s2805_s16] sm:$0xff] }
  0x14   : > { %v378_v4 = vpack.c.bf16 %v376_v2, %v374_v1  ;;  %v375_v5 = vld [vmem:[%s2805_s16 + $0x10] sm:$0xff]  ;;  %v853_v22 = vld [vmem:[%s4111_s2 + $0x38] sm:$0xff]  ;;  %v855_v27 = vld [vmem:[%s4111_s2 + $0x48] sm:$0xff] }
  0x15   : > { %v377_v6 = vpack.c.bf16 %v375_v5, %v373_v3  ;;  %997 = vperm.xlu1 %2530, %v975_v10   ;;  %869 = vperm.xlu0 %2529, %v847_v11   ;;  %v852_v23 = vld [vmem:[%s4111_s2 + $0x30] sm:$0xff]  ;;  %v2534_v24 = vld [vmem:[%s4110_s1 + $0x18] sm:$0xff]   ;;  %v854_v28 = vld [vmem:[%s4111_s2 + $0x40] sm:$0xff] }
  0x16   : > { %460 = vmatprep.subr.bf16.mxu0 %v378_v4  ;;  %v981_v25 = vld [vmem:[%s4112_s3 + $0x38] sm:$0xff]  ;;  %v980_v26 = vld [vmem:[%s4112_s3 + $0x30] sm:$0xff]  ;;  %v2535_v29 = vld [vmem:[%s4110_s1 + $0x20] sm:$0xff]  }
  0x17   : > { %461 = vmatpush1.bf16.msra.mxu0 %v377_v6  ;;  %v983_v30 = vld [vmem:[%s4112_s3 + $0x48] sm:$0xff]  ;;  %v982_v31 = vld [vmem:[%s4112_s3 + $0x40] sm:$0xff]  ;;  %v857_v32 = vld [vmem:[%s4111_s2 + $0x58] sm:$0xff] }
  0x18   : > { %v856_v33 = vld [vmem:[%s4111_s2 + $0x50] sm:$0xff]  ;;  %v2536_v34 = vld [vmem:[%s4110_s1 + $0x28] sm:$0xff]   ;;  %v985_v35 = vld [vmem:[%s4112_s3 + $0x58] sm:$0xff] }
  0x19   : > { %879 = vperm.xlu1 %2530, %v849_v12   ;;  %874 = vperm.xlu0 %2529, %v848_v13   ;;  %v984_v36 = vld [vmem:[%s4112_s3 + $0x50] sm:$0xff]  ;;  %v859_v37 = vld [vmem:[%s4111_s2 + $0x68] sm:$0xff]  ;;  %v858_v38 = vld [vmem:[%s4111_s2 + $0x60] sm:$0xff] }
  0x1a   : > { %2466 = vmatmul.mubr.msk.bf16.vlgmr.msra.gmra.mrb[0].mxu0 %vm435_vm0, %v2531_v7  ;;  %v2537_v39 = vld [vmem:[%s4110_s1 + $0x30] sm:$0xff]   ;;  %v987_v40 = vld [vmem:[%s4112_s3 + $0x68] sm:$0xff]  ;;  %v986_v41 = vld [vmem:[%s4112_s3 + $0x60] sm:$0xff] }
  0x1b   : > { %502 = vmatprep.mubr.bf16.mxu0 %v4119_v0  ;;  %v861_v42 = vld [vmem:[%s4111_s2 + $0x78] sm:$0xff]  ;;  %v860_v43 = vld [vmem:[%s4111_s2 + $0x70] sm:$0xff]  ;;  %v2184_v47 = vld [vmem:[%s4114_s5 + $0x8] sm:$0xff] }
  0x1c   : > { %v2538_v44 = vld [vmem:[%s4110_s1 + $0x38] sm:$0xff]   ;;  %v988_v46 = vld [vmem:[%s4112_s3 + $0x70] sm:$0xff]  ;;  %v2183_v48 = vld [vmem:[%s4114_s5] sm:$0xff] }
  0x1d   : > { %1007 = vperm.xlu1 %2530, %v977_v15   ;;  %1002 = vperm.xlu0 %2529, %v976_v16   ;;  %v989_v45 = vld [vmem:[%s4112_s3 + $0x78] sm:$0xff]  ;;  %v2185_v50 = vld [vmem:[%s4114_s5 + $0x10] sm:$0xff]  ;;  %v2323_v51 = vld [vmem:[%s4116_s7 + $0x8] sm:$0xff] }
  0x1e   : > { %v2186_v49 = vld [vmem:[%s4114_s5 + $0x18] sm:$0xff]  ;;  %v2322_v52 = vld [vmem:[%s4116_s7] sm:$0xff]  ;;  %v2339_v53 = vld [vmem:[%s4117_s8 + $0x8] sm:$0xff] }
  0x1f   : > { %v2338_v54 = vld [vmem:[%s4117_s8] sm:$0xff] }
  0x21   : > { %889 = vperm.xlu1 %2530, %v851_v17   ;;  %884 = vperm.xlu0 %2529, %v850_v18  }
  0x22   : > { %2467 = vmatmul.mubr.msk.bf16.gmra.mrb[4].mxu0 %vm435_vm0, %v2532_v14 }
  0x23   : > { %512 = vmatprep.mubr.bf16.mxu0 %v4119_v0 }
  0x25   : > { %1017 = vperm.xlu1 %2530, %v979_v20   ;;  %1012 = vperm.xlu0 %2529, %v978_v21  }
  0x29   : > { %899 = vperm.xlu1 %2530, %v853_v22   ;;  %894 = vperm.xlu0 %2529, %v852_v23  }
  0x2a   : > { %2468 = vmatmul.mubr.msk.bf16.gmra.mrb[8].mxu0 %vm435_vm0, %v2533_v19 }
  0x2b   : > { %522 = vmatprep.mubr.bf16.mxu0 %v4119_v0 }
  0x2d   : > { %1027 = vperm.xlu1 %2530, %v981_v25   ;;  %1022 = vperm.xlu0 %2529, %v980_v26  }
  0x31   : > { %909 = vperm.xlu1 %2530, %v855_v27   ;;  %904 = vperm.xlu0 %2529, %v854_v28  }
  0x32   : > { %2469 = vmatmul.mubr.msk.bf16.gmra.mrb[12].mxu0 %vm435_vm0, %v2534_v24 }
  0x33   : > { %532 = vmatprep.mubr.bf16.mxu0 %v4119_v0 }
  0x35   : > { %1037 = vperm.xlu1 %2530, %v983_v30   ;;  %1032 = vperm.xlu0 %2529, %v982_v31  }
  0x39   : > { %919 = vperm.xlu1 %2530, %v857_v32   ;;  %914 = vperm.xlu0 %2529, %v856_v33  }
  0x3a   : > { %2470 = vmatmul.mubr.msk.bf16.gmra.mrb[16].mxu0 %vm435_vm0, %v2535_v29 }
  0x3b   : > { %542 = vmatprep.mubr.bf16.mxu0 %v4119_v0 }
  0x3d   : > { %1047 = vperm.xlu1 %2530, %v985_v35   ;;  %1042 = vperm.xlu0 %2529, %v984_v36  }
  0x41   : > { %929 = vperm.xlu1 %2530, %v859_v37   ;;  %924 = vperm.xlu0 %2529, %v858_v38  }
  0x42   : > { %2471 = vmatmul.mubr.msk.bf16.gmra.mrb[20].mxu0 %vm435_vm0, %v2536_v34 }
  0x43   : > { %552 = vmatprep.mubr.bf16.mxu0 %v4119_v0 }
  0x45   : > { %1057 = vperm.xlu1 %2530, %v987_v40   ;;  %1052 = vperm.xlu0 %2529, %v986_v41  }
  0x49   : > { %939 = vperm.xlu1 %2530, %v861_v42   ;;  %934 = vperm.xlu0 %2529, %v860_v43  }
  0x4a   : > { %2472 = vmatmul.mubr.msk.bf16.gmra.mrb[24].mxu0 %vm435_vm0, %v2537_v39 }
  0x4b   : > { %562 = vmatprep.mubr.bf16.mxu0 %v4119_v0 }
  0x4d   : > { %1067 = vperm.xlu1 %2530, %v989_v45   ;;  %1062 = vperm.xlu0 %2529, %v988_v46  }
  0x51   : > { %2194 = vperm.xlu1 %2530, %v2184_v47   ;;  %2189 = vperm.xlu0 %2529, %v2183_v48  }
  0x52   : > { %2473 = vmatmul.mubr.msk.bf16.gmra.mrb[28].mxu0 %vm435_vm0, %v2538_v44 }
  0x53   : > { %2078 = vmatprep.mubr.bf16.mxu0 %v4119_v0 }
  0x55   : > { %2204 = vperm.xlu1 %2530, %v2186_v49   ;;  %2199 = vperm.xlu0 %2529, %v2185_v50  }
  0x59   : > { %2331 = vperm.xlu1 %2530, %v2323_v51   ;;  %2326 = vperm.xlu0 %2529, %v2322_v52  }
  0x5d   : > { %2347 = vperm.xlu1 %2530, %v2339_v53   ;;  %2342 = vperm.xlu0 %2529, %v2338_v54  }
  0xed   : > { %v494_v55 = vpop.f32.mrb[0].mxu0 }
  0xee   : > { %v496_v56 = vpop.f32.mrb[1].mxu0 }
  0xef   : > { %v498_v57 = vpop.f32.mrb[2].mxu0 }
  0xf0   : > { %v573_v58 = vadd.f32 %v498_v57, %v494_v55  ;;  %v500_v59 = vpop.f32.mrb[3].mxu0 }
  0xf1   : > { %v582_v60 = vadd.f32 %v500_v59, %v496_v56 }
  0xf5   : > { %v504_v61 = vpop.f32.mrb[4].mxu0 }
  0xf6   : > { %v574_v62 = vadd.f32 %v573_v58, %v504_v61  ;;  %v506_v63 = vpop.f32.mrb[5].mxu0 }
  0xf7   : > { %v583_v1 = vadd.f32 %v582_v60, %v506_v63  ;;  %v508_v2 = vpop.f32.mrb[6].mxu0 }
  0xf8   : > { %v575_v3 = vadd.f32 %v574_v62, %v508_v2  ;;  %v510_v4 = vpop.f32.mrb[7].mxu0 }
  0xf9   : > { %v584_v5 = vadd.f32 %v583_v1, %v510_v4 }
  0xfa   : > { %v576_v6 = vrot.slane %v575_v3, 4 }
  0xfb   : > { %v585_v7 = vrot.slane %v584_v5, 4 }
  0xfc   : > { %v577_v8 = vadd.f32 %v576_v6, %v575_v3 }
  0xfd   : > { %v586_v9 = vadd.f32 %v585_v7, %v584_v5  ;;  %v2971_v10 = vpop.f32.mrb[8].mxu0 }
  0xfe   : > { %v578_v11 = vrot.slane %v577_v8, 2  ;;  %v2973_v12 = vpop.f32.mrb[9].mxu0 }
  0xff   : > { %v587_v13 = vrot.slane %v586_v9, 2  ;;  %v2975_v14 = vpop.f32.mrb[10].mxu0 }
 0x100   : > { %v579_v15 = vadd.f32 %v578_v11, %v577_v8  ;;  %v642_v16 = vadd.f32 %v2975_v14, %v2971_v10  ;;  %v2979_v17 = vpop.f32.mrb[11].mxu0 }
 0x101   : > { %v588_v18 = vadd.f32 %v587_v13, %v586_v9  ;;  %v651_v19 = vadd.f32 %v2979_v17, %v2973_v12 }
 0x102   : > { %v580_v20 = vrot.slane %v579_v15, 1 }
 0x103   : > { %v589_v21 = vrot.slane %v588_v18, 1 }
 0x104   : > { %v581_v22 = vadd.f32 %v580_v20, %v579_v15 }
 0x105   : > { %v590_v23 = vadd.f32 %v589_v21, %v588_v18  ;;  %v2983_v24 = vpop.f32.mrb[12].mxu0 }
 0x106   : > { %v592_v25 = vmul.f32 0.03125, %v581_v22  ;;  %v643_v26 = vadd.f32 %v642_v16, %v2983_v24  ;;  %v2986_v27 = vpop.f32.mrb[13].mxu0 }
 0x107   : > { %v593_v28 = vmul.f32 0.03125, %v590_v23  ;;  %v652_v29 = vadd.f32 %v651_v19, %v2986_v27  ;;  %v2989_v30 = vpop.f32.mrb[14].mxu0 }
 0x108   : > { %v2991_v31 = vsub.f32 %v494_v55, %v592_v25  ;;  %v2993_v32 = vsub.f32 %v498_v57, %v592_v25  ;;  %v2995_v33 = vsub.f32 %v504_v61, %v592_v25  ;;  %v2997_v34 = vsub.f32 %v508_v2, %v592_v25  ;;  %v2999_v35 = vpop.f32.mrb[15].mxu0 }
 0x109   : > { %v3001_v36 = vsub.f32 %v496_v56, %v593_v28  ;;  %v3003_v37 = vsub.f32 %v500_v59, %v593_v28  ;;  %v3005_v38 = vsub.f32 %v506_v63, %v593_v28  ;;  %v3007_v39 = vsub.f32 %v510_v4, %v593_v28 }
 0x10a   : > { %v602_v40 = vmul.f32 %v2991_v31, %v2991_v31  ;;  %v604_v41 = vmul.f32 %v2993_v32, %v2993_v32  ;;  %v606_v44 = vmul.f32 %v2995_v33, %v2995_v33  ;;  %v644_v46 = vadd.f32 %v643_v26, %v2989_v30 }
 0x10b   : > { %v603_v42 = vmul.f32 %v3001_v36, %v3001_v36  ;;  %v605_v43 = vmul.f32 %v3003_v37, %v3003_v37  ;;  %v653_v47 = vadd.f32 %v652_v29, %v2999_v35  ;;  %v607_v48 = vmul.f32 %v3005_v38, %v3005_v38 }
 0x10c   : > { %v610_v45 = vadd.f32 %v604_v41, %v602_v40  ;;  %v608_v51 = vmul.f32 %v2997_v34, %v2997_v34  ;;  %v645_v53 = vrot.slane %v644_v46, 4  ;;  %v609_v56 = vmul.f32 %v3007_v39, %v3007_v39 }
 0x10d   : > { %v619_v49 = vadd.f32 %v605_v43, %v603_v42  ;;  %v3023_v50 = vpop.f32.mrb[16].mxu0  ;;  %v654_v54 = vrot.slane %v653_v47, 4 }
 0x10e   : > { %v611_v52 = vadd.f32 %v610_v45, %v606_v44  ;;  %v3027_v55 = vpop.f32.mrb[17].mxu0  ;;  %v646_v60 = vadd.f32 %v645_v53, %v644_v46  ;;  %v3051_v46 = vpop.permute.xlu1 %992 }
 0x10f   : > { %v620_v57 = vadd.f32 %v619_v49, %v607_v48  ;;  %v3031_v58 = vpop.f32.mrb[18].mxu0  ;;  %v655_v61 = vadd.f32 %v654_v54, %v653_v47 }
 0x110   : > { %v612_v59 = vadd.f32 %v611_v52, %v608_v51  ;;  %v710_v62 = vadd.f32 %v3031_v58, %v3023_v50  ;;  %v3035_v63 = vpop.f32.mrb[19].mxu0  ;;  %v647_v4 = vrot.slane %v646_v60, 2 }
 0x111   : > { %v621_v1 = vadd.f32 %v620_v57, %v609_v56  ;;  %v719_v2 = vadd.f32 %v3035_v63, %v3027_v55  ;;  %v656_v5 = vrot.slane %v655_v61, 2 }
 0x112   : > { %v613_v3 = vrot.slane %v612_v59, 4  ;;  %v648_v8 = vadd.f32 %v647_v4, %v646_v60 }
 0x113   : > { %v622_v6 = vrot.slane %v621_v1, 4  ;;  %v657_v9 = vadd.f32 %v656_v5, %v655_v61 }
 0x114   : > { %v614_v7 = vadd.f32 %v613_v3, %v612_v59  ;;  %v649_v16 = vrot.slane %v648_v8, 1 }
 0x115   : > { %v623_v11 = vadd.f32 %v622_v6, %v621_v1  ;;  %v3039_v13 = vpop.f32.mrb[20].mxu0  ;;  %v658_v18 = vrot.slane %v657_v9, 1 }
 0x116   : > { %v615_v15 = vrot.slane %v614_v7, 2  ;;  %v711_v19 = vadd.f32 %v710_v62, %v3039_v13  ;;  %v3042_v20 = vpop.f32.mrb[21].mxu0  ;;  %v650_v26 = vadd.f32 %v649_v16, %v648_v8  ;;  %v3095_v8 = vpop.permute.xlu1 %997 }
 0x117   : > { %v624_v21 = vrot.slane %v623_v11, 2  ;;  %v720_v22 = vadd.f32 %v719_v2, %v3042_v20  ;;  %v3045_v23 = vpop.f32.mrb[22].mxu0  ;;  %v659_v28 = vadd.f32 %v658_v18, %v657_v9 }
 0x118   : > { %v616_v25 = vadd.f32 %v615_v15, %v614_v7  ;;  %v712_v29 = vadd.f32 %v711_v19, %v3045_v23  ;;  %v3048_v40 = vpop.f32.mrb[23].mxu0  ;;  %v660_v44 = vmul.f32 0.03125, %v650_v26 }
 0x119   : > { %v625_v41 = vadd.f32 %v624_v21, %v623_v11  ;;  %v721_v42 = vadd.f32 %v720_v22, %v3048_v40  ;;  %v661_v45 = vmul.f32 0.03125, %v659_v28 }
 0x11a   : > { %v617_v43 = vrot.slane %v616_v25, 1  ;;  %v713_v48 = vrot.slane %v712_v29, 4  ;;  %v3054_v51 = vsub.f32 %v2971_v10, %v660_v44  ;;  %v3057_v52 = vsub.f32 %v2975_v14, %v660_v44 }
 0x11b   : > { %v626_v47 = vrot.slane %v625_v41, 1  ;;  %v3060_v53 = vsub.f32 %v2983_v24, %v660_v44  ;;  %v3063_v56 = vsub.f32 %v2989_v30, %v660_v44  ;;  %v3066_v57 = vsub.f32 %v2973_v12, %v661_v45 }
 0x11c   : > { %v618_v49 = vadd.f32 %v617_v43, %v616_v25  ;;  %v3069_v59 = vsub.f32 %v2979_v17, %v661_v45  ;;  %v670_v14 = vmul.f32 %v3054_v51, %v3054_v51  ;;  %v672_v24 = vmul.f32 %v3057_v52, %v3057_v52 }
 0x11d   : > { %v627_v54 = vadd.f32 %v626_v47, %v625_v41  ;;  %v3071_v60 = vpop.f32.mrb[24].mxu0  ;;  %v722_v61 = vrot.slane %v721_v42, 4  ;;  %v674_v12 = vmul.f32 %v3060_v53, %v3060_v53  ;;  %v3082_v1 = vsub.f32 %v2986_v27, %v661_v45 }
 0x11e   : > { %v628_v10 = vmul.f32 0.03125, %v618_v49  ;;  %v3077_v62 = vpop.f32.mrb[25].mxu0  ;;  %v3085_v17 = vsub.f32 %v2999_v35, %v661_v45  ;;  %v678_v4 = vadd.f32 %v672_v24, %v670_v14  ;;  %v671_v5 = vmul.f32 %v3066_v57, %v3066_v57  ;;  %v3112_v49 = vpop.permute.xlu1 %879 }
 0x11f   : > { %v629_v30 = vmul.f32 0.03125, %v627_v54  ;;  %v3087_v2 = vpop.f32.mrb[26].mxu0  ;;  %v673_v6 = vmul.f32 %v3069_v59, %v3069_v59  ;;  %v676_v27 = vmul.f32 %v3063_v56, %v3063_v56  ;;  %v675_v35 = vmul.f32 %v3082_v1, %v3082_v1 }
 0x120   : > { %v630_v3 = vadd.f32 1e-06, %v628_v10  ;;  %v3093_v7 = vpop.f32.mrb[27].mxu0  ;;  %v714_v11 = vadd.f32 %v713_v48, %v712_v29  ;;  %v679_v15 = vadd.f32 %v678_v4, %v674_v12  ;;  %v723_v18 = vadd.f32 %v722_v61, %v721_v42 }
 0x121   : > { %v631_v9 = vadd.f32 1e-06, %v629_v30  ;;  %v687_v16 = vadd.f32 %v673_v6, %v671_v5  ;;  %v778_v21 = vadd.f32 %v3087_v2, %v3071_v60  ;;  %v787_v22 = vadd.f32 %v3093_v7, %v3077_v62 }
 0x122   : > { %2548 = vrsqrt.f32 %v630_v3  ;;  %v715_v19 = vrot.slane %v714_v11, 2  ;;  %v680_v25 = vadd.f32 %v679_v15, %v676_v27  ;;  %v677_v26 = vmul.f32 %v3085_v17, %v3085_v17 }
 0x123   : > { %2550 = vrsqrt.f32 %v631_v9  ;;  %v688_v28 = vadd.f32 %v687_v16, %v675_v35  ;;  %v724_v41 = vrot.slane %v723_v18, 2 }
 0x124   : > { %v716_v43 = vadd.f32 %v715_v19, %v714_v11  ;;  %v681_v44 = vrot.slane %v680_v25, 4  ;;  %v3121_v19 = vpop.permute.xlu1 %1007 }
 0x125   : > { %v3107_v29 = vpop.f32.mrb[28].mxu0  ;;  %v689_v45 = vadd.f32 %v688_v28, %v677_v26  ;;  %v725_v42 = vadd.f32 %v724_v41, %v723_v18 }
 0x126   : > { %v779_v47 = vadd.f32 %v778_v21, %v3107_v29  ;;  %v3110_v48 = vpop.f32.mrb[29].mxu0  ;;  %v717_v54 = vrot.slane %v716_v43, 1  ;;  %v682_v24 = vadd.f32 %v681_v44, %v680_v25 }
 0x127   : > { %v788_v10 = vadd.f32 %v787_v22, %v3110_v48  ;;  %v3115_v14 = vpop.f32.mrb[30].mxu0  ;;  %v690_v61 = vrot.slane %v689_v45, 4  ;;  %v726_v30 = vrot.slane %v725_v42, 1 }
 0x128   : > { %v780_v12 = vadd.f32 %v779_v47, %v3115_v14  ;;  %v3118_v3 = vpop.f32.mrb[31].mxu0  ;;  %v718_v4 = vadd.f32 %v717_v54, %v716_v43  ;;  %v683_v6 = vrot.slane %v682_v24, 2 }
 0x129   : > { %v789_v5 = vadd.f32 %v788_v10, %v3118_v3  ;;  %v691_v9 = vadd.f32 %v690_v61, %v689_v45  ;;  %v727_v35 = vadd.f32 %v726_v30, %v725_v42  ;;  %v3153_v10 = vpop.permute.xlu1 %889 }
 0x12a   : > { %v728_v27 = vmul.f32 0.03125, %v718_v4  ;;  %v684_v15 = vadd.f32 %v683_v6, %v682_v24  ;;  %v781_v61 = vrot.slane %v780_v12, 4 }
 0x12b   : > { %v692_v16 = vrot.slane %v691_v9, 2 }
 0x12c   : > { %v2549_v11 = vpop.eup %2548  ;;  %v685_v43 = vrot.slane %v684_v15, 1  ;;  %v3138_v45 = vsub.f32 %v3023_v50, %v728_v27 }
 0x12d   : > { %v2551_v18 = vpop.eup %2550  ;;  %v3124_v21 = vmul.f32 %v2549_v11, %v2991_v31  ;;  %v3127_v22 = vmul.f32 %v2549_v11, %v2993_v32  ;;  %v3130_v25 = vmul.f32 %v2549_v11, %v2995_v33  ;;  %v640_v26 = vmul.f32 %v2549_v11, %v2997_v34 }
 0x12e   : > { %v3134_v28 = vmul.f32 %v2551_v18, %v3005_v38  ;;  %v641_v41 = vmul.f32 %v2551_v18, %v3007_v39  ;;  %v693_v44 = vadd.f32 %v692_v16, %v691_v9  ;;  %v3141_v31 = vsub.f32 %v3031_v58, %v728_v27 }
 0x12f   : > { %v3144_v32 = vsub.f32 %v3039_v13, %v728_v27  ;;  %v729_v33 = vmul.f32 0.03125, %v727_v35  ;;  %v686_v42 = vadd.f32 %v685_v43, %v684_v15  ;;  %v3147_v34 = vsub.f32 %v3045_v23, %v728_v27 }
 0x130   : > { %v694_v47 = vrot.slane %v693_v44, 1  ;;  %v738_v38 = vmul.f32 %v3138_v45, %v3138_v45  ;;  %v740_v39 = vmul.f32 %v3141_v31, %v3141_v31  ;;  %v782_v16 = vadd.f32 %v781_v61, %v780_v12 }
 0x131   : > { %v696_v50 = vmul.f32 0.03125, %v686_v42  ;;  %v742_v58 = vmul.f32 %v3144_v32, %v3144_v32  ;;  %v3158_v24 = vsub.f32 %v3027_v55, %v729_v33  ;;  %v3161_v4 = vsub.f32 %v3035_v63, %v729_v33 }
 0x132   : > { %v695_v54 = vadd.f32 %v694_v47, %v693_v44  ;;  %v746_v13 = vadd.f32 %v740_v39, %v738_v38  ;;  %v744_v6 = vmul.f32 %v3147_v34, %v3147_v34  ;;  %v3166_v27 = vsub.f32 %v3042_v20, %v729_v33  ;;  %v3175_v44 = vpop.permute.xlu1 %1017 }
 0x133   : > { %4140 = vst [vmem:[#allocation2_spill] sm:$0xff] %v3158_v24  ;;  %v698_v23 = vadd.f32 1e-06, %v696_v50  ;;  %4141 = vst [vmem:[#allocation3_spill] sm:$0xff] %v3161_v4  ;;  %v3169_v11 = vsub.f32 %v3048_v40, %v729_v33  ;;  %v739_v15 = vmul.f32 %v3158_v24, %v3158_v24  ;;  %v741_v63 = vmul.f32 %v3161_v4, %v3161_v4 }
 0x134   : > { %v697_v30 = vmul.f32 0.03125, %v695_v54  ;;  %v747_v9 = vadd.f32 %v746_v13, %v742_v58  ;;  %v790_v43 = vrot.slane %v789_v5, 4  ;;  %v743_v20 = vmul.f32 %v3166_v27, %v3166_v27 }
 0x135   : > { %2552 = vrsqrt.f32 %v698_v23  ;;  %v755_v47 = vadd.f32 %v741_v63, %v739_v15  ;;  %v783_v40 = vrot.slane %v782_v16, 2  ;;  %v948_v33 = vmul.f32 %v3112_v49, %v640_v26 }
 0x136   : > { %v699_v35 = vadd.f32 1e-06, %v697_v30  ;;  %v748_v55 = vadd.f32 %v747_v9, %v744_v6  ;;  %v745_v39 = vmul.f32 %v3169_v11, %v3169_v11  ;;  %v791_v50 = vadd.f32 %v790_v43, %v789_v5  ;;  %v3184_v6 = vpop.permute.xlu1 %899 }
 0x137   : > { %v756_v12 = vadd.f32 %v755_v47, %v743_v20  ;;  %v784_v58 = vadd.f32 %v783_v40, %v782_v16  ;;  %v635_v13 = vmul.f32 %v2551_v18, %v3001_v36  ;;  %v637_v30 = vmul.f32 %v2551_v18, %v3003_v37 }
 0x138   : > { %2554 = vrsqrt.f32 %v699_v35  ;;  %v749_v42 = vrot.slane %v748_v55, 4  ;;  %v792_v23 = vrot.slane %v791_v50, 2  ;;  %v3187_v26 = vadd.f32 %v3121_v19, %v948_v33 }
 0x139   : > { %v757_v61 = vadd.f32 %v756_v12, %v745_v39  ;;  %v785_v35 = vrot.slane %v784_v58, 1  ;;  %v949_v15 = vmul.f32 %v3112_v49, %v641_v41 }
 0x13a   : > { %v750_v38 = vadd.f32 %v749_v42, %v748_v55  ;;  %v793_v5 = vadd.f32 %v792_v23, %v791_v50  ;;  %v3209_v33 = vmul.f32 0.70710677, %v3187_v26  ;;  %v3214_v39 = vpop.permute.xlu1 %1027 }
 0x13b   : > { %v758_v63 = vrot.slane %v757_v61, 4  ;;  %v786_v47 = vadd.f32 %v785_v35, %v784_v58 }
 0x13c   : > { %v751_v54 = vrot.slane %v750_v38, 2  ;;  %v794_v41 = vrot.slane %v793_v5, 1  ;;  %vm1812_vm7 = vcmp.lt.f32.partialorder %v3209_v33, 0.0 }
 0x13d   : > { %v759_v20 = vadd.f32 %v758_v63, %v757_v61 }
 0x13e   : > { %v752_v9 = vadd.f32 %v751_v54, %v750_v38  ;;  %v795_v58 = vadd.f32 %v794_v41, %v793_v5 }
 0x13f   : > { %v2553_v55 = vpop.eup %2552  ;;  %v760_v40 = vrot.slane %v759_v20, 2 }
 0x140   : > { %v3191_v16 = vmul.f32 %v2553_v55, %v3054_v51  ;;  %v3194_v36 = vmul.f32 %v2553_v55, %v3057_v52  ;;  %v3197_v37 = vmul.f32 %v2553_v55, %v3060_v53  ;;  %v708_v18 = vmul.f32 %v2553_v55, %v3063_v56  ;;  %v865_v52 = vpop.permute.xlu0 %864 }
 0x141   : > { %v753_v42 = vrot.slane %v752_v9, 1  ;;  %v796_v53 = vmul.f32 0.03125, %v786_v47  ;;  %v3212_v56 = vadd.f32 %v3121_v19, %v949_v15  ;;  %v761_v50 = vadd.f32 %v760_v40, %v759_v20 }
 0x142   : > { %v3200_v43 = vpop.eup %2554  ;;  %v943_v61 = vmul.f32 %v865_v52, %v635_v13  ;;  %v1172_v55 = vand.u32 2147483647, %v3209_v33  ;;  %v3236_v13 = vpop.permute.xlu1 %909  ;;  %v797_v47 = vmul.f32 0.03125, %v795_v58 }
 0x143   : > { %v3204_v49 = vmul.f32 %v3200_v43, %v3082_v1  ;;  %v709_v51 = vmul.f32 %v3200_v43, %v3085_v17  ;;  %v754_v38 = vadd.f32 %v753_v42, %v752_v9  ;;  %v3217_v1 = vsub.f32 %v3071_v60, %v796_v53  ;;  %4142 = vst [vmem:[#allocation4_spill] sm:$0xff] %v3236_v13 }
 0x144   : > { %v3220_v17 = vsub.f32 %v3087_v2, %v796_v53  ;;  %v3223_v54 = vsub.f32 %v3107_v29, %v796_v53  ;;  %v762_v9 = vrot.slane %v761_v50, 1  ;;  %v3226_v19 = vsub.f32 %v3115_v14, %v796_v53  ;;  %v870_v29 = vpop.permute.xlu0 %869 }
 0x145   : > { %v764_v12 = vmul.f32 0.03125, %v754_v38  ;;  %v806_v35 = vmul.f32 %v3217_v1, %v3217_v1  ;;  %v3232_v60 = vmul.f32 0.70710677, %v3212_v56  ;;  %v945_v5 = vmul.f32 %v870_v29, %v637_v30 }
 0x146   : > { %v808_v2 = vmul.f32 %v3220_v17, %v3220_v17  ;;  %v763_v15 = vadd.f32 %v762_v9, %v761_v50  ;;  %v3239_v14 = vadd.f32 %v3051_v46, %v943_v61  ;;  %v810_v20 = vmul.f32 %v3223_v54, %v3223_v54 }
 0x147   : > { %v766_v23 = vadd.f32 1e-06, %v764_v12  ;;  %v1204_v41 = vmul.f32 0.3275911, %v1172_v55  ;;  %v1620_v38 = vsub.f32 0.0, %v1172_v55  ;;  %v812_v53 = vmul.f32 %v3226_v19, %v3226_v19 }
 0x148   : > { %v814_v63 = vadd.f32 %v808_v2, %v806_v35  ;;  %v765_v42 = vmul.f32 0.03125, %v763_v15  ;;  %v1173_v40 = vand.u32 2147483647, %v3232_v60  ;;  %v3250_v30 = vsub.f32 %v3093_v7, %v797_v47  ;;  %v3265_v7 = vpop.permute.xlu1 %1037 }
 0x149   : > { %2556 = vrsqrt.f32 %v766_v23  ;;  %v3247_v23 = vsub.f32 %v3077_v62, %v797_v47  ;;  %v956_v61 = vmul.f32 %v3184_v6, %v708_v18  ;;  %v3254_v9 = vadd.f32 %v3095_v8, %v945_v5  ;;  %4145 = vst [vmem:[#allocation7_spill] sm:$0xff] %v3265_v7 }
 0x14a   : > { %v767_v12 = vadd.f32 1e-06, %v765_v42  ;;  %v815_v50 = vadd.f32 %v814_v63, %v810_v20  ;;  %4144 = vst [vmem:[#allocation6_spill] sm:$0xff] %v3250_v30  ;;  %v3257_v58 = vmul.f32 0.70710677, %v3239_v14  ;;  %v3260_v2 = vsub.f32 %v3110_v48, %v797_v47 }
 0x14b   : > { %4143 = vst [vmem:[#allocation5_spill] sm:$0xff] %v3247_v23  ;;  %v3263_v15 = vsub.f32 %v3118_v3, %v797_v47  ;;  %v1205_v62 = vmul.f32 0.3275911, %v1173_v40  ;;  %v1621_v63 = vsub.f32 0.0, %v1173_v40  ;;  %v807_v18 = vmul.f32 %v3247_v23, %v3247_v23 }
 0x14c   : > { %2558 = vrsqrt.f32 %v767_v12  ;;  %v816_v35 = vadd.f32 %v815_v50, %v812_v53  ;;  %v809_v5 = vmul.f32 %v3250_v30, %v3250_v30  ;;  %v1236_v42 = vadd.f32 1.0, %v1204_v41  ;;  %v3300_v30 = vpop.permute.xlu1 %919 }
 0x14d   : > { %v1652_v20 = vmul.f32 %v1620_v38, %v1172_v55  ;;  %v942_v53 = vmul.f32 %v865_v52, %v3124_v21  ;;  %v3273_v48 = vadd.f32 %v3214_v39, %v956_v61  ;;  %v3276_v47 = vmul.f32 0.70710677, %v3254_v9 }
 0x14e   : > { %v817_v12 = vrot.slane %v816_v35, 4  ;;  %v823_v3 = vadd.f32 %v809_v5, %v807_v18  ;;  %v3279_v50 = vand.u32 2147483647, %v3257_v58  ;;  %v957_v23 = vmul.f32 %v3184_v6, %v709_v51 }
 0x14f   : > { %v811_v55 = vmul.f32 %v3260_v2, %v3260_v2  ;;  %v813_v21 = vmul.f32 %v3263_v15, %v3263_v15  ;;  %v3297_v51 = vand.u32 2147483647, %v3276_v47  ;;  %v1237_v5 = vadd.f32 1.0, %v1205_v62 }
 0x150   : > { %v818_v7 = vadd.f32 %v817_v12, %v816_v35  ;;  %v1199_v35 = vmul.f32 0.3275911, %v3279_v50  ;;  %v1653_v12 = vmul.f32 %v1621_v63, %v1173_v40  ;;  %2560 = vrcp.f32 %v1236_v42 }
 0x151   : > { %v824_v6 = vadd.f32 %v823_v3, %v811_v55  ;;  %v3308_v3 = vadd.f32 %v3214_v39, %v957_v23  ;;  %v3312_v40 = vadd.f32 %v3051_v46, %v942_v53  ;;  %vm1807_vm1 = vcmp.lt.f32.partialorder %v3257_v58, 0.0 }
 0x152   : > { %v819_v18 = vrot.slane %v818_v7, 2  ;;  %v1692_v53 = vmul.f32 1.442695, %v1653_v12  ;;  %vm1809_vm2 = vcmp.lt.f32.partialorder %v3276_v47, 0.0  ;;  %vm1813_vm5 = vcmp.lt.f32.partialorder %v3232_v60, 0.0 }
 0x153   : > { %v2557_v0 = vpop.eup %2556  ;;  %4150 = vst [vmem:[#allocation12_spill] sm:$0xff] %v3308_v3 }
 0x154   : > { %v3287_v52 = vmul.f32 %v2557_v0, %v3138_v45  ;;  %v3290_v41 = vmul.f32 %v2557_v0, %v3141_v31  ;;  %v3293_v38 = vmul.f32 %v2557_v0, %v3144_v32  ;;  %v776_v61 = vmul.f32 %v2557_v0, %v3147_v34 }
 0x155   : > { %v3303_v45 = vmul.f32 0.70710677, %v3273_v48  ;;  %v944_v31 = vmul.f32 %v870_v29, %v3127_v22  ;;  %v820_v32 = vadd.f32 %v819_v18, %v818_v7  ;;  %v1201_v0 = vmul.f32 0.3275911, %v3297_v51 }
 0x156   : > { %4146 = vst [vmem:[#allocation8_spill] sm:$0xff] %v3287_v52  ;;  %4147 = vst [vmem:[#allocation9_spill] sm:$0xff] %v3290_v41  ;;  %v1231_v34 = vadd.f32 1.0, %v1199_v35  ;;  %v964_v55 = vmul.f32 %v3300_v30, %v776_v61  ;;  %v3314_v62 = vpop.eup %2558  ;;  %v1690_v22 = vmul.f32 1.442695, %v1652_v20  ;;  %v1048_v20 = vpop.permute.xlu1 %1047 }
 0x157   : > { %4148 = vst [vmem:[#allocation10_spill] sm:$0xff] %v3293_v38  ;;  %4149 = vst [vmem:[#allocation11_spill] sm:$0xff] %v3303_v45  ;;  %v825_v38 = vadd.f32 %v824_v6, %v813_v21  ;;  %v821_v63 = vrot.slane %v820_v32, 1  ;;  %v1233_v52 = vadd.f32 1.0, %v1201_v0  ;;  %v1180_v29 = vand.u32 2147483647, %v3303_v45 }
 0x158   : > { %4151 = vst [vmem:[#allocation13_spill] sm:$0xff] %v3314_v62  ;;  %2562 = vrcp.f32 %v1231_v34  ;;  %v3319_v7 = vmul.f32 %v3314_v62, %v3166_v27  ;;  %v777_v39 = vmul.f32 %v3314_v62, %v3169_v11  ;;  %v3324_v46 = vadd.f32 %v3095_v8, %v944_v31 }
 0x159   : > { %v826_v41 = vrot.slane %v825_v38, 4  ;;  %v822_v23 = vadd.f32 %v821_v63, %v820_v32  ;;  %2564 = vrcp.f32 %v1233_v52  ;;  %v3327_v21 = vmul.f32 0.70710677, %v3308_v3 }
 0x15a   : > { %4152 = vst [vmem:[#allocation14_spill] sm:$0xff] %v3319_v7  ;;  %2566 = vrcp.f32 %v1237_v5  ;;  %v3329_v61 = vadd.f32 %v1048_v20, %v964_v55  ;;  %v3332_v6 = vmul.f32 0.70710677, %v3312_v40  ;;  %v3335_v11 = vmul.f32 0.5, %v3187_v26  ;;  %v3352_v55 = vpop.eup %2560 }
 0x15b   : > { %v827_v42 = vadd.f32 %v826_v41, %v825_v38  ;;  %4153 = vst [vmem:[#allocation15_spill] sm:$0xff] %v3327_v21  ;;  %v832_v18 = vmul.f32 0.03125, %v822_v23  ;;  %2568 = vpow2.f32 %v1690_v22  ;;  %v1212_v52 = vmul.f32 0.3275911, %v1180_v29 }
 0x15c   : > { %4154 = vst [vmem:[#allocation16_spill] sm:$0xff] %v3329_v61  ;;  %v1615_v8 = vsub.f32 0.0, %v3279_v50  ;;  %v1628_v41 = vsub.f32 0.0, %v1180_v29  ;;  %v3339_v5 = vmul.f32 0.70710677, %v3324_v46  ;;  %2570 = vpow2.f32 %v1692_v53 }
 0x15d   : > { %v828_v27 = vrot.slane %v827_v42, 2  ;;  %v834_v38 = vadd.f32 1e-06, %v832_v18  ;;  %v1181_v12 = vand.u32 2147483647, %v3327_v21  ;;  %v1617_v31 = vsub.f32 0.0, %v3297_v51 }
 0x15e   : > { %v3344_v32 = vand.u32 2147483647, %v3332_v6  ;;  %v3347_v26 = vmul.f32 0.70710677, %v3329_v61  ;;  %v3350_v34 = vand.u32 2147483647, %v3339_v5  ;;  %v1647_v23 = vmul.f32 %v1615_v8, %v3279_v50  ;;  %v3365_v61 = vpop.permute.xlu0 %874 }
 0x15f   : > { %v829_v35 = vadd.f32 %v828_v27, %v827_v42  ;;  %2572 = vrsqrt.f32 %v834_v38  ;;  %v1244_v63 = vadd.f32 1.0, %v1212_v52  ;;  %v3355_v22 = vmul.f32 0.5, %v3239_v14 }
 0x160   : > { %4155 = vst [vmem:[#allocation17_spill] sm:$0xff] %v3347_v26  ;;  %v1198_v42 = vmul.f32 0.3275911, %v3344_v32  ;;  %v3362_v18 = vmul.f32 0.5, %v3273_v48  ;;  %v1660_v27 = vmul.f32 %v1628_v41, %v1180_v29  ;;  %v1200_v7 = vmul.f32 0.3275911, %v3350_v34 }
 0x161   : > { %v830_v0 = vrot.slane %v829_v35, 1  ;;  %v1213_v45 = vmul.f32 0.3275911, %v1181_v12  ;;  %v1629_v52 = vsub.f32 0.0, %v1181_v12  ;;  %v1649_v21 = vmul.f32 %v1617_v31, %v3297_v51 }
 0x162   : > { %v3359_v53 = vpop.eup %2562  ;;  %4156 = vst [vmem:[#allocation18_spill] sm:$0xff] %v3362_v18  ;;  %v1188_v8 = vand.u32 2147483647, %v3347_v26  ;;  %v965_v13 = vmul.f32 %v3300_v30, %v777_v39  ;;  %v1230_v18 = vadd.f32 1.0, %v1198_v42  ;;  %2574 = vrcp.f32 %v1244_v63 }
 0x163   : > { %v831_v38 = vadd.f32 %v830_v0, %v829_v35  ;;  %v1327_v14 = vmul.f32 1.0614054, %v3359_v53  ;;  %v3369_v50 = vpop.eup %2564  ;;  %v1680_v0 = vmul.f32 1.442695, %v1647_v23  ;;  %v1706_v3 = vmul.f32 1.442695, %v1660_v27  ;;  %v3385_v23 = vpop.permute.xlu0 %1002 }
 0x164   : > { %v3373_v29 = vpop.eup %2566  ;;  %v1329_v41 = vmul.f32 1.0614054, %v3369_v50  ;;  %v1232_v62 = vadd.f32 1.0, %v1200_v7  ;;  %2576 = vrcp.f32 %v1230_v18  ;;  %v1245_v31 = vadd.f32 1.0, %v1213_v45 }
 0x165   : > { %v833_v48 = vmul.f32 0.03125, %v831_v38  ;;  %v1359_v35 = vadd.f32 -1.4531521, %v1327_v14  ;;  %v3376_v51 = vpop.eup %2568  ;;  %v1661_v24 = vmul.f32 %v1629_v52, %v1181_v12  ;;  %v3379_v39 = vadd.f32 %v1048_v20, %v965_v13 }
 0x166   : > { %v1361_v26 = vadd.f32 -1.4531521, %v1329_v41  ;;  %v1684_v42 = vmul.f32 1.442695, %v1649_v21  ;;  %v947_v63 = vmul.f32 %v3365_v61, %v3134_v28  ;;  %v3383_v38 = vpop.eup %2570  ;;  %v1220_v7 = vmul.f32 0.3275911, %v1188_v8 }
 0x167   : > { %v835_v4 = vadd.f32 1e-06, %v833_v48  ;;  %v1391_v30 = vmul.f32 %v3359_v53, %v1359_v35  ;;  %4157 = vst [vmem:[#allocation19_spill] sm:$0xff] %v3379_v39  ;;  %v1636_v12 = vsub.f32 0.0, %v1188_v8  ;;  %v1708_v52 = vmul.f32 1.442695, %v1661_v24 }
 0x168   : > { %v1393_v18 = vmul.f32 %v3369_v50, %v1361_v26  ;;  %v3389_v13 = vadd.f32 %v3385_v23, %v947_v63  ;;  %vm1806_vm3 = vcmp.lt.f32.partialorder %v3332_v6, 0.0  ;;  %vm1808_vm4 = vcmp.lt.f32.partialorder %v3339_v5, 0.0 }
 0x169   : > { %2578 = vrsqrt.f32 %v835_v4  ;;  %v1423_v27 = vadd.f32 1.4214138, %v1391_v30  ;;  %v2573_v45 = vpop.eup %2572  ;;  %v1333_v4 = vmul.f32 1.0614054, %v3373_v29  ;;  %v1668_v24 = vmul.f32 %v1636_v12, %v1188_v8 }
 0x16a   : > { %2580 = vpow2.f32 %v1680_v0  ;;  %v3393_v21 = vmul.f32 %v2573_v45, %v3217_v1  ;;  %v3396_v28 = vmul.f32 %v2573_v45, %v3220_v17  ;;  %v3399_v20 = vmul.f32 %v2573_v45, %v3223_v54 }
 0x16b   : > { %2582 = vrcp.f32 %v1232_v62  ;;  %v3402_v26 = vmul.f32 %v2573_v45, %v3226_v19  ;;  %v3405_v62 = vmul.f32 0.70710677, %v3379_v39  ;;  %v1425_v14 = vadd.f32 1.4214138, %v1393_v18 }
 0x16c   : > { %4158 = vst [vmem:[#allocation20_spill] sm:$0xff] %v3393_v21  ;;  %4159 = vst [vmem:[#allocation21_spill] sm:$0xff] %v3396_v28  ;;  %v1455_v48 = vmul.f32 %v3359_v53, %v1423_v27  ;;  %2584 = vpow2.f32 %v1684_v42  ;;  %v1614_v1 = vsub.f32 0.0, %v3344_v32  ;;  %v3410_v41 = vmul.f32 0.70710677, %v3389_v13  ;;  %v3413_v0 = vpop.eup %2574 }
 0x16d   : > { %4160 = vst [vmem:[#allocation22_spill] sm:$0xff] %v3399_v20  ;;  %4161 = vst [vmem:[#allocation23_spill] sm:$0xff] %v3405_v62  ;;  %v1365_v17 = vadd.f32 -1.4531521, %v1333_v4  ;;  %2586 = vpow2.f32 %v1706_v3  ;;  %v1252_v54 = vadd.f32 1.0, %v1220_v7  ;;  %v1457_v35 = vmul.f32 %v3369_v50, %v1425_v14 }
 0x16e   : > { %v1487_v19 = vadd.f32 -0.28449672, %v1455_v48  ;;  %2588 = vrcp.f32 %v1245_v31  ;;  %v3416_v30 = vand.u32 2147483647, %v3410_v41  ;;  %v3419_v63 = vpop.eup %2576  ;;  %v3422_v18 = vmul.f32 0.5, %v3254_v9 }
 0x16f   : > { %v1397_v42 = vmul.f32 %v3373_v29, %v1365_v17  ;;  %2590 = vpow2.f32 %v1708_v52  ;;  %v1489_v3 = vadd.f32 -0.28449672, %v1457_v35  ;;  %v1189_v27 = vand.u32 2147483647, %v3405_v62 }
 0x170   : > { %v1519_v7 = vmul.f32 %v3359_v53, %v1487_v19  ;;  %v1326_v45 = vmul.f32 1.0614054, %v3419_v63  ;;  %v1616_v8 = vsub.f32 0.0, %v3350_v34  ;;  %v1646_v31 = vmul.f32 %v1614_v1, %v3344_v32 }
 0x171   : > { %2592 = vrcp.f32 %v1252_v54  ;;  %v1521_v4 = vmul.f32 %v3369_v50, %v1489_v3  ;;  %v1203_v9 = vmul.f32 0.3275911, %v3416_v30  ;;  %v1722_v48 = vmul.f32 1.442695, %v1668_v24 }
 0x172   : > { %v1551_v52 = vadd.f32 0.2548296, %v1519_v7  ;;  %v1429_v32 = vadd.f32 1.4214138, %v1397_v42  ;;  %v1358_v3 = vadd.f32 -1.4531521, %v1326_v45  ;;  %v1648_v24 = vmul.f32 %v1616_v8, %v3350_v34 }
 0x173   : > { %v3429_v12 = vpop.eup %2578  ;;  %v1553_v54 = vadd.f32 0.2548296, %v1521_v4  ;;  %v1235_v7 = vadd.f32 1.0, %v1203_v9  ;;  %v1637_v20 = vsub.f32 0.0, %v1189_v27  ;;  %v3453_v45 = vmul.f32 0.5, %v3312_v40 }
 0x174   : > { %v2581_v14 = vpop.eup %2580  ;;  %v3435_v17 = vmul.f32 %v3429_v12, %v3260_v2  ;;  %v3439_v35 = vmul.f32 %v3429_v12, %v3263_v15  ;;  %v1583_v19 = vmul.f32 %v3359_v53, %v1551_v52  ;;  %v3448_v15 = vpop.permute.xlu1 %929  ;;  %v1390_v21 = vmul.f32 %v3419_v63, %v1358_v3 }
 0x175   : > { %v3442_v1 = vpop.eup %2582  ;;  %4163 = vst [vmem:[#allocation25_spill] sm:$0xff] %v3448_v15  ;;  %v1585_v28 = vmul.f32 %v3369_v50, %v1553_v54  ;;  %2594 = vrcp.f32 %v1235_v7  ;;  %v1221_v53 = vmul.f32 0.3275911, %v1189_v27  ;;  %v1669_v50 = vmul.f32 %v1637_v20, %v1189_v27 }
 0x176   : > { %4162 = vst [vmem:[#allocation24_spill] sm:$0xff] %v3435_v17  ;;  %v1328_v2 = vmul.f32 1.0614054, %v3442_v1  ;;  %v1678_v17 = vmul.f32 1.442695, %v1646_v31  ;;  %v1743_v42 = vmul.f32 %v2581_v14, %v1583_v19  ;;  %v2585_v4 = vpop.eup %2584  ;;  %2596 = vpow2.f32 %v1722_v48 }
 0x177   : > { %v3455_v9 = vpop.eup %2586  ;;  %v1745_v39 = vmul.f32 %v2585_v4, %v1585_v28  ;;  %v1422_v8 = vadd.f32 1.4214138, %v1390_v21  ;;  %v1461_v31 = vmul.f32 %v3373_v29, %v1429_v32  ;;  %v1682_v54 = vmul.f32 1.442695, %v1648_v24 }
 0x178   : > { %v1360_v52 = vadd.f32 -1.4531521, %v1328_v2  ;;  %v1775_v34 = vsub.f32 1.0, %v1743_v42  ;;  %v3458_v62 = vpop.eup %2588  ;;  %2598 = vpow2.f32 %v1678_v17  ;;  %v1619_v28 = vsub.f32 0.0, %v3416_v30  ;;  %v3470_v27 = vpop.permute.xlu1 %1057 }
 0x179   : > { %v3461_v48 = vpop.eup %2590  ;;  %v1777_v19 = vsub.f32 1.0, %v1745_v39  ;;  %v1454_v3 = vmul.f32 %v3419_v63, %v1422_v8  ;;  %v1493_v7 = vadd.f32 -0.28449672, %v1461_v31  ;;  %v946_v21 = vmul.f32 %v3365_v61, %v3130_v25  ;;  %4164 = vst [vmem:[#allocation26_spill] sm:$0xff] %v3470_v27 }
 0x17a   : > { %v1392_v14 = vmul.f32 %v3442_v1, %v1360_v52  ;;  %v1839_v40 = vsub.f32 0.0, %v1775_v34  ;;  %v1332_v32 = vmul.f32 1.0614054, %v3352_v55  ;;  %v1253_v4 = vadd.f32 1.0, %v1221_v53 }
 0x17b   : > { %v3468_v20 = vpop.eup %2592  ;;  %v1841_v17 = vsub.f32 0.0, %v1777_v19  ;;  %v1486_v24 = vadd.f32 -0.28449672, %v1454_v3  ;;  %v1525_v42 = vmul.f32 %v3373_v29, %v1493_v7  ;;  %2600 = vpow2.f32 %v1682_v54 }
 0x17c   : > { %v1424_v2 = vadd.f32 1.4214138, %v1392_v14  ;;  %v1871_v39 = vsel %vm1807_vm1, %v1839_v40, %v1775_v34  ;;  %v1724_v31 = vmul.f32 1.442695, %v1669_v50  ;;  %v1651_v58 = vmul.f32 %v1619_v28, %v3416_v30  ;;  %v940_v30 = vpop.permute.xlu1 %939 }
 0x17d   : > { %v1903_v52 = vadd.f32 1.0, %v1871_v39  ;;  %v1873_v25 = vsel %vm1809_vm2, %v1841_v17, %v1777_v19  ;;  %v1518_v61 = vmul.f32 %v3419_v63, %v1486_v24  ;;  %v1557_v14 = vadd.f32 0.2548296, %v1525_v42 }
 0x17e   : > { %v1456_v8 = vmul.f32 %v3442_v1, %v1424_v2  ;;  %v1905_v27 = vadd.f32 1.0, %v1873_v25  ;;  %v3482_v34 = vadd.f32 %v3385_v23, %v946_v21  ;;  %v1364_v54 = vadd.f32 -1.4531521, %v1332_v32 }
 0x17f   : > { %v1935_v15 = vmul.f32 %v1903_v52, %v3355_v22  ;;  %v3484_v53 = vpop.eup %2594  ;;  %v1550_v3 = vadd.f32 0.2548296, %v1518_v61  ;;  %v1589_v50 = vmul.f32 %v3373_v29, %v1557_v14  ;;  %2602 = vrcp.f32 %v1253_v4  ;;  %v885_v4 = vpop.permute.xlu0 %884 }
 0x180   : > { %v1488_v40 = vadd.f32 -0.28449672, %v1456_v8  ;;  %v3487_v47 = vpop.eup %2596  ;;  %v1937_v19 = vmul.f32 %v1905_v27, %v3422_v18  ;;  %v3491_v7 = vmul.f32 0.5, %v3324_v46  ;;  %v1331_v22 = vmul.f32 1.0614054, %v3484_v53 }
 0x181   : > { %2604 = vpow2.f32 %v1724_v31  ;;  %v1582_v2 = vmul.f32 %v3419_v63, %v1550_v3  ;;  %v1688_v32 = vmul.f32 1.442695, %v1651_v58  ;;  %v3498_v17 = vmul.f32 0.70710677, %v3482_v34  ;;  %v1068_v58 = vpop.permute.xlu1 %1067 }
 0x182   : > { %v1520_v23 = vmul.f32 %v3442_v1, %v1488_v40  ;;  %v2599_v29 = vpop.eup %2598  ;;  %v1983_v28 = vpack.c.bf16 %v1937_v19, %v1935_v15  ;;  %v1363_v21 = vadd.f32 -1.4531521, %v1331_v22  ;;  %v1749_v27 = vmul.f32 %v3383_v38, %v1589_v50 }
 0x183   : > { %v1742_v46 = vmul.f32 %v2599_v29, %v1582_v2  ;;  %v1396_v39 = vmul.f32 %v3352_v55, %v1364_v54  ;;  %v973_v24 = vmul.f32 %v940_v30, %v3439_v35  ;;  %v3506_v15 = vand.u32 2147483647, %v3498_v17 }
 0x184   : > { %v1552_v18 = vadd.f32 0.2548296, %v1520_v23  ;;  %2046 = vmatprep.subr.bf16.mxu0 %v1983_v28  ;;  %2488 = vmatprep.subr.bf16.mxu1 %v1983_v28  ;;  %v1395_v63 = vmul.f32 %v3484_v53, %v1363_v21  ;;  %v703_v42 = vmul.f32 %v3200_v43, %v3066_v57  ;;  %v3512_v8 = vmul.f32 0.5, %v3212_v56 }
 0x185   : > { %v1774_v38 = vsub.f32 1.0, %v1742_v46  ;;  %v1428_v35 = vadd.f32 1.4214138, %v1396_v39  ;;  %v2601_v31 = vpop.eup %2600  ;;  %2606 = vpow2.f32 %v1688_v32  ;;  %v1202_v61 = vmul.f32 0.3275911, %v3506_v15 }
 0x186   : > { %v1584_v52 = vmul.f32 %v3442_v1, %v1552_v18  ;;  %v1427_v25 = vadd.f32 1.4214138, %v1395_v63  ;;  %v705_v14 = vmul.f32 %v3200_v43, %v3069_v59  ;;  %v1781_v57 = vsub.f32 1.0, %v1749_v27 }
 0x187   : > { %v1838_v3 = vsub.f32 0.0, %v1774_v38  ;;  %v1460_v50 = vmul.f32 %v3352_v55, %v1428_v35  ;;  %v972_v1 = vmul.f32 %v940_v30, %v3402_v26  ;;  %v3519_v54 = vadd.f32 %v1068_v58, %v973_v24  ;;  %v1013_v26 = vpop.permute.xlu0 %1012 }
 0x188   : > { %v1744_v40 = vmul.f32 %v2601_v31, %v1584_v52  ;;  %v1459_v56 = vmul.f32 %v3484_v53, %v1427_v25  ;;  %v1234_v19 = vadd.f32 1.0, %v1202_v61  ;;  %v951_v29 = vmul.f32 %v885_v4, %v703_v42 }
 0x189   : > { %v1870_v23 = vsel %vm1806_vm3, %v1838_v3, %v1774_v38  ;;  %v1492_v2 = vadd.f32 -0.28449672, %v1460_v50  ;;  %v3524_v59 = vpop.eup %2602  ;;  %v1845_v32 = vsub.f32 0.0, %v1781_v57  ;;  %v953_v46 = vmul.f32 %v3153_v10, %v705_v14 }
 0x18a   : > { %v1776_v22 = vsub.f32 1.0, %v1744_v40  ;;  %v1902_v43 = vadd.f32 1.0, %v1870_v23  ;;  %v1491_v28 = vadd.f32 -0.28449672, %v1459_v56  ;;  %2608 = vrcp.f32 %v1234_v19 }
 0x18b   : > { %v3527_v21 = vpop.eup %2604  ;;  %v1524_v18 = vmul.f32 %v3352_v55, %v1492_v2  ;;  %v3531_v6 = vadd.f32 %v1068_v58, %v972_v1  ;;  %v3534_v27 = vmul.f32 0.5, %v3389_v13  ;;  %v3537_v24 = vadd.f32 %v1013_v26, %v951_v29 }
 0x18c   : > { %v1840_v30 = vsub.f32 0.0, %v1776_v22  ;;  %v1523_v39 = vmul.f32 %v3484_v53, %v1491_v28  ;;  %v3540_v63 = vmul.f32 0.70710677, %v3519_v54  ;;  %v3545_v38 = vadd.f32 %v3175_v44, %v953_v46  ;;  %v3579_v28 = vpop.permute.xlu0 %894 }
 0x18d   : > { %v1556_v52 = vadd.f32 0.2548296, %v1524_v18  ;;  %v1934_v31 = vmul.f32 %v1902_v43, %v3453_v45  ;;  %v3549_v13 = vmul.f32 0.70710677, %v3537_v24  ;;  %vm1811_vm6 = vcmp.lt.f32.partialorder %v3410_v41, 0.0 }
 0x18e   : > { %v1872_v42 = vsel %vm1808_vm4, %v1840_v30, %v1776_v22  ;;  %v1555_v25 = vadd.f32 0.2548296, %v1523_v39  ;;  %v1877_v61 = vsel %vm1813_vm5, %v1845_v32, %v1781_v57  ;;  %v1618_v5 = vsub.f32 0.0, %v3506_v15 }
 0x18f   : > { %v1904_v35 = vadd.f32 1.0, %v1872_v42  ;;  %v1588_v14 = vmul.f32 %v3352_v55, %v1556_v52  ;;  %v3557_v58 = vmul.f32 0.70710677, %v3545_v38  ;;  %v2607_v40 = vpop.eup %2606  ;;  %v1175_v50 = vand.u32 2147483647, %v3549_v13 }
 0x190   : > { %v1587_v45 = vmul.f32 %v3484_v53, %v1555_v25  ;;  %v950_v1 = vmul.f32 %v885_v4, %v3191_v16  ;;  %v3564_v56 = vmul.f32 0.70710677, %v3531_v6  ;;  %v952_v57 = vmul.f32 %v3153_v10, %v3194_v36 }
 0x191   : > { %v1936_v3 = vmul.f32 %v1904_v35, %v3491_v7  ;;  %v1748_v60 = vmul.f32 %v3376_v51, %v1588_v14  ;;  %v1177_v55 = vand.u32 2147483647, %v3557_v58  ;;  %v1207_v22 = vmul.f32 0.3275911, %v1175_v50 }
 0x192   : > { %v1747_v7 = vmul.f32 %v2607_v40, %v1587_v45  ;;  %v1623_v53 = vsub.f32 0.0, %v1175_v50  ;;  %v3572_v23 = vand.u32 2147483647, %v3540_v63  ;;  %v1909_v16 = vadd.f32 1.0, %v1877_v61 }
 0x193   : > { %v1982_v19 = vpack.c.bf16 %v1936_v3, %v1934_v31  ;;  %v1780_v4 = vsub.f32 1.0, %v1748_v60  ;;  %v1209_v2 = vmul.f32 0.3275911, %v1177_v55  ;;  %v1650_v43 = vmul.f32 %v1618_v5, %v3506_v15 }
 0x194   : > { %v3574_v29 = vpop.eup %2608  ;;  %v1779_v51 = vsub.f32 1.0, %v1747_v7  ;;  %v1239_v10 = vadd.f32 1.0, %v1207_v22  ;;  %v3577_v36 = vadd.f32 %v1013_v26, %v950_v1  ;;  %v1625_v18 = vsub.f32 0.0, %v1177_v55  ;;  %v1023_v1 = vpop.permute.xlu0 %1022 }
 0x195   : > { %2047 = vmatpush1.bf16.msra.mxu0 %v1982_v19  ;;  %2496 = vmatpush1.bf16.msra.mxu1 %v1982_v19  ;;  %v1330_v30 = vmul.f32 1.0614054, %v3574_v29  ;;  %v1241_v32 = vadd.f32 1.0, %v1209_v2  ;;  %v3583_v46 = vadd.f32 %v3175_v44, %v952_v57  ;;  %v3586_v39 = vand.u32 2147483647, %v3564_v56 }
 0x196   : > { %v1843_v42 = vsub.f32 0.0, %v1779_v51  ;;  %2610 = vrcp.f32 %v1239_v10  ;;  %v1655_v52 = vmul.f32 %v1623_v53, %v1175_v50  ;;  %v3589_v15 = vmul.f32 0.3275911, %v3572_v23 }
 0x197   : > { %v1362_v26 = vadd.f32 -1.4531521, %v1330_v30  ;;  %v1844_v35 = vsub.f32 0.0, %v1780_v4  ;;  %2612 = vrcp.f32 %v1241_v32  ;;  %v1941_v25 = vmul.f32 %v1909_v16, %v3512_v8 }
 0x198   : > { %v1875_v31 = vsel %vm1811_vm6, %v1843_v42, %v1779_v51  ;;  %v1686_v61 = vmul.f32 1.442695, %v1650_v43  ;;  %v3595_v44 = vmul.f32 0.70710677, %v3577_v36  ;;  %v1657_v40 = vmul.f32 %v1625_v18, %v1177_v55 }
 0x199   : > { %v1907_v14 = vadd.f32 1.0, %v1875_v31  ;;  %v1394_v5 = vmul.f32 %v3574_v29, %v1362_v26  ;;  %v3599_v3 = vmul.f32 0.70710677, %v3583_v46  ;;  %v3602_v45 = vmul.f32 0.5, %v3482_v34 }
 0x19a   : > { %v1696_v50 = vmul.f32 1.442695, %v1655_v52  ;;  %v1174_v41 = vand.u32 2147483647, %v3595_v44  ;;  %v955_v8 = vmul.f32 %v3579_v28, %v3204_v49  ;;  %v1876_v19 = vsel %vm1812_vm7, %v1844_v35, %v1780_v4 }
 0x19b   : > { %v1939_v60 = vmul.f32 %v1907_v14, %v3534_v27  ;;  %v1426_v57 = vadd.f32 1.4214138, %v1394_v5  ;;  %v1176_v55 = vand.u32 2147483647, %v3599_v3  ;;  %2614 = vpow2.f32 %v1686_v61 }
 0x19c   : > { %v1206_v7 = vmul.f32 0.3275911, %v1174_v41  ;;  %v1622_v22 = vsub.f32 0.0, %v1174_v41  ;;  %v3611_v34 = vadd.f32 %v1023_v1, %v955_v8  ;;  %v1700_v2 = vmul.f32 1.442695, %v1657_v40 }
 0x19d   : > { %v1985_v53 = vpack.c.bf16 %v1941_v25, %v1939_v60  ;;  %v1458_v16 = vmul.f32 %v3574_v29, %v1426_v57  ;;  %v1208_v51 = vmul.f32 0.3275911, %v1176_v55  ;;  %v1908_v49 = vadd.f32 1.0, %v1876_v19 }
 0x19e   : > { %2616 = vpow2.f32 %v1696_v50  ;;  %v1238_v43 = vadd.f32 1.0, %v1206_v7  ;;  %v3615_v27 = vmul.f32 0.70710677, %v3611_v34  ;;  %v1624_v10 = vsub.f32 0.0, %v1176_v55 }
 0x19f   : > { %2048 = vmatprep.subr.bf16.mxu0 %v1985_v53  ;;  %2489 = vmatprep.subr.bf16.mxu1 %v1985_v53  ;;  %v1490_v33 = vadd.f32 -0.28449672, %v1458_v16  ;;  %v1240_v4 = vadd.f32 1.0, %v1208_v51  ;;  %v1341_v30 = vmul.f32 1.0614054, %v3458_v62  ;;  %v3621_v18 = vmul.f32 0.5, %v3537_v24 }
 0x1a0   : > { %v3618_v32 = vpop.eup %2610  ;;  %2618 = vrcp.f32 %v1238_v43  ;;  %v1654_v42 = vmul.f32 %v1622_v22, %v1174_v41  ;;  %v1179_v52 = vand.u32 2147483647, %v3615_v27  ;;  %v3628_v31 = vmul.f32 0.5, %v3545_v38 }
 0x1a1   : > { %v3624_v26 = vpop.eup %2612  ;;  %v1522_v35 = vmul.f32 %v3574_v29, %v1490_v33  ;;  %v1335_v25 = vmul.f32 1.0614054, %v3618_v32  ;;  %2620 = vrcp.f32 %v1240_v4  ;;  %v1373_v24 = vadd.f32 -1.4531521, %v1341_v30 }
 0x1a2   : > { %v1337_v61 = vmul.f32 1.0614054, %v3624_v26  ;;  %2622 = vpow2.f32 %v1700_v2  ;;  %v1211_v14 = vmul.f32 0.3275911, %v1179_v52  ;;  %v3633_v40 = vmul.f32 %v1908_v49, %v3335_v11 }
 0x1a3   : > { %v1554_v5 = vadd.f32 0.2548296, %v1522_v35  ;;  %v1367_v50 = vadd.f32 -1.4531521, %v1335_v25  ;;  %v1656_v41 = vmul.f32 %v1624_v10, %v1176_v55  ;;  %vm1810_vm8 = vcmp.lt.f32.partialorder %v3498_v17, 0.0  ;;  %v4166_v35 = vld [vmem:[#allocation13_spill] sm:$0xff] }
 0x1a4   : > { %v1369_v8 = vadd.f32 -1.4531521, %v1337_v61  ;;  %v1694_v60 = vmul.f32 1.442695, %v1654_v42  ;;  %v1243_v38 = vadd.f32 1.0, %v1211_v14  ;;  %v1405_v57 = vmul.f32 %v3458_v62, %v1373_v24  ;;  %v4165_v42 = vld [vmem:[#allocation2_spill] sm:$0xff] }
 0x1a5   : > { %v1586_v19 = vmul.f32 %v3574_v29, %v1554_v5  ;;  %v1399_v7 = vmul.f32 %v3618_v32, %v1367_v50  ;;  %v1627_v22 = vsub.f32 0.0, %v1179_v52  ;;  %v954_v53 = vmul.f32 %v3579_v28, %v3197_v37  ;;  %v2615_v16 = vpop.eup %2614 }
 0x1a6   : > { %v1401_v11 = vmul.f32 %v3624_v26, %v1369_v8  ;;  %2624 = vrcp.f32 %v1243_v38  ;;  %v1437_v55 = vadd.f32 1.4214138, %v1405_v57  ;;  %v1340_v2 = vmul.f32 1.0614054, %v3413_v0 }
 0x1a7   : > { %v1746_v51 = vmul.f32 %v2615_v16, %v1586_v19  ;;  %v1431_v49 = vadd.f32 1.4214138, %v1399_v7  ;;  %v1698_v43 = vmul.f32 1.442695, %v1656_v41  ;;  %v3643_v33 = vadd.f32 %v1023_v1, %v954_v53  ;;  %v4167_v19 = vld [vmem:[#allocation3_spill] sm:$0xff] }
 0x1a8   : > { %v2617_v4 = vpop.eup %2616  ;;  %v1433_v29 = vadd.f32 1.4214138, %v1401_v11  ;;  %v1469_v10 = vmul.f32 %v3458_v62, %v1437_v55  ;;  %v1372_v30 = vadd.f32 -1.4531521, %v1340_v2  ;;  %v3648_v37 = vmul.f32 %v4166_v35, %v4165_v42 }
 0x1a9   : > { %v1778_v28 = vsub.f32 1.0, %v1746_v51  ;;  %v1463_v25 = vmul.f32 %v3618_v32, %v1431_v49  ;;  %2626 = vpow2.f32 %v1694_v60  ;;  %v1659_v61 = vmul.f32 %v1627_v22, %v1179_v52 }
 0x1aa   : > { %v3651_v14 = vpop.eup %2618  ;;  %v1465_v24 = vmul.f32 %v3624_v26, %v1433_v29  ;;  %v1501_v1 = vadd.f32 -0.28449672, %v1469_v10  ;;  %v3655_v5 = vmul.f32 0.70710677, %v3643_v33  ;;  %v1404_v50 = vmul.f32 %v3413_v0, %v1372_v30 }
 0x1ab   : > { %v3658_v41 = vpop.eup %2620  ;;  %v1842_v8 = vsub.f32 0.0, %v1778_v28  ;;  %v1495_v38 = vadd.f32 -0.28449672, %v1463_v25  ;;  %v1334_v57 = vmul.f32 1.0614054, %v3651_v14  ;;  %v3663_v60 = vmul.f32 %v4166_v35, %v4167_v19 }
 0x1ac   : > { %v2623_v52 = vpop.eup %2622  ;;  %v1497_v7 = vadd.f32 -0.28449672, %v1465_v24  ;;  %v1336_v22 = vmul.f32 1.0614054, %v3658_v41  ;;  %v1533_v53 = vmul.f32 %v3458_v62, %v1501_v1  ;;  %v3668_v16 = vand.u32 2147483647, %v3655_v5 }
 0x1ad   : > { %v1874_v11 = vsel %vm1810_vm8, %v1842_v8, %v1778_v28  ;;  %v1527_v55 = vmul.f32 %v3618_v32, %v1495_v38  ;;  %v1366_v2 = vadd.f32 -1.4531521, %v1334_v57  ;;  %v1436_v51 = vadd.f32 1.4214138, %v1404_v50 }
 0x1ae   : > { %v1906_v49 = vadd.f32 1.0, %v1874_v11  ;;  %v1529_v29 = vmul.f32 %v3624_v26, %v1497_v7  ;;  %v1368_v10 = vadd.f32 -1.4531521, %v1336_v22  ;;  %v1565_v30 = vadd.f32 0.2548296, %v1533_v53 }
 0x1af   : > { %v1559_v42 = vadd.f32 0.2548296, %v1527_v55  ;;  %v1398_v35 = vmul.f32 %v3651_v14, %v1366_v2  ;;  %v1210_v25 = vmul.f32 0.3275911, %v3668_v16  ;;  %v1468_v24 = vmul.f32 %v3413_v0, %v1436_v51 }
 0x1b0   : > { %v3677_v1 = vpop.eup %2624  ;;  %v1938_v17 = vmul.f32 %v1906_v49, %v3602_v45  ;;  %v1561_v28 = vadd.f32 0.2548296, %v1529_v29  ;;  %vm1815_vm9 = vcmp.lt.f32.partialorder %v3549_v13, 0.0  ;;  %v1400_v50 = vmul.f32 %v3658_v41, %v1368_v10 }
 0x1b1   : > { %v1597_v8 = vmul.f32 %v3458_v62, %v1565_v30  ;;  %v1591_v38 = vmul.f32 %v3618_v32, %v1559_v42  ;;  %vm1817_vm10 = vcmp.lt.f32.partialorder %v3557_v58, 0.0  ;;  %v1430_v57 = vadd.f32 1.4214138, %v1398_v35 }
 0x1b2   : > { %v1339_v19 = vmul.f32 1.0614054, %v3677_v1  ;;  %v1242_v7 = vadd.f32 1.0, %v1210_v25  ;;  %v1984_v22 = vpack.c.bf16 %v3633_v40, %v1938_v17  ;;  %v1593_v53 = vmul.f32 %v3624_v26, %v1561_v28 }
 0x1b3   : > { %v1432_v45 = vadd.f32 1.4214138, %v1400_v50  ;;  %2628 = vpow2.f32 %v1698_v43  ;;  %v2627_v11 = vpop.eup %2626  ;;  %v1751_v55 = vmul.f32 %v2617_v4, %v1591_v38  ;;  %v1462_v2 = vmul.f32 %v3651_v14, %v1430_v57  ;;  %v905_v57 = vpop.permute.xlu0 %904 }
 0x1b4   : > { %v1371_v51 = vadd.f32 -1.4531521, %v1339_v19  ;;  %2630 = vrcp.f32 %v1242_v7  ;;  %2049 = vmatpush1.bf16.msra.mxu0 %v1984_v22  ;;  %2497 = vmatpush1.bf16.msra.mxu1 %v1984_v22  ;;  %v1753_v62 = vmul.f32 %v2623_v52, %v1593_v53  ;;  %v1704_v49 = vmul.f32 1.442695, %v1659_v61 }
 0x1b5   : > { %v1464_v32 = vmul.f32 %v3658_v41, %v1432_v45  ;;  %v1500_v29 = vadd.f32 -0.28449672, %v1468_v24  ;;  %v1783_v10 = vsub.f32 1.0, %v1751_v55  ;;  %v1494_v30 = vadd.f32 -0.28449672, %v1462_v2 }
 0x1b6   : > { %v1403_v40 = vmul.f32 %v3677_v1, %v1371_v51  ;;  %v3692_v26 = vmul.f32 %v3461_v48, %v1597_v8  ;;  %v1785_v43 = vsub.f32 1.0, %v1753_v62  ;;  %v3695_v4 = vmul.f32 0.5, %v3577_v36 }
 0x1b7   : > { %v1496_v42 = vadd.f32 -0.28449672, %v1464_v32  ;;  %v1532_v35 = vmul.f32 %v3413_v0, %v1500_v29  ;;  %v1847_v25 = vsub.f32 0.0, %v1783_v10  ;;  %v3699_v52 = vmul.f32 0.5, %v3583_v46  ;;  %v4168_v29 = vld [vmem:[#allocation12_spill] sm:$0xff] }
 0x1b8   : > { %v1526_v61 = vmul.f32 %v3651_v14, %v1494_v30  ;;  %v1435_v24 = vadd.f32 1.4214138, %v1403_v40  ;;  %v1849_v17 = vsub.f32 0.0, %v1785_v43  ;;  %2632 = vpow2.f32 %v1704_v49 }
 0x1b9   : > { %v1528_v28 = vmul.f32 %v3658_v41, %v1496_v42  ;;  %v1626_v48 = vsub.f32 0.0, %v3668_v16  ;;  %v1879_v36 = vsel %vm1815_vm9, %v1847_v25, %v1783_v10  ;;  %v1789_v38 = vsub.f32 1.0, %v3692_v26 }
 0x1ba   : > { %v1558_v50 = vadd.f32 0.2548296, %v1526_v61  ;;  %v1467_v8 = vmul.f32 %v3677_v1, %v1435_v24  ;;  %v1881_v46 = vsel %vm1817_vm10, %v1849_v17, %v1785_v43  ;;  %v1911_v19 = vadd.f32 1.0, %v1879_v36 }
 0x1bb   : > { %v1560_v7 = vadd.f32 0.2548296, %v1528_v28  ;;  %v1564_v22 = vadd.f32 0.2548296, %v1532_v35  ;;  %v1913_v53 = vadd.f32 1.0, %v1881_v46  ;;  %vm1814_vm11 = vcmp.lt.f32.partialorder %v3595_v44, 0.0  ;;  %v1033_v35 = vpop.permute.xlu0 %1032 }
 0x1bc   : > { %v1590_v45 = vmul.f32 %v3651_v14, %v1558_v50  ;;  %v1499_v55 = vadd.f32 -0.28449672, %v1467_v8  ;;  %v1943_v2 = vmul.f32 %v1911_v19, %v3621_v18  ;;  %vm1816_vm12 = vcmp.lt.f32.partialorder %v3599_v3, 0.0  ;;  %v4170_v8 = vld [vmem:[#allocation15_spill] sm:$0xff] }
 0x1bd   : > { %v2629_v13 = vpop.eup %2628  ;;  %v1592_v51 = vmul.f32 %v3658_v41, %v1560_v7  ;;  %v1658_v62 = vmul.f32 %v1626_v48, %v3668_v16  ;;  %v1945_v32 = vmul.f32 %v1913_v53, %v3628_v31  ;;  %v1117_v10 = vmul.f32 0.5, %v4168_v29  ;;  %v4171_v46 = vld [vmem:[#allocation7_spill] sm:$0xff] }
 0x1be   : > { %v3716_v58 = vpop.eup %2630  ;;  %v1750_v49 = vmul.f32 %v2627_v11, %v1590_v45  ;;  %v1531_v14 = vmul.f32 %v3677_v1, %v1499_v55  ;;  %v1853_v40 = vsub.f32 0.0, %v1789_v38  ;;  %v1596_v18 = vmul.f32 %v3413_v0, %v1564_v22  ;;  %v4169_v11 = vld [vmem:[#allocation4_spill] sm:$0xff]  ;;  %v4173_v3 = vld [vmem:[#allocation11_spill] sm:$0xff] }
 0x1bf   : > { %v1752_v30 = vmul.f32 %v2629_v13, %v1592_v51  ;;  %v1338_v26 = vmul.f32 1.0614054, %v3716_v58  ;;  %v1987_v41 = vpack.c.bf16 %v1945_v32, %v1943_v2  ;;  %v959_v16 = vmul.f32 %v905_v57, %v3648_v37  ;;  %v4172_v51 = vld [vmem:[#allocation8_spill] sm:$0xff] }
 0x1c0   : > { %v1782_v43 = vsub.f32 1.0, %v1750_v49  ;;  %v1563_v42 = vadd.f32 0.2548296, %v1531_v14  ;;  %v1702_v31 = vmul.f32 1.442695, %v1658_v62  ;;  %v961_v24 = vmul.f32 %v4169_v11, %v3663_v60 }
 0x1c1   : > { %v1784_v25 = vsub.f32 1.0, %v1752_v30  ;;  %v1370_v61 = vadd.f32 -1.4531521, %v1338_v26  ;;  %2050 = vmatprep.subr.bf16.mxu0 %v1987_v41  ;;  %2490 = vmatprep.subr.bf16.mxu1 %v1987_v41  ;;  %v1115_v28 = vmul.f32 0.5, %v3611_v34  ;;  %v3728_v0 = vadd.f32 %v1033_v35, %v959_v16  ;;  %v4174_v30 = vld [vmem:[#allocation9_spill] sm:$0xff] }
 0x1c2   : > { %v1846_v17 = vsub.f32 0.0, %v1782_v43  ;;  %v1595_v48 = vmul.f32 %v3677_v1, %v1563_v42  ;;  %v2633_v36 = vpop.eup %2632  ;;  %vm1821_vm13 = vcmp.lt.f32.partialorder %v4170_v8, 0.0  ;;  %v3733_v19 = vadd.f32 %v4171_v46, %v961_v24 }
 0x1c3   : > { %v1848_v50 = vsub.f32 0.0, %v1784_v25  ;;  %v1402_v37 = vmul.f32 %v3716_v58, %v1370_v61  ;;  %v1885_v22 = vsel %vm1821_vm13, %v1853_v40, %v1789_v38  ;;  %v1756_v34 = vmul.f32 %v3455_v9, %v1596_v18 }
 0x1c4   : > { %v1878_v60 = vsel %vm1814_vm11, %v1846_v17, %v1782_v43  ;;  %v1755_v7 = vmul.f32 %v2633_v36, %v1595_v48  ;;  %2634 = vpow2.f32 %v1702_v31  ;;  %v3741_v2 = vmul.f32 0.70710677, %v3728_v0  ;;  %v915_v31 = vpop.permute.xlu0 %914 }
 0x1c5   : > { %v1880_v1 = vsel %vm1816_vm12, %v1848_v50, %v1784_v25  ;;  %v1910_v53 = vadd.f32 1.0, %v1878_v60  ;;  %v1434_v45 = vadd.f32 1.4214138, %v1402_v37  ;;  %v958_v62 = vmul.f32 %v905_v57, %v4172_v51  ;;  %v4176_v51 = vld [vmem:[#allocation14_spill] sm:$0xff] }
 0x1c6   : > { %v1912_v55 = vadd.f32 1.0, %v1880_v1  ;;  %v1787_v13 = vsub.f32 1.0, %v1755_v7  ;;  %v1917_v32 = vadd.f32 1.0, %v1885_v22  ;;  %v3747_v9 = vmul.f32 0.70710677, %v3733_v19  ;;  %v4175_v7 = vld [vmem:[#allocation16_spill] sm:$0xff] }
 0x1c7   : > { %v1942_v44 = vmul.f32 %v1910_v53, %v3695_v4  ;;  %v1466_v38 = vmul.f32 %v3716_v58, %v1434_v45  ;;  %vm1820_vm14 = vcmp.lt.f32.partialorder %v4173_v3, 0.0  ;;  %v1183_v14 = vand.u32 2147483647, %v3741_v2 }
 0x1c8   : > { %v1944_v49 = vmul.f32 %v1912_v55, %v3699_v52  ;;  %v1851_v29 = vsub.f32 0.0, %v1787_v13  ;;  %v960_v40 = vmul.f32 %v4169_v11, %v4174_v30  ;;  %vm1819_vm15 = vcmp.lt.f32.partialorder %v3615_v27, 0.0 }
 0x1c9   : > { %v1498_v57 = vadd.f32 -0.28449672, %v1466_v38  ;;  %v1788_v4 = vsub.f32 1.0, %v1756_v34  ;;  %v1185_v26 = vand.u32 2147483647, %v3747_v9  ;;  %v3756_v42 = vadd.f32 %v1033_v35, %v958_v62 }
 0x1ca   : > { %v1986_v18 = vpack.c.bf16 %v1944_v49, %v1942_v44  ;;  %v1883_v41 = vsel %vm1819_vm15, %v1851_v29, %v1787_v13  ;;  %v1215_v43 = vmul.f32 0.3275911, %v1183_v14  ;;  %v1949_v25 = vmul.f32 %v1917_v32, %v1117_v10 }
 0x1cb   : > { %v1915_v16 = vadd.f32 1.0, %v1883_v41  ;;  %v1530_v52 = vmul.f32 %v3716_v58, %v1498_v57  ;;  %v1217_v61 = vmul.f32 0.3275911, %v1185_v26  ;;  %v1228_v24 = vmul.f32 0.3275911, %v3586_v39 }
 0x1cc   : > { %2051 = vmatpush1.bf16.msra.mxu0 %v1986_v18  ;;  %2498 = vmatpush1.bf16.msra.mxu1 %v1986_v18  ;;  %v1247_v27 = vadd.f32 1.0, %v1215_v43  ;;  %v1631_v11 = vsub.f32 0.0, %v1183_v14  ;;  %v3761_v17 = vadd.f32 %v4171_v46, %v960_v40  ;;  %v1852_v50 = vsub.f32 0.0, %v1788_v4 }
 0x1cd   : > { %v1947_v48 = vmul.f32 %v1915_v16, %v1115_v28  ;;  %v1562_v36 = vadd.f32 0.2548296, %v1530_v52  ;;  %v1249_v35 = vadd.f32 1.0, %v1217_v61  ;;  %v1261_v8 = vadd.f32 1.0, %v3589_v15 }
 0x1ce   : > { %2636 = vrcp.f32 %v1247_v27  ;;  %v1633_v10 = vsub.f32 0.0, %v1185_v26  ;;  %v3765_v37 = vmul.f32 0.70710677, %v3756_v42  ;;  %v2635_v60 = vpop.eup %2634  ;;  %v3768_v22 = vmul.f32 0.5, %v4175_v7 }
 0x1cf   : > { %v1989_v34 = vpack.c.bf16 %v1949_v25, %v1947_v48  ;;  %v1594_v1 = vmul.f32 %v3716_v58, %v1562_v36  ;;  %2638 = vrcp.f32 %v1249_v35  ;;  %v1644_v28 = vsub.f32 0.0, %v3586_v39  ;;  %v1043_v58 = vpop.permute.xlu0 %1042 }
 0x1d0   : > { %v1663_v46 = vmul.f32 %v1631_v11, %v1183_v14  ;;  %v3773_v53 = vmul.f32 0.70710677, %v3761_v17  ;;  %v1182_v15 = vand.u32 2147483647, %v3765_v37  ;;  %v3776_v45 = vadd.f32 1.0, %v1228_v24  ;;  %v4177_v11 = vld [vmem:[#allocation18_spill] sm:$0xff] }
 0x1d1   : > { %2052 = vmatprep.subr.bf16.mxu0 %v1989_v34  ;;  %2491 = vmatprep.subr.bf16.mxu1 %v1989_v34  ;;  %v1754_v55 = vmul.f32 %v2635_v60, %v1594_v1  ;;  %v1884_v13 = vsel %vm1820_vm14, %v1852_v50, %v1788_v4  ;;  %v963_v62 = vmul.f32 %v915_v31, %v4176_v51  ;;  %2640 = vrcp.f32 %v1261_v8 }
 0x1d2   : > { %v1665_v44 = vmul.f32 %v1633_v10, %v1185_v26  ;;  %v1184_v32 = vand.u32 2147483647, %v3773_v53  ;;  %v1214_v38 = vmul.f32 0.3275911, %v1182_v15  ;;  %v1114_v49 = vmul.f32 0.5, %v3643_v33 }
 0x1d3   : > { %v1786_v29 = vsub.f32 1.0, %v1754_v55  ;;  %v3783_v14 = vadd.f32 %v1043_v58, %v963_v62  ;;  %v1349_v30 = vmul.f32 1.0614054, %v3524_v59  ;;  %v1916_v40 = vadd.f32 1.0, %v1884_v13 }
 0x1d4   : > { %v1712_v57 = vmul.f32 1.442695, %v1663_v46  ;;  %v1216_v18 = vmul.f32 0.3275911, %v1184_v32  ;;  %v1246_v3 = vadd.f32 1.0, %v1214_v38  ;;  %vm1818_vm0 = vcmp.lt.f32.partialorder %v3655_v5, 0.0 }
 0x1d5   : > { %v1850_v4 = vsub.f32 0.0, %v1786_v29  ;;  %v3788_v41 = vmul.f32 0.70710677, %v3783_v14  ;;  %v1381_v26 = vadd.f32 -1.4531521, %v1349_v30  ;;  %v3791_v43 = vmul.f32 0.5, %v3728_v0 }
 0x1d6   : > { %v1716_v33 = vmul.f32 1.442695, %v1665_v44  ;;  %v1248_v16 = vadd.f32 1.0, %v1216_v18  ;;  %2642 = vrcp.f32 %v1246_v3  ;;  %v3794_v52 = vmul.f32 0.5, %v3733_v19  ;;  %v4178_v0 = vld [vmem:[#allocation10_spill] sm:$0xff] }
 0x1d7   : > { %v1882_v25 = vsel %vm1818_vm0, %v1850_v4, %v1786_v29  ;;  %v3797_v61 = vand.u32 2147483647, %v3788_v41  ;;  %v1413_v5 = vmul.f32 %v3524_v59, %v1381_v26  ;;  %v1948_v48 = vmul.f32 %v1916_v40, %v4177_v11  ;;  %v4179_v4 = vld [vmem:[#allocation5_spill] sm:$0xff] }
 0x1d8   : > { %v3800_v24 = vpop.eup %2636  ;;  %v1914_v27 = vadd.f32 1.0, %v1882_v25  ;;  %2644 = vrcp.f32 %v1248_v16  ;;  %v962_v36 = vmul.f32 %v915_v31, %v4178_v0  ;;  %v1630_v7 = vsub.f32 0.0, %v1182_v15 }
 0x1d9   : > { %v3804_v50 = vpop.eup %2638  ;;  %v1343_v35 = vmul.f32 1.0614054, %v3800_v24  ;;  %2646 = vpow2.f32 %v1712_v57  ;;  %v1219_v19 = vmul.f32 0.3275911, %v3797_v61  ;;  %v1445_v8 = vadd.f32 1.4214138, %v1413_v5 }
 0x1da   : > { %v1946_v10 = vmul.f32 %v1914_v27, %v1114_v49  ;;  %v1345_v60 = vmul.f32 1.0614054, %v3804_v50  ;;  %2648 = vpow2.f32 %v1716_v33  ;;  %v3810_v55 = vadd.f32 %v1043_v58, %v962_v36 }
 0x1db   : > { %v1375_v34 = vadd.f32 -1.4531521, %v1343_v35  ;;  %v1251_v1 = vadd.f32 1.0, %v1219_v19  ;;  %v1477_v46 = vmul.f32 %v3524_v59, %v1445_v8  ;;  %v3812_v31 = vpop.eup %2640  ;;  %v1632_v62 = vsub.f32 0.0, %v1184_v32 }
 0x1dc   : > { %v1988_v13 = vpack.c.bf16 %v1948_v48, %v1946_v10  ;;  %v1377_v51 = vadd.f32 -1.4531521, %v1345_v60  ;;  %v1348_v44 = vmul.f32 1.0614054, %v3468_v20  ;;  %v3817_v49 = vmul.f32 0.5, %v3756_v42  ;;  %v4180_v42 = vld [vmem:[#allocation6_spill] sm:$0xff] }
 0x1dd   : > { %v1407_v38 = vmul.f32 %v3800_v24, %v1375_v34  ;;  %2650 = vrcp.f32 %v1251_v1  ;;  %v1509_v29 = vadd.f32 -0.28449672, %v1477_v46  ;;  %v1662_v58 = vmul.f32 %v1630_v7, %v1182_v15 }
 0x1de   : > { %2053 = vmatpush1.bf16.msra.mxu0 %v1988_v13  ;;  %2499 = vmatpush1.bf16.msra.mxu1 %v1988_v13  ;;  %v1409_v30 = vmul.f32 %v3804_v50, %v1377_v51  ;;  %v3821_v40 = vmul.f32 0.70710677, %v3810_v55  ;;  %v1380_v57 = vadd.f32 -1.4531521, %v1348_v44  ;;  %v3826_v26 = vmul.f32 %v3429_v12, %v4179_v4 }
 0x1df   : > { %v1439_v18 = vadd.f32 1.4214138, %v1407_v38  ;;  %v1541_v3 = vmul.f32 %v3524_v59, %v1509_v29  ;;  %v3830_v33 = vmul.f32 %v3429_v12, %v4180_v42  ;;  %v1664_v5 = vmul.f32 %v1632_v62, %v1184_v32 }
 0x1e0   : > { %v3832_v16 = vpop.eup %2642  ;;  %v1441_v25 = vadd.f32 1.4214138, %v1409_v30  ;;  %v1186_v15 = vand.u32 2147483647, %v3821_v40  ;;  %v1412_v27 = vmul.f32 %v3468_v20, %v1380_v57  ;;  %v1635_v36 = vsub.f32 0.0, %v3797_v61 }
 0x1e1   : > { %v1471_v11 = vmul.f32 %v3800_v24, %v1439_v18  ;;  %v1342_v48 = vmul.f32 1.0614054, %v3832_v16  ;;  %v1573_v0 = vadd.f32 0.2548296, %v1541_v3  ;;  %v1710_v19 = vmul.f32 1.442695, %v1662_v58 }
 0x1e2   : > { %v3839_v35 = vpop.eup %2644  ;;  %v1473_v12 = vmul.f32 %v3804_v50, %v1441_v25  ;;  %v1218_v8 = vmul.f32 0.3275911, %v1186_v15  ;;  %v1444_v10 = vadd.f32 1.4214138, %v1412_v27  ;;  %v1714_v51 = vmul.f32 1.442695, %v1664_v5 }
 0x1e3   : > { %v2647_v60 = vpop.eup %2646  ;;  %v1503_v32 = vadd.f32 -0.28449672, %v1471_v11  ;;  %v1344_v7 = vmul.f32 1.0614054, %v3839_v35  ;;  %v1374_v34 = vadd.f32 -1.4531521, %v1342_v48  ;;  %v1605_v1 = vmul.f32 %v3524_v59, %v1573_v0 }
 0x1e4   : > { %v2649_v46 = vpop.eup %2648  ;;  %v1505_v13 = vadd.f32 -0.28449672, %v1473_v12  ;;  %v1250_v62 = vadd.f32 1.0, %v1218_v8  ;;  %v1476_v44 = vmul.f32 %v3468_v20, %v1444_v10  ;;  %v1667_v58 = vmul.f32 %v1635_v36, %v3797_v61 }
 0x1e5   : > { %v1535_v38 = vmul.f32 %v3800_v24, %v1503_v32  ;;  %v1376_v29 = vadd.f32 -1.4531521, %v1344_v7  ;;  %v1406_v30 = vmul.f32 %v3832_v16, %v1374_v34  ;;  %v1634_v3 = vsub.f32 0.0, %v1186_v15  ;;  %v3862_v32 = vpop.permute.xlu0 %924 }
 0x1e6   : > { %v1537_v57 = vmul.f32 %v3804_v50, %v1505_v13  ;;  %2652 = vrcp.f32 %v1250_v62  ;;  %v1508_v18 = vadd.f32 -0.28449672, %v1476_v44  ;;  %v3853_v5 = vmul.f32 %v3527_v21, %v1605_v1 }
 0x1e7   : > { %v3849_v4 = vpop.eup %2650  ;;  %v1567_v59 = vadd.f32 0.2548296, %v1535_v38  ;;  %v1408_v42 = vmul.f32 %v3839_v35, %v1376_v29  ;;  %v1438_v25 = vadd.f32 1.4214138, %v1406_v30  ;;  %vm1823_vm1 = vcmp.lt.f32.partialorder %v3741_v2, 0.0 }
 0x1e8   : > { %v1569_v27 = vadd.f32 0.2548296, %v1537_v57  ;;  %2654 = vpow2.f32 %v1710_v19  ;;  %v1347_v61 = vmul.f32 1.0614054, %v3849_v4  ;;  %v1540_v11 = vmul.f32 %v3468_v20, %v1508_v18 }
 0x1e9   : > { %v1599_v48 = vmul.f32 %v3800_v24, %v1567_v59  ;;  %vm1825_vm2 = vcmp.lt.f32.partialorder %v3747_v9, 0.0  ;;  %v1440_v0 = vadd.f32 1.4214138, %v1408_v42  ;;  %v1470_v36 = vmul.f32 %v3832_v16, %v1438_v25  ;;  %v4181_v25 = vld [vmem:[#allocation25_spill] sm:$0xff] }
 0x1ea   : > { %v1720_v12 = vmul.f32 1.442695, %v1667_v58  ;;  %v1601_v8 = vmul.f32 %v3804_v50, %v1569_v27  ;;  %2656 = vpow2.f32 %v1714_v51  ;;  %v1379_v21 = vadd.f32 -1.4531521, %v1347_v61  ;;  %v3881_v27 = vpop.permute.xlu0 %1052 }
 0x1eb   : > { %v1666_v10 = vmul.f32 %v1634_v3, %v1186_v15  ;;  %v1759_v19 = vmul.f32 %v2647_v60, %v1599_v48  ;;  %v1472_v7 = vmul.f32 %v3839_v35, %v1440_v0  ;;  %v1502_v34 = vadd.f32 -0.28449672, %v1470_v36 }
 0x1ec   : > { %v1797_v1 = vsub.f32 1.0, %v3853_v5  ;;  %v1761_v24 = vmul.f32 %v2649_v46, %v1601_v8  ;;  %v3867_v13 = vmul.f32 0.5, %v3761_v17  ;;  %v1411_v62 = vmul.f32 %v3849_v4, %v1379_v21 }
 0x1ed   : > { %v1572_v44 = vadd.f32 0.2548296, %v1540_v11  ;;  %v1791_v38 = vsub.f32 1.0, %v1759_v19  ;;  %v1504_v50 = vadd.f32 -0.28449672, %v1472_v7  ;;  %v1534_v51 = vmul.f32 %v3832_v16, %v1502_v34  ;;  %v4182_v34 = vld [vmem:[#allocation26_spill] sm:$0xff] }
 0x1ee   : > { %2658 = vpow2.f32 %v1720_v12  ;;  %v1793_v15 = vsub.f32 1.0, %v1761_v24  ;;  %v1443_v29 = vadd.f32 1.4214138, %v1411_v62  ;;  %v1718_v60 = vmul.f32 1.442695, %v1666_v10 }
 0x1ef   : > { %v967_v30 = vmul.f32 %v3862_v32, %v3826_v26  ;;  %v1855_v58 = vsub.f32 0.0, %v1791_v38  ;;  %v1536_v46 = vmul.f32 %v3839_v35, %v1504_v50  ;;  %v1566_v57 = vadd.f32 0.2548296, %v1534_v51 }
 0x1f0   : > { %v1861_v17 = vsub.f32 0.0, %v1797_v1  ;;  %v3874_v18 = vpop.eup %2652  ;;  %v1857_v3 = vsub.f32 0.0, %v1793_v15  ;;  %vm1822_vm3 = vcmp.lt.f32.partialorder %v3765_v37, 0.0  ;;  %v1475_v59 = vmul.f32 %v3849_v4, %v1443_v29 }
 0x1f1   : > { %v1604_v42 = vmul.f32 %v3468_v20, %v1572_v44  ;;  %v969_v5 = vmul.f32 %v4181_v25, %v3830_v33  ;;  %v1887_v26 = vsel %vm1823_vm1, %v1855_v58, %v1791_v38  ;;  %v1568_v61 = vadd.f32 0.2548296, %v1536_v46  ;;  %v4184_v46 = vld [vmem:[#allocation17_spill] sm:$0xff] }
 0x1f2   : > { %v1598_v11 = vmul.f32 %v3832_v16, %v1566_v57  ;;  %v1346_v48 = vmul.f32 1.0614054, %v3874_v18  ;;  %v2655_v0 = vpop.eup %2654  ;;  %v1889_v36 = vsel %vm1825_vm2, %v1857_v3, %v1793_v15  ;;  %v1919_v12 = vadd.f32 1.0, %v1887_v26 }
 0x1f3   : > { %vm1824_vm4 = vcmp.lt.f32.partialorder %v3773_v53, 0.0  ;;  %v1507_v20 = vadd.f32 -0.28449672, %v1475_v59  ;;  %v3891_v33 = vadd.f32 %v3881_v27, %v967_v30  ;;  %v1921_v8 = vadd.f32 1.0, %v1889_v36 }
 0x1f4   : > { %v1600_v2 = vmul.f32 %v3839_v35, %v1568_v61  ;;  %v1758_v21 = vmul.f32 %v2655_v0, %v1598_v11  ;;  %v1378_v10 = vadd.f32 -1.4531521, %v1346_v48  ;;  %v2657_v19 = vpop.eup %2656  ;;  %v1951_v16 = vmul.f32 %v1919_v12, %v3791_v43  ;;  %v4183_v35 = vld [vmem:[#allocation23_spill] sm:$0xff] }
 0x1f5   : > { %v1539_v7 = vmul.f32 %v3849_v4, %v1507_v20  ;;  %v1764_v9 = vmul.f32 %v3487_v47, %v1604_v42  ;;  %v3898_v24 = vadd.f32 %v4182_v34, %v969_v5  ;;  %v1953_v62 = vmul.f32 %v1921_v8, %v3794_v52  ;;  %v4185_v0 = vld [vmem:[#allocation19_spill] sm:$0xff] }
 0x1f6   : > { %v1760_v44 = vmul.f32 %v2657_v19, %v1600_v2  ;;  %v1790_v38 = vsub.f32 1.0, %v1758_v21  ;;  %v1410_v50 = vmul.f32 %v3874_v18, %v1378_v10  ;;  %vm1829_vm5 = vcmp.lt.f32.partialorder %v4183_v35, 0.0 }
 0x1f7   : > { %v1571_v51 = vadd.f32 0.2548296, %v1539_v7  ;;  %2660 = vpow2.f32 %v1718_v60  ;;  %v3904_v15 = vmul.f32 0.70710677, %v3891_v33  ;;  %v1991_v29 = vpack.c.bf16 %v1953_v62, %v1951_v16  ;;  %v3922_v7 = vpop.permute.xlu0 %934 }
 0x1f8   : > { %v2659_v43 = vpop.eup %2658  ;;  %v1792_v30 = vsub.f32 1.0, %v1760_v44  ;;  %v1854_v47 = vsub.f32 0.0, %v1790_v38  ;;  %v1442_v58 = vadd.f32 1.4214138, %v1410_v50  ;;  %vm1828_vm6 = vcmp.lt.f32.partialorder %v4184_v46, 0.0 }
 0x1f9   : > { %v1603_v52 = vmul.f32 %v3849_v4, %v1571_v51  ;;  %v1893_v57 = vsel %vm1829_vm5, %v1861_v17, %v1797_v1  ;;  %v3909_v3 = vmul.f32 0.70710677, %v3898_v24  ;;  %v1191_v59 = vand.u32 2147483647, %v3904_v15  ;;  %2054 = vmatprep.subr.bf16.mxu0 %v1991_v29  ;;  %2492 = vmatprep.subr.bf16.mxu1 %v1991_v29 }
 0x1fa   : > { %v1856_v60 = vsub.f32 0.0, %v1792_v30  ;;  %v1886_v42 = vsel %vm1822_vm3, %v1854_v47, %v1790_v38  ;;  %v1474_v5 = vmul.f32 %v3874_v18, %v1442_v58  ;;  %v1796_v26 = vsub.f32 1.0, %v1764_v9 }
 0x1fb   : > { %v1918_v61 = vadd.f32 1.0, %v1886_v42  ;;  %v1763_v11 = vmul.f32 %v2659_v43, %v1603_v52  ;;  %v1193_v48 = vand.u32 2147483647, %v3909_v3  ;;  %v1223_v4 = vmul.f32 0.3275911, %v1191_v59  ;;  %v4187_v43 = vld [vmem:[#allocation21_spill] sm:$0xff]  ;;  %v3943_v46 = vpop.permute.xlu0 %1062 }
 0x1fc   : > { %v1888_v1 = vsel %vm1824_vm4, %v1856_v60, %v1792_v30  ;;  %v1123_v17 = vmul.f32 0.5, %v3783_v14  ;;  %v1125_v36 = vmul.f32 0.5, %v4185_v0  ;;  %v1506_v12 = vadd.f32 -0.28449672, %v1474_v5  ;;  %v4186_v14 = vld [vmem:[#allocation20_spill] sm:$0xff] }
 0x1fd   : > { %v1920_v20 = vadd.f32 1.0, %v1888_v1  ;;  %v1950_v37 = vmul.f32 %v1918_v61, %v3817_v49  ;;  %v1795_v8 = vsub.f32 1.0, %v1763_v11  ;;  %v1225_v2 = vmul.f32 0.3275911, %v1193_v48  ;;  %v4188_v52 = vld [vmem:[#allocation24_spill] sm:$0xff] }
 0x1fe   : > { %v1925_v21 = vadd.f32 1.0, %v1893_v57  ;;  %v1538_v10 = vmul.f32 %v3874_v18, %v1506_v12  ;;  %v1860_v19 = vsub.f32 0.0, %v1796_v26  ;;  %v1255_v16 = vadd.f32 1.0, %v1223_v4 }
 0x1ff   : > { %v1952_v53 = vmul.f32 %v1920_v20, %v3867_v13  ;;  %v1859_v9 = vsub.f32 0.0, %v1795_v8  ;;  %v1257_v62 = vadd.f32 1.0, %v1225_v2  ;;  %v966_v44 = vmul.f32 %v3862_v32, %v4186_v14 }
 0x200   : > { %vm1827_vm7 = vcmp.lt.f32.partialorder %v3788_v41, 0.0  ;;  %v1570_v38 = vadd.f32 0.2548296, %v1538_v10  ;;  %2662 = vrcp.f32 %v1255_v16  ;;  %v1639_v49 = vsub.f32 0.0, %v1191_v59 }
 0x201   : > { %v2661_v50 = vpop.eup %2660  ;;  %v1990_v51 = vpack.c.bf16 %v1952_v53, %v1950_v37  ;;  %v1891_v35 = vsel %vm1827_vm7, %v1859_v9, %v1795_v8  ;;  %2664 = vrcp.f32 %v1257_v62  ;;  %v968_v29 = vmul.f32 %v4181_v25, %v4187_v43 }
 0x202   : > { %v1923_v30 = vadd.f32 1.0, %v1891_v35  ;;  %v1957_v47 = vmul.f32 %v1925_v21, %v1125_v36  ;;  %v1602_v13 = vmul.f32 %v3874_v18, %v1570_v38  ;;  %v1892_v58 = vsel %vm1828_vm6, %v1860_v19, %v1796_v26 }
 0x203   : > { %2666 = vrcp.f32 %v3776_v45  ;;  %2055 = vmatpush1.bf16.msra.mxu0 %v1990_v51  ;;  %2500 = vmatpush1.bf16.msra.mxu1 %v1990_v51  ;;  %v3935_v41 = vadd.f32 %v3881_v27, %v966_v44  ;;  %v3938_v32 = vadd.f32 %v4182_v34, %v968_v29  ;;  %v971_v25 = vmul.f32 %v3922_v7, %v4188_v52 }
 0x204   : > { %v1955_v57 = vmul.f32 %v1923_v30, %v1123_v17  ;;  %v1762_v60 = vmul.f32 %v2661_v50, %v1602_v13  ;;  %v1641_v42 = vsub.f32 0.0, %v1193_v48  ;;  %v1357_v18 = vmul.f32 1.0614054, %v3812_v31 }
 0x205   : > { %v1924_v5 = vadd.f32 1.0, %v1892_v58  ;;  %v1671_v45 = vmul.f32 %v1639_v49, %v1191_v59  ;;  %v3946_v26 = vmul.f32 0.70710677, %v3935_v41  ;;  %v3949_v27 = vmul.f32 0.70710677, %v3938_v32 }
 0x206   : > { %v1993_v34 = vpack.c.bf16 %v1957_v47, %v1955_v57  ;;  %v1794_v61 = vsub.f32 1.0, %v1762_v60  ;;  %v3952_v11 = vadd.f32 %v3943_v46, %v971_v25  ;;  %v1389_v4 = vadd.f32 -1.4531521, %v1357_v18  ;;  %v4189_v60 = vld [vmem:[#allocation22_spill] sm:$0xff] }
 0x207   : > { %v1645_v1 = vsub.f32 0.0, %v3572_v23  ;;  %v1122_v17 = vmul.f32 0.5, %v3810_v55  ;;  %v3957_v0 = vand.u32 2147483647, %v3946_v26  ;;  %v3960_v59 = vand.u32 2147483647, %v3949_v27 }
 0x208   : > { %2056 = vmatprep.subr.bf16.mxu0 %v1993_v34  ;;  %2493 = vmatprep.subr.bf16.mxu1 %v1993_v34  ;;  %v1858_v36 = vsub.f32 0.0, %v1794_v61  ;;  %v1673_v12 = vmul.f32 %v1641_v42, %v1193_v48  ;;  %v3963_v20 = vmul.f32 0.70710677, %v3952_v11  ;;  %v1421_v37 = vmul.f32 %v3812_v31, %v1389_v4 }
 0x209   : > { %vm1826_vm8 = vcmp.lt.f32.partialorder %v3821_v40, 0.0  ;;  %v1956_v8 = vmul.f32 %v1924_v5, %v3768_v22  ;;  %v1222_v55 = vmul.f32 0.3275911, %v3957_v0  ;;  %v1224_v2 = vmul.f32 0.3275911, %v3960_v59 }
 0x20a   : > { %v3970_v21 = vpop.eup %2662  ;;  %v1890_v10 = vsel %vm1826_vm8, %v1858_v36, %v1794_v61  ;;  %v1728_v19 = vmul.f32 1.442695, %v1671_v45  ;;  %v1195_v16 = vand.u32 2147483647, %v3963_v20  ;;  %v1453_v48 = vadd.f32 1.4214138, %v1421_v37 }
 0x20b   : > { %v3973_v53 = vpop.eup %2664  ;;  %v1922_v9 = vadd.f32 1.0, %v1890_v10  ;;  %v1351_v62 = vmul.f32 1.0614054, %v3970_v21  ;;  %v1254_v14 = vadd.f32 1.0, %v1222_v55  ;;  %v1256_v40 = vadd.f32 1.0, %v1224_v2 }
 0x20c   : > { %v1353_v22 = vmul.f32 1.0614054, %v3973_v53  ;;  %v1732_v44 = vmul.f32 1.442695, %v1673_v12  ;;  %v1227_v38 = vmul.f32 0.3275911, %v1195_v16  ;;  %v1485_v35 = vmul.f32 %v3812_v31, %v1453_v48 }
 0x20d   : > { %v3977_v49 = vpop.eup %2666  ;;  %v1954_v50 = vmul.f32 %v1922_v9, %v1122_v17  ;;  %v1383_v51 = vadd.f32 -1.4531521, %v1351_v62  ;;  %2668 = vrcp.f32 %v1254_v14  ;;  %v1677_v43 = vmul.f32 %v1645_v1, %v3572_v23 }
 0x20e   : > { %v1385_v29 = vadd.f32 -1.4531521, %v1353_v22  ;;  %2670 = vrcp.f32 %v1256_v40  ;;  %v1259_v13 = vadd.f32 1.0, %v1227_v38  ;;  %v1676_v58 = vmul.f32 %v1644_v28, %v3586_v39 }
 0x20f   : > { %v1992_v30 = vpack.c.bf16 %v1956_v8, %v1954_v50  ;;  %v1415_v47 = vmul.f32 %v3970_v21, %v1383_v51  ;;  %2672 = vpow2.f32 %v1728_v19  ;;  %v1517_v57 = vadd.f32 -0.28449672, %v1485_v35 }
 0x210   : > { %v1417_v52 = vmul.f32 %v3973_v53, %v1385_v29  ;;  %2674 = vpow2.f32 %v1732_v44  ;;  %v970_v23 = vmul.f32 %v3922_v7, %v4189_v60  ;;  %v1740_v42 = vmul.f32 1.442695, %v1677_v43 }
 0x211   : > { %2057 = vmatpush1.bf16.msra.mxu0 %v1992_v30  ;;  %2501 = vmatpush1.bf16.msra.mxu1 %v1992_v30  ;;  %v1447_v25 = vadd.f32 1.4214138, %v1415_v47  ;;  %2676 = vrcp.f32 %v1259_v13  ;;  %v1356_v5 = vmul.f32 1.0614054, %v3977_v49  ;;  %v1638_v39 = vsub.f32 0.0, %v3957_v0 }
 0x212   : > { %v1449_v18 = vadd.f32 1.4214138, %v1417_v52  ;;  %v1640_v28 = vsub.f32 0.0, %v3960_v59  ;;  %v3993_v34 = vadd.f32 %v3943_v46, %v970_v23  ;;  %v1643_v4 = vsub.f32 0.0, %v1195_v16 }
 0x213   : > { %v1479_v45 = vmul.f32 %v3970_v21, %v1447_v25  ;;  %v1388_v1 = vadd.f32 -1.4531521, %v1356_v5  ;;  %v1738_v17 = vmul.f32 1.442695, %v1676_v58  ;;  %v1549_v36 = vmul.f32 %v3812_v31, %v1517_v57 }
 0x214   : > { %v1481_v61 = vmul.f32 %v3973_v53, %v1449_v18  ;;  %v3998_v12 = vmul.f32 0.70710677, %v3993_v34  ;;  %2678 = vpow2.f32 %v1740_v42  ;;  %v4001_v37 = vmul.f32 0.5, %v3891_v33 }
 0x215   : > { %v1511_v7 = vadd.f32 -0.28449672, %v1479_v45  ;;  %v1420_v55 = vmul.f32 %v3977_v49, %v1388_v1  ;;  %v1670_v10 = vmul.f32 %v1638_v39, %v3957_v0  ;;  %v1672_v19 = vmul.f32 %v1640_v28, %v3960_v59 }
 0x216   : > { %v1513_v8 = vadd.f32 -0.28449672, %v1481_v61  ;;  %v4010_v48 = vand.u32 2147483647, %v3998_v12  ;;  %v1675_v14 = vmul.f32 %v1643_v4, %v1195_v16  ;;  %2680 = vpow2.f32 %v1738_v17 }
 0x217   : > { %v4004_v46 = vpop.eup %2668  ;;  %v1543_v2 = vmul.f32 %v3970_v21, %v1511_v7  ;;  %v1452_v40 = vadd.f32 1.4214138, %v1420_v55  ;;  %v1581_v38 = vadd.f32 0.2548296, %v1549_v36  ;;  %v1726_v47 = vmul.f32 1.442695, %v1670_v10 }
 0x218   : > { %v4012_v9 = vpop.eup %2670  ;;  %v1545_v62 = vmul.f32 %v3973_v53, %v1513_v8  ;;  %v1350_v33 = vmul.f32 1.0614054, %v4004_v46  ;;  %v1226_v59 = vmul.f32 0.3275911, %v4010_v48  ;;  %v1730_v13 = vmul.f32 1.442695, %v1672_v19 }
 0x219   : > { %v1575_v22 = vadd.f32 0.2548296, %v1543_v2  ;;  %v1352_v44 = vmul.f32 1.0614054, %v4012_v9  ;;  %v2673_v50 = vpop.eup %2672  ;;  %v1484_v35 = vmul.f32 %v3977_v49, %v1452_v40  ;;  %v1736_v25 = vmul.f32 1.442695, %v1675_v14 }
 0x21a   : > { %v1577_v0 = vadd.f32 0.2548296, %v1545_v62  ;;  %v1382_v51 = vadd.f32 -1.4531521, %v1350_v33  ;;  %v2675_v43 = vpop.eup %2674  ;;  %v1258_v57 = vadd.f32 1.0, %v1226_v59  ;;  %v1613_v18 = vmul.f32 %v3812_v31, %v1581_v38 }
 0x21b   : > { %v1607_v29 = vmul.f32 %v3970_v21, %v1575_v22  ;;  %v1384_v30 = vadd.f32 -1.4531521, %v1352_v44  ;;  %v4020_v16 = vpop.eup %2676  ;;  %v1516_v45 = vadd.f32 -0.28449672, %v1484_v35  ;;  %vm1831_vm9 = vcmp.lt.f32.partialorder %v3904_v15, 0.0 }
 0x21c   : > { %v1609_v58 = vmul.f32 %v3973_v53, %v1577_v0  ;;  %v1414_v52 = vmul.f32 %v4004_v46, %v1382_v51  ;;  %v1355_v42 = vmul.f32 1.0614054, %v4020_v16  ;;  %2682 = vrcp.f32 %v1258_v57 }
 0x21d   : > { %v1767_v60 = vmul.f32 %v2673_v50, %v1607_v29  ;;  %v1416_v23 = vmul.f32 %v4012_v9, %v1384_v30  ;;  %2684 = vpow2.f32 %v1726_v47  ;;  %vm1833_vm10 = vcmp.lt.f32.partialorder %v3909_v3, 0.0 }
 0x21e   : > { %v1769_v5 = vmul.f32 %v2675_v43, %v1609_v58  ;;  %v1446_v21 = vadd.f32 1.4214138, %v1414_v52  ;;  %v1387_v61 = vadd.f32 -1.4531521, %v1355_v42  ;;  %v2679_v53 = vpop.eup %2678  ;;  %2686 = vpow2.f32 %v1730_v13 }
 0x21f   : > { %v1799_v39 = vsub.f32 1.0, %v1767_v60  ;;  %v1448_v28 = vadd.f32 1.4214138, %v1416_v23  ;;  %2688 = vpow2.f32 %v1736_v25  ;;  %v1773_v55 = vmul.f32 %v2679_v53, %v1613_v18 }
 0x220   : > { %v1801_v4 = vsub.f32 1.0, %v1769_v5  ;;  %v1478_v1 = vmul.f32 %v4004_v46, %v1446_v21  ;;  %v1419_v7 = vmul.f32 %v4020_v16, %v1387_v61  ;;  %v2681_v2 = vpop.eup %2680  ;;  %v1548_v15 = vmul.f32 %v3977_v49, %v1516_v45 }
 0x221   : > { %v1863_v17 = vsub.f32 0.0, %v1799_v39  ;;  %v1480_v31 = vmul.f32 %v4012_v9, %v1448_v28  ;;  %v1642_v3 = vsub.f32 0.0, %v4010_v48  ;;  %v1129_v22 = vmul.f32 0.5, %v3898_v24 }
 0x222   : > { %v1865_v36 = vsub.f32 0.0, %v1801_v4  ;;  %v1510_v8 = vadd.f32 -0.28449672, %v1478_v1  ;;  %v1451_v62 = vadd.f32 1.4214138, %v1419_v7  ;;  %v1805_v59 = vsub.f32 1.0, %v1773_v55 }
 0x223   : > { %v1895_v10 = vsel %vm1831_vm9, %v1863_v17, %v1799_v39  ;;  %v1512_v19 = vadd.f32 -0.28449672, %v1480_v31  ;;  %v1580_v30 = vadd.f32 0.2548296, %v1548_v15  ;;  %v1674_v58 = vmul.f32 %v1642_v3, %v4010_v48 }
 0x224   : > { %v1897_v33 = vsel %vm1833_vm10, %v1865_v36, %v1801_v4  ;;  %v1927_v14 = vadd.f32 1.0, %v1895_v10  ;;  %v1542_v40 = vmul.f32 %v4004_v46, %v1510_v8  ;;  %v1483_v50 = vmul.f32 %v4020_v16, %v1451_v62 }
 0x225   : > { %v1929_v44 = vadd.f32 1.0, %v1897_v33  ;;  %v1544_v38 = vmul.f32 %v4012_v9, %v1512_v19  ;;  %v1869_v42 = vsub.f32 0.0, %v1805_v59  ;;  %v1612_v45 = vmul.f32 %v3977_v49, %v1580_v30 }
 0x226   : > { %v1959_v0 = vmul.f32 %v1927_v14, %v4001_v37  ;;  %v1574_v51 = vadd.f32 0.2548296, %v1542_v40  ;;  %v1515_v29 = vadd.f32 -0.28449672, %v1483_v50  ;;  %v2683_v47 = vpop.eup %2682  ;;  %v1734_v48 = vmul.f32 1.442695, %v1674_v58 }
 0x227   : > { %v1961_v35 = vmul.f32 %v1929_v44, %v1129_v22  ;;  %v1576_v43 = vadd.f32 0.2548296, %v1544_v38  ;;  %v2685_v52 = vpop.eup %2684  ;;  %v1354_v60 = vmul.f32 1.0614054, %v2683_v47  ;;  %vm1837_vm11 = vcmp.lt.f32.partialorder %v3540_v63, 0.0 }
 0x228   : > { %v1606_v13 = vmul.f32 %v4004_v46, %v1574_v51  ;;  %v1547_v57 = vmul.f32 %v4020_v16, %v1515_v29  ;;  %v2687_v23 = vpop.eup %2686  ;;  %vm1830_vm12 = vcmp.lt.f32.partialorder %v3946_v26, 0.0  ;;  %v1901_v4 = vsel %vm1837_vm11, %v1869_v42, %v1805_v59  ;;  %v2546_v42 = vld [vmem:[%s4113_s4 + $0x38] sm:$0xff]  }
 0x229   : > { %v1995_v24 = vpack.c.bf16 %v1961_v35, %v1959_v0  ;;  %v1608_v25 = vmul.f32 %v4012_v9, %v1576_v43  ;;  %v1386_v21 = vadd.f32 -1.4531521, %v1354_v60  ;;  %v2689_v46 = vpop.eup %2688  ;;  %v1772_v7 = vmul.f32 %v2681_v2, %v1612_v45  ;;  %v2543_v60 = vld [vmem:[%s4113_s4 + $0x20] sm:$0xff]  }
 0x22a   : > { %v1766_v37 = vmul.f32 %v2685_v52, %v1606_v13  ;;  %v1579_v5 = vadd.f32 0.2548296, %v1547_v57  ;;  %v1126_v36 = vmul.f32 0.5, %v3935_v41  ;;  %vm1832_vm13 = vcmp.lt.f32.partialorder %v3949_v27, 0.0  ;;  %v2540_v57 = vld [vmem:[%s4113_s4] sm:$0xff]  }
 0x22b   : > { %2058 = vmatprep.subr.bf16.mxu0 %v1995_v24  ;;  %2494 = vmatprep.subr.bf16.mxu1 %v1995_v24  ;;  %v1768_v18 = vmul.f32 %v2687_v23, %v1608_v25  ;;  %v1418_v9 = vmul.f32 %v2683_v47, %v1386_v21  ;;  %2690 = vpow2.f32 %v1734_v48  ;;  %v1128_v63 = vmul.f32 0.5, %v3938_v32  ;;  %v2544_v23 = vld [vmem:[%s4113_s4 + $0x28] sm:$0xff]  }
 0x22c   : > { %v1798_v39 = vsub.f32 1.0, %v1766_v37  ;;  %v1611_v61 = vmul.f32 %v4020_v16, %v1579_v5  ;;  %v1933_v26 = vadd.f32 1.0, %v1901_v4  ;;  %v1804_v14 = vsub.f32 1.0, %v1772_v7  ;;  %v2545_v37 = vld [vmem:[%s4113_s4 + $0x30] sm:$0xff]  }
 0x22d   : > { %v1800_v28 = vsub.f32 1.0, %v1768_v18  ;;  %v1450_v31 = vadd.f32 1.4214138, %v1418_v9  ;;  %v1133_v2 = vmul.f32 0.5, %v3519_v54  ;;  %vm1835_vm14 = vcmp.lt.f32.partialorder %v3963_v20, 0.0 }
 0x22e   : > { %v1862_v53 = vsub.f32 0.0, %v1798_v39  ;;  %v1771_v17 = vmul.f32 %v2689_v46, %v1611_v61  ;;  %v1131_v22 = vmul.f32 0.5, %v3952_v11  ;;  %v1868_v32 = vsub.f32 0.0, %v1804_v14 }
 0x22f   : > { %v1864_v1 = vsub.f32 0.0, %v1800_v28  ;;  %v1482_v10 = vmul.f32 %v2683_v47, %v1450_v31  ;;  %v1965_v38 = vmul.f32 %v1933_v26, %v1133_v2  ;;  %vm1836_vm15 = vcmp.lt.f32.partialorder %v3564_v56, 0.0  ;;  %v2539_v56 = vld [vmem:[%s4113_s4 + $0x8] sm:$0xff]  }
 0x230   : > { %v1894_v49 = vsel %vm1830_vm12, %v1862_v53, %v1798_v39  ;;  %v1803_v16 = vsub.f32 1.0, %v1771_v17  ;;  %v1900_v43 = vsel %vm1836_vm15, %v1868_v32, %v1804_v14  ;;  %v1132_v11 = vmul.f32 0.5, %v3531_v6 }
 0x231   : > { %v1896_v8 = vsel %vm1832_vm13, %v1864_v1, %v1800_v28  ;;  %v1926_v55 = vadd.f32 1.0, %v1894_v49  ;;  %v1514_v33 = vadd.f32 -0.28449672, %v1482_v10  ;;  %v1932_v29 = vadd.f32 1.0, %v1900_v43 }
 0x232   : > { %v1928_v19 = vadd.f32 1.0, %v1896_v8  ;;  %v1867_v15 = vsub.f32 0.0, %v1803_v16  ;;  %vm1834_vm0 = vcmp.lt.f32.partialorder %v3998_v12, 0.0  ;;  %v1130_v58 = vmul.f32 0.5, %v3993_v34  ;;  %v2541_v34 = vld [vmem:[%s4113_s4 + $0x10] sm:$0xff]   ;;  %v2542_v12 = vld [vmem:[%s4113_s4 + $0x18] sm:$0xff]  }
 0x233   : > { %v1958_v62 = vmul.f32 %v1926_v55, %v1126_v36  ;;  %v1546_v27 = vmul.f32 %v2683_v47, %v1514_v33  ;;  %v4190_v6 = vmov 0   ;;  %vm2226_vm1 = vcmask 261120  }
 0x234   : > { %v1960_v40 = vmul.f32 %v1928_v19, %v1128_v63  ;;  %v1899_v41 = vsel %vm1835_vm14, %v1867_v15, %v1803_v16 }
 0x235   : > { %v1931_v44 = vadd.f32 1.0, %v1899_v41  ;;  %v1578_v50 = vadd.f32 0.2548296, %v1546_v27  ;;  %v2691_v59 = vpop.eup %2690 }
 0x236   : > { %v1994_v3 = vpack.c.bf16 %v1960_v40, %v1958_v62 }
 0x237   : > { %v1963_v0 = vmul.f32 %v1931_v44, %v1131_v22  ;;  %v1610_v51 = vmul.f32 %v2683_v47, %v1578_v50  ;;  %v1964_v47 = vmul.f32 %v1932_v29, %v1132_v11  ;;  %v2190_v11 = vpop.permute.xlu0 %2189 }
 0x238   : > { %2059 = vmatpush1.bf16.msra.mxu0 %v1994_v3  ;;  %2502 = vmatpush1.bf16.msra.mxu1 %v1994_v3 }
 0x239   : > { %v1997_v35 = vpack.c.bf16 %v1965_v38, %v1963_v0  ;;  %v1770_v54 = vmul.f32 %v2691_v59, %v1610_v51 }
 0x23b   : > { %2060 = vmatprep.subr.bf16.mxu0 %v1997_v35  ;;  %2495 = vmatprep.subr.bf16.mxu1 %v1997_v35  ;;  %v1802_v20 = vsub.f32 1.0, %v1770_v54 }
 0x23d   : > { %v1866_v30 = vsub.f32 0.0, %v1802_v20 }
 0x23f   : > { %v1898_v13 = vsel %vm1834_vm0, %v1866_v30, %v1802_v20  ;;  %v2195_v30 = vpop.permute.xlu1 %2194 }
 0x240   : > { %v1930_v52 = vadd.f32 1.0, %v1898_v13 }
 0x242   : > { %v1962_v24 = vmul.f32 %v1930_v52, %v1130_v58 }
 0x244   : > { %v1996_v25 = vpack.c.bf16 %v1964_v47, %v1962_v24 }
 0x246   : > { %2061 = vmatpush1.bf16.msra.mxu0 %v1996_v25  ;;  %2503 = vmatpush1.bf16.msra.mxu1 %v1996_v25 }
 0x249   : > { %2089 = vmatmul.mubr.bf16.vlgmr.msra.gmra.mrb[0].mxu1 %v2539_v56  ;;  %2079 = vmatmul.mubr.bf16.vlgmr.msra.gmra.mrb[32].mxu0 %v2540_v57 }
 0x24a   : > { %2098 = vmatprep.mubr.bf16.mxu1 %v4190_v6  ;;  %2262 = vmatprep.mubr.bf16.mxu0 %v4190_v6 }
 0x251   : > { %2099 = vmatmul.mubr.bf16.gmra.mrb[4].mxu1 %v2541_v34 }
 0x252   : > { %2108 = vmatprep.mubr.bf16.mxu1 %v4190_v6 }
 0x259   : > { %2109 = vmatmul.mubr.bf16.gmra.mrb[8].mxu1 %v2542_v12 }
 0x25a   : > { %2118 = vmatprep.mubr.bf16.mxu1 %v4190_v6 }
 0x261   : > { %2119 = vmatmul.mubr.bf16.gmra.mrb[12].mxu1 %v2543_v60 }
 0x262   : > { %2128 = vmatprep.mubr.bf16.mxu1 %v4190_v6 }
 0x269   : > { %2129 = vmatmul.mubr.bf16.gmra.mrb[16].mxu1 %v2544_v23 }
 0x26a   : > { %2138 = vmatprep.mubr.bf16.mxu1 %v4190_v6 }
 0x271   : > { %2139 = vmatmul.mubr.bf16.gmra.mrb[20].mxu1 %v2545_v37 }
 0x272   : > { %2148 = vmatprep.mubr.bf16.mxu1 %v4190_v6 }
 0x279   : > { %2149 = vmatmul.mubr.bf16.gmra.mrb[24].mxu1 %v2546_v42  ;;  %v2205_v42 = vpop.permute.xlu1 %2204 }
 0x31c   : > { %v2090_v18 = vpop.f32.mrb[0].mxu1  ;;  %v2080_v5 = vpop.f32.mrb[32].mxu0 }
 0x31d   : > { %v2092_v21 = vpop.f32.mrb[1].mxu1  ;;  %v2082_v45 = vpop.f32.mrb[33].mxu0 }
 0x31e   : > { %v2094_v46 = vpop.f32.mrb[2].mxu1  ;;  %v2084_v39 = vpop.f32.mrb[34].mxu0 }
 0x31f   : > { %v2096_v48 = vpop.f32.mrb[3].mxu1  ;;  %v2086_v28 = vpop.f32.mrb[35].mxu0 }
 0x324   : > { %v2100_v61 = vpop.f32.mrb[4].mxu1 }
 0x325   : > { %v2159_v9 = vmax.f32 %v2080_v5, %v2100_v61  ;;  %v2102_v53 = vpop.f32.mrb[5].mxu1  ;;  %v2547_v61 = vld [vmem:[%s4115_s6] sm:$0xff]  }
 0x326   : > { %v2160_v4 = vmax.f32 %v2082_v45, %v2102_v53  ;;  %v2104_v1 = vpop.f32.mrb[6].mxu1 }
 0x327   : > { %v2161_v17 = vmax.f32 %v2084_v39, %v2104_v1  ;;  %v2106_v31 = vpop.f32.mrb[7].mxu1 }
 0x328   : > { %v2162_v7 = vmax.f32 %v2086_v28, %v2106_v31 }
 0x32c   : > { %v2110_v36 = vpop.f32.mrb[8].mxu1 }
 0x32d   : > { %v2163_v49 = vmax.f32 %v2090_v18, %v2110_v36  ;;  %v2112_v8 = vpop.f32.mrb[9].mxu1  ;;  %v2200_v18 = vpop.permute.xlu0 %2199 }
 0x32e   : > { %v2164_v55 = vmax.f32 %v2092_v21, %v2112_v8  ;;  %v2114_v16 = vpop.f32.mrb[10].mxu1 }
 0x32f   : > { %v2165_v10 = vmax.f32 %v2094_v46, %v2114_v16  ;;  %v2116_v63 = vpop.f32.mrb[11].mxu1 }
 0x330   : > { %v2166_v19 = vmax.f32 %v2096_v48, %v2116_v63 }
 0x334   : > { %v2120_v26 = vpop.f32.mrb[12].mxu1 }
 0x335   : > { %v2167_v62 = vmax.f32 %v2159_v9, %v2120_v26  ;;  %v2122_v15 = vpop.f32.mrb[13].mxu1 }
 0x336   : > { %v2168_v33 = vmax.f32 %v2160_v4, %v2122_v15  ;;  %v2124_v14 = vpop.f32.mrb[14].mxu1 }
 0x337   : > { %v2169_v40 = vmax.f32 %v2161_v17, %v2124_v14  ;;  %v2126_v2 = vpop.f32.mrb[15].mxu1 }
 0x338   : > { %v2170_v41 = vmax.f32 %v2162_v7, %v2126_v2 }
 0x33c   : > { %v2130_v27 = vpop.f32.mrb[16].mxu1 }
 0x33d   : > { %v2171_v3 = vmax.f32 %v2163_v49, %v2130_v27  ;;  %v2132_v22 = vpop.f32.mrb[17].mxu1 }
 0x33e   : > { %v2172_v44 = vmax.f32 %v2164_v55, %v2132_v22  ;;  %v2134_v38 = vpop.f32.mrb[18].mxu1 }
 0x33f   : > { %v2173_v50 = vmax.f32 %v2165_v10, %v2134_v38  ;;  %v2136_v32 = vpop.f32.mrb[19].mxu1 }
 0x340   : > { %v2174_v0 = vmax.f32 %v2166_v19, %v2136_v32 }
 0x344   : > { %v2140_v51 = vpop.f32.mrb[20].mxu1 }
 0x345   : > { %v2175_v59 = vmax.f32 %v2167_v62, %v2140_v51  ;;  %v2142_v35 = vpop.f32.mrb[21].mxu1 }
 0x346   : > { %v2176_v54 = vmax.f32 %v2168_v33, %v2142_v35  ;;  %v2144_v43 = vpop.f32.mrb[22].mxu1 }
 0x347   : > { %v2177_v20 = vmax.f32 %v2169_v40, %v2144_v43  ;;  %v2146_v29 = vpop.f32.mrb[23].mxu1  ;;  %v2207_v58 = vadd.f32 %v2190_v11, %v2175_v59 }
 0x348   : > { %v2178_v13 = vmax.f32 %v2170_v41, %v2146_v29  ;;  %v2208_v47 = vadd.f32 %v2190_v11, %v2176_v54 }
 0x349   : > { %v2209_v52 = vadd.f32 %v2195_v30, %v2177_v20 }
 0x34a   : > { %v2210_v24 = vadd.f32 %v2195_v30, %v2178_v13 }
 0x34b   : > { %v2217_v25 = vpack.c.bf16 %v2209_v52, %v2207_v58 }
 0x34c   : > { %v2150_v56 = vpop.f32.mrb[24].mxu1  ;;  %v2218_v57 = vpack.c.bf16 %v2210_v24, %v2208_v47 }
 0x34d   : > { %v2179_v6 = vmax.f32 %v2171_v3, %v2150_v56  ;;  %v2152_v34 = vpop.f32.mrb[25].mxu1  ;;  %v2332_v56 = vpop.permute.xlu1 %2331 }
 0x34e   : > { %v2180_v12 = vmax.f32 %v2172_v44, %v2152_v34  ;;  %v2154_v60 = vpop.f32.mrb[26].mxu1  ;;  %2230 = vmatprep.subr.bf16.mxu0 %v2218_v57  ;;  %v2327_v57 = vpop.permute.xlu0 %2326 }
 0x34f   : > { %v2181_v23 = vmax.f32 %v2173_v50, %v2154_v60  ;;  %v2156_v37 = vpop.f32.mrb[27].mxu1  ;;  %2231 = vmatpush1.bf16.msra.mxu0 %v2217_v25  ;;  %v2211_v21 = vadd.f32 %v2200_v18, %v2179_v6 }
 0x350   : > { %v2182_v5 = vmax.f32 %v2174_v0, %v2156_v37  ;;  %v2212_v46 = vadd.f32 %v2200_v18, %v2180_v12 }
 0x351   : > { %v2213_v45 = vadd.f32 %v2205_v42, %v2181_v23 }
 0x352   : > { %v2214_v39 = vadd.f32 %v2205_v42, %v2182_v5  ;;  %v2348_v5 = vpop.permute.xlu1 %2347 }
 0x353   : > { %v2219_v48 = vpack.c.bf16 %v2213_v45, %v2211_v21  ;;  %v2343_v21 = vpop.permute.xlu0 %2342 }
 0x354   : > { %v2220_v28 = vpack.c.bf16 %v2214_v39, %v2212_v46 }
 0x356   : > { %2232 = vmatprep.subr.bf16.mxu0 %v2220_v28 }
 0x357   : > { %2233 = vmatpush1.bf16.msra.mxu0 %v2219_v48 }
 0x35a   : > { %2483 = vmatmul.mubr.msk.bf16.vlgmr.msra.gmra.mrb[36].mxu0 %vm2226_vm1, %v2547_v61 }
 0x42d   : > { %v2264_v9 = vpop.f32.mrb[36].mxu0 }
 0x42e   : > { %v2266_v53 = vpop.f32.mrb[37].mxu0 }
 0x42f   : > { %v2268_v4 = vpop.f32.mrb[38].mxu0 }
 0x430   : > { %v2273_v1 = vadd.f32 %v2268_v4, %v2264_v9  ;;  %v2270_v17 = vpop.f32.mrb[39].mxu0 }
 0x431   : > { %v2280_v31 = vadd.f32 %v2270_v17, %v2266_v53 }
 0x432   : > { %v2274_v7 = vrot.slane %v2273_v1, 4 }
 0x433   : > { %v2281_v36 = vrot.slane %v2280_v31, 4 }
 0x434   : > { %v2275_v49 = vadd.f32 %v2274_v7, %v2273_v1  ;;  %v2699_v7 = vld [vmem:[%s2805_s16 + $0x18] sm:$0xff] }
 0x435   : > { %v2282_v8 = vadd.f32 %v2281_v36, %v2280_v31 }
 0x436   : > { %v2276_v55 = vrot.slane %v2275_v49, 2 }
 0x437   : > { %v2283_v16 = vrot.slane %v2282_v8, 2 }
 0x438   : > { %v2277_v10 = vadd.f32 %v2276_v55, %v2275_v49 }
 0x439   : > { %v2284_v63 = vadd.f32 %v2283_v16, %v2282_v8 }
 0x43a   : > { %v2278_v19 = vrot.slane %v2277_v10, 1 }
 0x43b   : > { %v2285_v26 = vrot.slane %v2284_v63, 1 }
 0x43c   : > { %v2279_v62 = vadd.f32 %v2278_v19, %v2277_v10 }
 0x43d   : > { %v2286_v15 = vadd.f32 %v2285_v26, %v2284_v63 }
 0x43e   : > { %v2288_v33 = vmul.f32 0.0625, %v2279_v62 }
 0x43f   : > { %v2289_v14 = vmul.f32 0.0625, %v2286_v15 }
 0x440   : > { %v2290_v40 = vsub.f32 %v2264_v9, %v2288_v33  ;;  %v2292_v2 = vsub.f32 %v2268_v4, %v2288_v33  ;;  %v2696_v9 = vld [vmem:[%s2805_s16] sm:$0xff]  ;;  %v2697_v4 = vld [vmem:[%s2805_s16 + $0x10] sm:$0xff] }
 0x441   : > { %v2291_v41 = vsub.f32 %v2266_v53, %v2289_v14  ;;  %v2293_v27 = vsub.f32 %v2270_v17, %v2289_v14  ;;  %v2698_v17 = vld [vmem:[%s2805_s16 + $0x8] sm:$0xff] }
 0x442   : > { %v2294_v3 = vmul.f32 %v2290_v40, %v2290_v40  ;;  %v2296_v22 = vmul.f32 %v2292_v2, %v2292_v2 }
 0x443   : > { %v2295_v44 = vmul.f32 %v2291_v41, %v2291_v41  ;;  %v2297_v38 = vmul.f32 %v2293_v27, %v2293_v27 }
 0x444   : > { %v2298_v50 = vadd.f32 %v2296_v22, %v2294_v3 }
 0x445   : > { %v2305_v32 = vadd.f32 %v2297_v38, %v2295_v44 }
 0x446   : > { %v2299_v0 = vrot.slane %v2298_v50, 4 }
 0x447   : > { %v2306_v51 = vrot.slane %v2305_v32, 4 }
 0x448   : > { %v2300_v59 = vadd.f32 %v2299_v0, %v2298_v50 }
 0x449   : > { %v2307_v35 = vadd.f32 %v2306_v51, %v2305_v32 }
 0x44a   : > { %v2301_v54 = vrot.slane %v2300_v59, 2 }
 0x44b   : > { %v2308_v43 = vrot.slane %v2307_v35, 2 }
 0x44c   : > { %v2302_v20 = vadd.f32 %v2301_v54, %v2300_v59 }
 0x44d   : > { %v2309_v29 = vadd.f32 %v2308_v43, %v2307_v35 }
 0x44e   : > { %v2303_v30 = vrot.slane %v2302_v20, 1 }
 0x44f   : > { %v2310_v11 = vrot.slane %v2309_v29, 1 }
 0x450   : > { %v2304_v13 = vadd.f32 %v2303_v30, %v2302_v20 }
 0x451   : > { %v2311_v58 = vadd.f32 %v2310_v11, %v2309_v29 }
 0x452   : > { %v2312_v52 = vmul.f32 0.0625, %v2304_v13 }
 0x453   : > { %v2313_v47 = vmul.f32 0.0625, %v2311_v58 }
 0x454   : > { %v2314_v24 = vadd.f32 1e-06, %v2312_v52 }
 0x455   : > { %v2315_v25 = vadd.f32 1e-06, %v2313_v47 }
 0x456   : > { %2692 = vrsqrt.f32 %v2314_v24 }
 0x457   : > { %2694 = vrsqrt.f32 %v2315_v25 }
 0x460   : > { %v2693_v6 = vpop.eup %2692 }
 0x461   : > { %v2695_v34 = vpop.eup %2694  ;;  %v2318_v12 = vmul.f32 %v2693_v6, %v2290_v40  ;;  %v2320_v60 = vmul.f32 %v2693_v6, %v2292_v2 }
 0x462   : > { %v2319_v23 = vmul.f32 %v2695_v34, %v2291_v41  ;;  %v2321_v37 = vmul.f32 %v2695_v34, %v2293_v27 }
 0x463   : > { %v2334_v42 = vmul.f32 %v2327_v57, %v2318_v12  ;;  %v2336_v18 = vmul.f32 %v2332_v56, %v2320_v60 }
 0x464   : > { %v2335_v45 = vmul.f32 %v2327_v57, %v2319_v23  ;;  %v2337_v46 = vmul.f32 %v2332_v56, %v2321_v37 }
 0x465   : > { %v2350_v39 = vadd.f32 %v2343_v21, %v2334_v42  ;;  %v2352_v48 = vadd.f32 %v2348_v5, %v2336_v18 }
 0x466   : > { %v2351_v28 = vadd.f32 %v2343_v21, %v2335_v45  ;;  %v2353_v61 = vadd.f32 %v2348_v5, %v2337_v46 }
 0x467   : > { %v2354_v53 = vadd.f32 %v2696_v9, %v2350_v39  ;;  %v2356_v1 = vadd.f32 %v2697_v4, %v2352_v48 }
 0x468   : > { %v2355_v31 = vadd.f32 %v2698_v17, %v2351_v28  ;;  %v2357_v36 = vadd.f32 %v2699_v7, %v2353_v61 }
 0x469   : > { %2358 = vst [vmem:[%s370_s28] sm:$0xff] %v2354_v53  ;;  %2360 = vst [vmem:[%s370_s28 + $0x10] sm:$0xff] %v2356_v1 }
 0x46a   : > { %2359 = vst [vmem:[%s370_s28 + $0x8] sm:$0xff] %v2355_v31  ;;  %2361 = vst [vmem:[%s370_s28 + $0x18] sm:$0xff] %v2357_v36 }
 0x46b PF: > { %s19_s11 = sadd.s32 1, %s2722_s11   ;;  %s4191_s30 = smov %s2718_s10 }
 0x46c   : > { %p16_p5 = scmp.ge.s32.totalorder %s19_s11, 4   ;;  %s4192_s10 = smov %s4194_s12 }
 0x46e   :  { %18 = sbr.rel (!%p16_p5) target bundleno = 2 (0x2), region = 86 }

</bundles_post_ra>
